<compile_context>
chip_gen: v7x
topology: tpu7x:2x2x1
jax: 0.10.0
libtpu: 0.0.40
codegen_flags: <defaults>
</compile_context>

<pallas_src>
import functools

import jax
import jax.numpy as jnp
from jax import lax
from jax.experimental import pallas as pl
from jax.experimental.pallas import tpu as pltpu

# ---------------- model hyper-parameters (small, consistent with the module) ---
B = 2            # batch (power of 2; see attention mask construction)
T_ENC = 8        # encoder_max_len
T_DEC = 8        # decoder_max_len
E = 32           # embedding_size
H = 32           # hidden_size (bidirectional=False, n_layers=1, rnn_cell='gru')
V_SRC = 16       # src_vocab_size
V_TGT = 16       # tgt_vocab_size
SOS_ID = 1
EOS_ID = 2


def seq2seq_kernel(
    # packed inputs
    src_tok_ref,      # (T_ENC*B, 1) int32   time-major flattened source token ids
    enc_tab_ref,      # (3, V_SRC, H) f32    src_embed@W_ih + b_ih (+ b_hh for r,z) per gate
    whh_ref,          # (6, H, H)     bf16   [enc r,z,n ; dec r,z,n] hidden weights
    dec_win_ref,      # (3, V_TGT, H) bf16   tgt_embed@W_ih + b_ih (+ b_hh for r,z) per gate
    attn_out_w_ref,   # (3H, H)       bf16   [attn_w_mix ; attn_w_hid ; out_w (lane-padded)]
    bias_ref,         # (4, 1, H)     f32    [e_bhh_n ; d_bhh_n ; attn_b ; out_b (lane-padded)]
    # output
    logp_ref,         # (B, T_DEC*V_TGT) f32  lane-dense log-softmax rows
):
    f32 = jnp.float32
    bf16 = jnp.bfloat16

    # ---- one-time parameter loads / broadcasts (reused by every unrolled step) ----
    e_whh_r = whh_ref[0]; e_whh_z = whh_ref[1]; e_whh_n = whh_ref[2]
    d_whh_r = whh_ref[3]; d_whh_z = whh_ref[4]; d_whh_n = whh_ref[5]
    dec_win_r = dec_win_ref[0]; dec_win_z = dec_win_ref[1]; dec_win_n = dec_win_ref[2]

    aw = attn_out_w_ref[...]                       # (3H, H) bf16
    attn_w_mix = aw[0:H, :]                        # acts on the attention mix
    attn_w_hid = aw[H:2 * H, :]                    # acts on the decoder hidden
    out_w = aw[2 * H:3 * H, 0:V_TGT]               # (H, V_TGT)

    e_bhh_n = jnp.broadcast_to(bias_ref[0], (B, H))
    d_bhh_n = jnp.broadcast_to(bias_ref[1], (B, H))
    attn_b = jnp.broadcast_to(bias_ref[2], (B, H))
    out_b = jnp.broadcast_to(bias_ref[3][:, 0:V_TGT], (B, V_TGT))

    # ---- encoder input projection: one-hot gather + x@W_ih + biases as three
    #      tiny matmuls, all computed before (off) the serial recurrence ----------
    tok = src_tok_ref[...]                                                   # (T*B, 1)
    src_iota = lax.broadcasted_iota(jnp.int32, (T_ENC * B, V_SRC), 1)
    src_oh = (src_iota == tok).astype(f32)                                   # (T*B, V_SRC)
    gx_r_all = jnp.dot(src_oh, enc_tab_ref[0], preferred_element_type=f32)   # (T*B, H)
    gx_z_all = jnp.dot(src_oh, enc_tab_ref[1], preferred_element_type=f32)
    gx_n_all = jnp.dot(src_oh, enc_tab_ref[2], preferred_element_type=f32)

    def gru_cell(gx_r, gx_z, gx_n, h, h_bf, whh_r, whh_z, whh_n, bhh_n):
        """PyTorch nn.GRU cell; b_ih and (for r,z) b_hh already folded into gx."""
        r = jax.nn.sigmoid(gx_r + jnp.dot(h_bf, whh_r, preferred_element_type=f32))
        z = jax.nn.sigmoid(gx_z + jnp.dot(h_bf, whh_z, preferred_element_type=f32))
        n = jnp.tanh(gx_n + r * (jnp.dot(h_bf, whh_n, preferred_element_type=f32) + bhh_n))
        return (1.0 - z) * n + z * h

    # ----------------------------- encoder GRU (unrolled) ------------------------
    h = jnp.zeros((B, H), f32)
    enc_states = []
    for t in range(T_ENC):
        h_bf = h.astype(bf16)
        h = gru_cell(gx_r_all[t * B:(t + 1) * B, :],
                     gx_z_all[t * B:(t + 1) * B, :],
                     gx_n_all[t * B:(t + 1) * B, :],
                     h, h_bf, e_whh_r, e_whh_z, e_whh_n, e_bhh_n)
        enc_states.append(h)
    enc_flat = jnp.concatenate(enc_states, axis=0)          # (T*B, H), row = t*B + b
    enc_flat_bf = enc_flat.astype(bf16)

    # Hoisted block-diagonal attention mask: batch b may only attend columns j
    # with j % B == b (B is a power of 2 -> bitwise and instead of modulo).
    col = lax.broadcasted_iota(jnp.int32, (B, T_ENC * B), 1)
    row = lax.broadcasted_iota(jnp.int32, (B, T_ENC * B), 0)
    attn_mask = jnp.where(jnp.bitwise_and(col, B - 1) == row, 0.0, -1e30).astype(f32)

    # Hoisted loop-invariant decoder constants.
    iota_bv = lax.broadcasted_iota(jnp.int32, (B, V_TGT), 1)
    fill_v = jnp.full((B, V_TGT), V_TGT, jnp.int32)
    tok_oh = (iota_bv == SOS_ID).astype(bf16)                # (B, V_TGT) one-hot <sos>

    # ----------------------- decoder GRU + attention (unrolled) ------------------
    logp_rows = []
    for _ in range(T_DEC):
        # embedding lookup + input projection + biases in one matmul per gate
        gx_r = jnp.dot(tok_oh, dec_win_r, preferred_element_type=f32)
        gx_z = jnp.dot(tok_oh, dec_win_z, preferred_element_type=f32)
        gx_n = jnp.dot(tok_oh, dec_win_n, preferred_element_type=f32)
        h_bf = h.astype(bf16)
        h = gru_cell(gx_r, gx_z, gx_n, h, h_bf, d_whh_r, d_whh_z, d_whh_n, d_bhh_n)
        h_bf = h.astype(bf16)

        # Luong attention: flat 2-D matmuls over all encoder states + block mask
        scores = lax.dot_general(h_bf, enc_flat_bf, (((1,), (1,)), ((), ())),
                                 preferred_element_type=f32) + attn_mask     # (B, T*B)
        m = jnp.max(scores, axis=-1, keepdims=True)
        w = jnp.exp(scores - m)
        attn = w * pl.reciprocal(jnp.sum(w, axis=-1, keepdims=True), approx=True)
        mix = jnp.dot(attn.astype(bf16), enc_flat_bf, preferred_element_type=f32)  # (B, H)

        # tanh(Linear([mix; hidden]))  (concat folded into two matmuls)
        comb = jnp.tanh(
            jnp.dot(mix.astype(bf16), attn_w_mix, preferred_element_type=f32)
            + jnp.dot(h_bf, attn_w_hid, preferred_element_type=f32)
            + attn_b
        )                                                                    # (B, H)
        logits = jnp.dot(comb.astype(bf16), out_w, preferred_element_type=f32) + out_b

        # exact log_softmax, accumulated in registers (single store at the end)
        mx = jnp.max(logits, axis=-1, keepdims=True)
        zc = logits - mx
        lse = jnp.log(jnp.sum(jnp.exp(zc), axis=-1, keepdims=True))
        logp_rows.append(zc - lse)

        # greedy symbol feedback (first-max argmax -> strictly one-hot)
        is_max = logits >= mx
        first_idx = jnp.min(jnp.where(is_max, iota_bv, fill_v), axis=-1, keepdims=True)
        tok_oh = (iota_bv == first_idx).astype(bf16)

    # one unmasked lane-dense store: (B, T_DEC*V_TGT) = (2, 128)
    logp_ref[...] = jnp.concatenate(logp_rows, axis=1)


def seq2seq_forward(src_tokens, params):
    """src_tokens: (B, T_enc) int32 -> log-probs (B, T_dec, V_tgt) float32."""
    f32 = jnp.float32
    bf16 = jnp.bfloat16

    # ---- parameter-only packing (cacheable across calls); folds b_ih everywhere
    #      and b_hh for the r/z gates (legal: they sit additively inside sigmoid) ----
    e_gate_bias = jnp.concatenate(
        [params["e_bhh"][:, 0:2 * H], jnp.zeros((1, H), f32)], axis=1)        # fold r,z only
    e_tab = jnp.dot(params["src_embed"], params["e_wih"]) + params["e_bih"] + e_gate_bias
    enc_tab = jnp.stack([e_tab[:, 0:H], e_tab[:, H:2 * H], e_tab[:, 2 * H:]],
                        axis=0).astype(f32)                                    # (3, V_SRC, H)

    d_gate_bias = jnp.concatenate(
        [params["d_bhh"][:, 0:2 * H], jnp.zeros((1, H), f32)], axis=1)
    d_tab = jnp.dot(params["tgt_embed"], params["d_wih"]) + params["d_bih"] + d_gate_bias
    dec_win = jnp.stack([d_tab[:, 0:H], d_tab[:, H:2 * H], d_tab[:, 2 * H:]],
                        axis=0).astype(bf16)                                   # (3, V_TGT, H)

    def split3(w):  # (X, 3H) -> three (X, H), gate order [r, z, n]
        return w[:, 0:H], w[:, H:2 * H], w[:, 2 * H:3 * H]

    whh_pack = jnp.stack(list(split3(params["e_whh"])) + list(split3(params["d_whh"])),
                         axis=0).astype(bf16)                                  # (6, H, H)

    out_w_pad = jnp.zeros((H, H), f32).at[:, 0:V_TGT].set(params["out_w"])
    attn_out_w = jnp.concatenate([params["attn_w"], out_w_pad], axis=0).astype(bf16)  # (3H, H)

    out_b_pad = jnp.zeros((1, H), f32).at[:, 0:V_TGT].set(params["out_b"])
    bias_pack = jnp.stack([params["e_bhh"][:, 2 * H:3 * H],
                           params["d_bhh"][:, 2 * H:3 * H],
                           params["attn_b"],
                           out_b_pad], axis=0).astype(f32)                     # (4, 1, H)

    # source tokens, time-major flattened column (row index = t*B + b)
    src_tm = jnp.transpose(src_tokens, (1, 0)).reshape(T_ENC * B, 1).astype(jnp.int32)

    ins = (src_tm, enc_tab, whh_pack, dec_win, attn_out_w, bias_pack)
    vmem = functools.partial(pl.BlockSpec, memory_space=pltpu.MemorySpace.VMEM)
    # Single program, everything VMEM-resident (~50 KiB total).  Latency-bound
    # on the serial 16-step GRU chain; no grid / megacore split pays off at B=2.
    # NOTE: for throughput, grow B toward 8+ (fills vreg sublanes / MXU rows)
    # and only then add a leading "parallel" batch grid axis (v7x dual-TC).
    logp_flat = pl.pallas_call(
        seq2seq_kernel,
        out_shape=jax.ShapeDtypeStruct((B, T_DEC * V_TGT), f32),
        in_specs=[vmem() for _ in ins],
        out_specs=vmem(),
    )(*ins)
    return logp_flat.reshape(B, T_DEC, V_TGT)


def init_params(key):
    ks = jax.random.split(key, 16)
    s = 0.1
    p = {
        "src_embed": jax.random.normal(ks[0], (V_SRC, E), jnp.float32) * s,
        "e_wih": jax.random.normal(ks[1], (E, 3 * H), jnp.float32) * s,
        "e_whh": jax.random.normal(ks[2], (H, 3 * H), jnp.float32) * s,
        "e_bih": jax.random.normal(ks[3], (1, 3 * H), jnp.float32) * s,
        "e_bhh": jax.random.normal(ks[4], (1, 3 * H), jnp.float32) * s,
        "tgt_embed": jax.random.normal(ks[5], (V_TGT, E), jnp.float32) * s,
        "d_wih": jax.random.normal(ks[6], (E, 3 * H), jnp.float32) * s,
        "d_whh": jax.random.normal(ks[7], (H, 3 * H), jnp.float32) * s,
        "d_bih": jax.random.normal(ks[8], (1, 3 * H), jnp.float32) * s,
        "d_bhh": jax.random.normal(ks[9], (1, 3 * H), jnp.float32) * s,
        "attn_w": jax.random.normal(ks[10], (2 * H, H), jnp.float32) * s,   # [mix; hidden] order
        "attn_b": jax.random.normal(ks[11], (1, H), jnp.float32) * s,
        "out_w": jax.random.normal(ks[12], (H, V_TGT), jnp.float32) * s,
        "out_b": jax.random.normal(ks[13], (1, V_TGT), jnp.float32) * s,
    }
    return p


if __name__ == "__main__":
    key = jax.random.PRNGKey(0)
    k_par, k_tok = jax.random.split(key)
    params = init_params(k_par)
    # deterministic example source batch (input_variable)
    src_tokens = jax.random.randint(k_tok, (B, T_ENC), 0, V_SRC, dtype=jnp.int32)

    logp = jax.jit(seq2seq_forward)(src_tokens, params)
    logp = jax.block_until_ready(logp)

    assert logp.shape == (B, T_DEC, V_TGT)
    # each step's output is a valid log-softmax distribution
    assert jnp.allclose(jnp.sum(jnp.exp(logp), axis=-1), 1.0, atol=1e-4)
    print("KERNEL_OK")
</pallas_src>

<mosaic_0001>
module attributes {stable_mosaic.version = 11 : i64} {
  func.func @seq2seq_kernel(%arg0: memref<16x1xi32, #tpu.memory_space<vmem>>, %arg1: memref<3x16x32xf32, #tpu.memory_space<vmem>>, %arg2: memref<6x32x32xbf16, #tpu.memory_space<vmem>>, %arg3: memref<3x16x32xbf16, #tpu.memory_space<vmem>>, %arg4: memref<96x32xbf16, #tpu.memory_space<vmem>>, %arg5: memref<4x1x32xf32, #tpu.memory_space<vmem>>, %arg6: memref<2x128xf32, #tpu.memory_space<vmem>>) attributes {dimension_semantics = [], scalar_prefetch = 0 : i64, scratch_operands = 0 : i64, tpu.core_type = #tpu.core_type<tc>} {
    %c0 = arith.constant 0 : index
    %c0_0 = arith.constant 0 : index
    %c0_1 = arith.constant 0 : index
    %0 = vector.load %arg2[%c0, %c0_0, %c0_1] : memref<6x32x32xbf16, #tpu.memory_space<vmem>>, vector<1x32x32xbf16>
    %1 = vector.shape_cast %0 : vector<1x32x32xbf16> to vector<32x32xbf16>
    %c1 = arith.constant 1 : index
    %c0_2 = arith.constant 0 : index
    %c0_3 = arith.constant 0 : index
    %2 = vector.load %arg2[%c1, %c0_2, %c0_3] : memref<6x32x32xbf16, #tpu.memory_space<vmem>>, vector<1x32x32xbf16>
    %3 = vector.shape_cast %2 : vector<1x32x32xbf16> to vector<32x32xbf16>
    %c2 = arith.constant 2 : index
    %c0_4 = arith.constant 0 : index
    %c0_5 = arith.constant 0 : index
    %4 = vector.load %arg2[%c2, %c0_4, %c0_5] : memref<6x32x32xbf16, #tpu.memory_space<vmem>>, vector<1x32x32xbf16>
    %5 = vector.shape_cast %4 : vector<1x32x32xbf16> to vector<32x32xbf16>
    %c3 = arith.constant 3 : index
    %c0_6 = arith.constant 0 : index
    %c0_7 = arith.constant 0 : index
    %6 = vector.load %arg2[%c3, %c0_6, %c0_7] : memref<6x32x32xbf16, #tpu.memory_space<vmem>>, vector<1x32x32xbf16>
    %7 = vector.shape_cast %6 : vector<1x32x32xbf16> to vector<32x32xbf16>
    %c4 = arith.constant 4 : index
    %c0_8 = arith.constant 0 : index
    %c0_9 = arith.constant 0 : index
    %8 = vector.load %arg2[%c4, %c0_8, %c0_9] : memref<6x32x32xbf16, #tpu.memory_space<vmem>>, vector<1x32x32xbf16>
    %9 = vector.shape_cast %8 : vector<1x32x32xbf16> to vector<32x32xbf16>
    %c5 = arith.constant 5 : index
    %c0_10 = arith.constant 0 : index
    %c0_11 = arith.constant 0 : index
    %10 = vector.load %arg2[%c5, %c0_10, %c0_11] : memref<6x32x32xbf16, #tpu.memory_space<vmem>>, vector<1x32x32xbf16>
    %11 = vector.shape_cast %10 : vector<1x32x32xbf16> to vector<32x32xbf16>
    %c0_12 = arith.constant 0 : index
    %c0_13 = arith.constant 0 : index
    %c0_14 = arith.constant 0 : index
    %12 = vector.load %arg3[%c0_12, %c0_13, %c0_14] : memref<3x16x32xbf16, #tpu.memory_space<vmem>>, vector<1x16x32xbf16>
    %13 = vector.shape_cast %12 : vector<1x16x32xbf16> to vector<16x32xbf16>
    %c1_15 = arith.constant 1 : index
    %c0_16 = arith.constant 0 : index
    %c0_17 = arith.constant 0 : index
    %14 = vector.load %arg3[%c1_15, %c0_16, %c0_17] : memref<3x16x32xbf16, #tpu.memory_space<vmem>>, vector<1x16x32xbf16>
    %15 = vector.shape_cast %14 : vector<1x16x32xbf16> to vector<16x32xbf16>
    %c2_18 = arith.constant 2 : index
    %c0_19 = arith.constant 0 : index
    %c0_20 = arith.constant 0 : index
    %16 = vector.load %arg3[%c2_18, %c0_19, %c0_20] : memref<3x16x32xbf16, #tpu.memory_space<vmem>>, vector<1x16x32xbf16>
    %17 = vector.shape_cast %16 : vector<1x16x32xbf16> to vector<16x32xbf16>
    %c0_21 = arith.constant 0 : index
    %c0_22 = arith.constant 0 : index
    %18 = vector.load %arg4[%c0_21, %c0_22] : memref<96x32xbf16, #tpu.memory_space<vmem>>, vector<96x32xbf16>
    %19 = vector.extract_strided_slice %18 {offsets = [0, 0], sizes = [32, 32], strides = [1, 1]} : vector<96x32xbf16> to vector<32x32xbf16>
    %20 = vector.extract_strided_slice %18 {offsets = [32, 0], sizes = [32, 32], strides = [1, 1]} : vector<96x32xbf16> to vector<32x32xbf16>
    %21 = vector.extract_strided_slice %18 {offsets = [64, 0], sizes = [32, 16], strides = [1, 1]} : vector<96x32xbf16> to vector<32x16xbf16>
    %c0_23 = arith.constant 0 : index
    %c0_24 = arith.constant 0 : index
    %c0_25 = arith.constant 0 : index
    %22 = vector.load %arg5[%c0_23, %c0_24, %c0_25] : memref<4x1x32xf32, #tpu.memory_space<vmem>>, vector<1x1x32xf32>
    %23 = vector.shape_cast %22 : vector<1x1x32xf32> to vector<1x32xf32>
    %24 = vector.shape_cast %23 : vector<1x32xf32> to vector<1x32xf32>
    %25 = vector.broadcast %24 : vector<1x32xf32> to vector<2x32xf32>
    %c1_26 = arith.constant 1 : index
    %c0_27 = arith.constant 0 : index
    %c0_28 = arith.constant 0 : index
    %26 = vector.load %arg5[%c1_26, %c0_27, %c0_28] : memref<4x1x32xf32, #tpu.memory_space<vmem>>, vector<1x1x32xf32>
    %27 = vector.shape_cast %26 : vector<1x1x32xf32> to vector<1x32xf32>
    %28 = vector.shape_cast %27 : vector<1x32xf32> to vector<1x32xf32>
    %29 = vector.broadcast %28 : vector<1x32xf32> to vector<2x32xf32>
    %c2_29 = arith.constant 2 : index
    %c0_30 = arith.constant 0 : index
    %c0_31 = arith.constant 0 : index
    %30 = vector.load %arg5[%c2_29, %c0_30, %c0_31] : memref<4x1x32xf32, #tpu.memory_space<vmem>>, vector<1x1x32xf32>
    %31 = vector.shape_cast %30 : vector<1x1x32xf32> to vector<1x32xf32>
    %32 = vector.shape_cast %31 : vector<1x32xf32> to vector<1x32xf32>
    %33 = vector.broadcast %32 : vector<1x32xf32> to vector<2x32xf32>
    %c3_32 = arith.constant 3 : index
    %c0_33 = arith.constant 0 : index
    %c0_34 = arith.constant 0 : index
    %34 = vector.load %arg5[%c3_32, %c0_33, %c0_34] : memref<4x1x32xf32, #tpu.memory_space<vmem>>, vector<1x1x32xf32>
    %35 = vector.shape_cast %34 : vector<1x1x32xf32> to vector<1x32xf32>
    %36 = vector.extract_strided_slice %35 {offsets = [0, 0], sizes = [1, 16], strides = [1, 1]} : vector<1x32xf32> to vector<1x16xf32>
    %37 = vector.shape_cast %36 : vector<1x16xf32> to vector<1x16xf32>
    %38 = vector.broadcast %37 : vector<1x16xf32> to vector<2x16xf32>
    %c0_35 = arith.constant 0 : index
    %c0_36 = arith.constant 0 : index
    %39 = vector.load %arg0[%c0_35, %c0_36] : memref<16x1xi32, #tpu.memory_space<vmem>>, vector<16x1xi32>
    %40 = tpu.iota {dimensions = array<i32: 1>} : vector<16x16xi32>
    %41 = vector.broadcast %39 : vector<16x1xi32> to vector<16x16xi32>
    %42 = arith.cmpi eq, %40, %41 : vector<16x16xi32>
    %43 = arith.extui %42 : vector<16x16xi1> to vector<16x16xi32>
    %44 = arith.sitofp %43 : vector<16x16xi32> to vector<16x16xf32>
    %c0_37 = arith.constant 0 : index
    %c0_38 = arith.constant 0 : index
    %c0_39 = arith.constant 0 : index
    %45 = vector.load %arg1[%c0_37, %c0_38, %c0_39] : memref<3x16x32xf32, #tpu.memory_space<vmem>>, vector<1x16x32xf32>
    %46 = vector.shape_cast %45 : vector<1x16x32xf32> to vector<16x32xf32>
    %cst = arith.constant dense<0.000000e+00> : vector<16x32xf32>
    %47 = tpu.matmul %44, %46, %cst {dimension_numbers = #tpu.dot_dimension_numbers<[1], [0], [0], [1], [0, 0, 1, 1], [], []>} : vector<16x16xf32>, vector<16x32xf32>, vector<16x32xf32> -> vector<16x32xf32>
    %c1_40 = arith.constant 1 : index
    %c0_41 = arith.constant 0 : index
    %c0_42 = arith.constant 0 : index
    %48 = vector.load %arg1[%c1_40, %c0_41, %c0_42] : memref<3x16x32xf32, #tpu.memory_space<vmem>>, vector<1x16x32xf32>
    %49 = vector.shape_cast %48 : vector<1x16x32xf32> to vector<16x32xf32>
    %cst_43 = arith.constant dense<0.000000e+00> : vector<16x32xf32>
    %50 = tpu.matmul %44, %49, %cst_43 {dimension_numbers = #tpu.dot_dimension_numbers<[1], [0], [0], [1], [0, 0, 1, 1], [], []>} : vector<16x16xf32>, vector<16x32xf32>, vector<16x32xf32> -> vector<16x32xf32>
    %c2_44 = arith.constant 2 : index
    %c0_45 = arith.constant 0 : index
    %c0_46 = arith.constant 0 : index
    %51 = vector.load %arg1[%c2_44, %c0_45, %c0_46] : memref<3x16x32xf32, #tpu.memory_space<vmem>>, vector<1x16x32xf32>
    %52 = vector.shape_cast %51 : vector<1x16x32xf32> to vector<16x32xf32>
    %cst_47 = arith.constant dense<0.000000e+00> : vector<16x32xf32>
    %53 = tpu.matmul %44, %52, %cst_47 {dimension_numbers = #tpu.dot_dimension_numbers<[1], [0], [0], [1], [0, 0, 1, 1], [], []>} : vector<16x16xf32>, vector<16x32xf32>, vector<16x32xf32> -> vector<16x32xf32>
    %cst_48 = arith.constant 0.000000e+00 : f32
    %54 = vector.broadcast %cst_48 : f32 to vector<2x32xf32>
    %55 = arith.truncf %54 : vector<2x32xf32> to vector<2x32xbf16>
    %56 = vector.extract_strided_slice %47 {offsets = [0, 0], sizes = [2, 32], strides = [1, 1]} : vector<16x32xf32> to vector<2x32xf32>
    %57 = vector.extract_strided_slice %50 {offsets = [0, 0], sizes = [2, 32], strides = [1, 1]} : vector<16x32xf32> to vector<2x32xf32>
    %58 = vector.extract_strided_slice %53 {offsets = [0, 0], sizes = [2, 32], strides = [1, 1]} : vector<16x32xf32> to vector<2x32xf32>
    %cst_49 = arith.constant dense<0.000000e+00> : vector<2x32xf32>
    %59 = tpu.matmul %55, %1, %cst_49 {dimension_numbers = #tpu.dot_dimension_numbers<[1], [0], [0], [1], [0, 0, 1, 1], [], []>} : vector<2x32xbf16>, vector<32x32xbf16>, vector<2x32xf32> -> vector<2x32xf32>
    %60 = arith.addf %56, %59 : vector<2x32xf32>
    %61 = arith.negf %60 : vector<2x32xf32>
    %62 = math.exp %61 : vector<2x32xf32>
    %cst_50 = arith.constant 1.000000e+00 : f32
    %63 = vector.broadcast %cst_50 : f32 to vector<2x32xf32>
    %64 = arith.addf %63, %62 : vector<2x32xf32>
    %65 = arith.divf %63, %64 : vector<2x32xf32>
    %cst_51 = arith.constant dense<0.000000e+00> : vector<2x32xf32>
    %66 = tpu.matmul %55, %3, %cst_51 {dimension_numbers = #tpu.dot_dimension_numbers<[1], [0], [0], [1], [0, 0, 1, 1], [], []>} : vector<2x32xbf16>, vector<32x32xbf16>, vector<2x32xf32> -> vector<2x32xf32>
    %67 = arith.addf %57, %66 : vector<2x32xf32>
    %68 = arith.negf %67 : vector<2x32xf32>
    %69 = math.exp %68 : vector<2x32xf32>
    %cst_52 = arith.constant 1.000000e+00 : f32
    %70 = vector.broadcast %cst_52 : f32 to vector<2x32xf32>
    %71 = arith.addf %70, %69 : vector<2x32xf32>
    %72 = arith.divf %70, %71 : vector<2x32xf32>
    %cst_53 = arith.constant dense<0.000000e+00> : vector<2x32xf32>
    %73 = tpu.matmul %55, %5, %cst_53 {dimension_numbers = #tpu.dot_dimension_numbers<[1], [0], [0], [1], [0, 0, 1, 1], [], []>} : vector<2x32xbf16>, vector<32x32xbf16>, vector<2x32xf32> -> vector<2x32xf32>
    %74 = arith.addf %73, %25 : vector<2x32xf32>
    %75 = arith.mulf %65, %74 : vector<2x32xf32>
    %76 = arith.addf %58, %75 : vector<2x32xf32>
    %77 = math.tanh %76 : vector<2x32xf32>
    %cst_54 = arith.constant 1.000000e+00 : f32
    %78 = vector.broadcast %cst_54 : f32 to vector<2x32xf32>
    %79 = arith.subf %78, %72 : vector<2x32xf32>
    %80 = arith.mulf %79, %77 : vector<2x32xf32>
    %81 = arith.mulf %72, %54 : vector<2x32xf32>
    %82 = arith.addf %80, %81 : vector<2x32xf32>
    %83 = arith.truncf %82 : vector<2x32xf32> to vector<2x32xbf16>
    %84 = vector.extract_strided_slice %47 {offsets = [2, 0], sizes = [2, 32], strides = [1, 1]} : vector<16x32xf32> to vector<2x32xf32>
    %85 = vector.extract_strided_slice %50 {offsets = [2, 0], sizes = [2, 32], strides = [1, 1]} : vector<16x32xf32> to vector<2x32xf32>
    %86 = vector.extract_strided_slice %53 {offsets = [2, 0], sizes = [2, 32], strides = [1, 1]} : vector<16x32xf32> to vector<2x32xf32>
    %cst_55 = arith.constant dense<0.000000e+00> : vector<2x32xf32>
    %87 = tpu.matmul %83, %1, %cst_55 {dimension_numbers = #tpu.dot_dimension_numbers<[1], [0], [0], [1], [0, 0, 1, 1], [], []>} : vector<2x32xbf16>, vector<32x32xbf16>, vector<2x32xf32> -> vector<2x32xf32>
    %88 = arith.addf %84, %87 : vector<2x32xf32>
    %89 = arith.negf %88 : vector<2x32xf32>
    %90 = math.exp %89 : vector<2x32xf32>
    %cst_56 = arith.constant 1.000000e+00 : f32
    %91 = vector.broadcast %cst_56 : f32 to vector<2x32xf32>
    %92 = arith.addf %91, %90 : vector<2x32xf32>
    %93 = arith.divf %91, %92 : vector<2x32xf32>
    %cst_57 = arith.constant dense<0.000000e+00> : vector<2x32xf32>
    %94 = tpu.matmul %83, %3, %cst_57 {dimension_numbers = #tpu.dot_dimension_numbers<[1], [0], [0], [1], [0, 0, 1, 1], [], []>} : vector<2x32xbf16>, vector<32x32xbf16>, vector<2x32xf32> -> vector<2x32xf32>
    %95 = arith.addf %85, %94 : vector<2x32xf32>
    %96 = arith.negf %95 : vector<2x32xf32>
    %97 = math.exp %96 : vector<2x32xf32>
    %cst_58 = arith.constant 1.000000e+00 : f32
    %98 = vector.broadcast %cst_58 : f32 to vector<2x32xf32>
    %99 = arith.addf %98, %97 : vector<2x32xf32>
    %100 = arith.divf %98, %99 : vector<2x32xf32>
    %cst_59 = arith.constant dense<0.000000e+00> : vector<2x32xf32>
    %101 = tpu.matmul %83, %5, %cst_59 {dimension_numbers = #tpu.dot_dimension_numbers<[1], [0], [0], [1], [0, 0, 1, 1], [], []>} : vector<2x32xbf16>, vector<32x32xbf16>, vector<2x32xf32> -> vector<2x32xf32>
    %102 = arith.addf %101, %25 : vector<2x32xf32>
    %103 = arith.mulf %93, %102 : vector<2x32xf32>
    %104 = arith.addf %86, %103 : vector<2x32xf32>
    %105 = math.tanh %104 : vector<2x32xf32>
    %cst_60 = arith.constant 1.000000e+00 : f32
    %106 = vector.broadcast %cst_60 : f32 to vector<2x32xf32>
    %107 = arith.subf %106, %100 : vector<2x32xf32>
    %108 = arith.mulf %107, %105 : vector<2x32xf32>
    %109 = arith.mulf %100, %82 : vector<2x32xf32>
    %110 = arith.addf %108, %109 : vector<2x32xf32>
    %111 = arith.truncf %110 : vector<2x32xf32> to vector<2x32xbf16>
    %112 = vector.extract_strided_slice %47 {offsets = [4, 0], sizes = [2, 32], strides = [1, 1]} : vector<16x32xf32> to vector<2x32xf32>
    %113 = vector.extract_strided_slice %50 {offsets = [4, 0], sizes = [2, 32], strides = [1, 1]} : vector<16x32xf32> to vector<2x32xf32>
    %114 = vector.extract_strided_slice %53 {offsets = [4, 0], sizes = [2, 32], strides = [1, 1]} : vector<16x32xf32> to vector<2x32xf32>
    %cst_61 = arith.constant dense<0.000000e+00> : vector<2x32xf32>
    %115 = tpu.matmul %111, %1, %cst_61 {dimension_numbers = #tpu.dot_dimension_numbers<[1], [0], [0], [1], [0, 0, 1, 1], [], []>} : vector<2x32xbf16>, vector<32x32xbf16>, vector<2x32xf32> -> vector<2x32xf32>
    %116 = arith.addf %112, %115 : vector<2x32xf32>
    %117 = arith.negf %116 : vector<2x32xf32>
    %118 = math.exp %117 : vector<2x32xf32>
    %cst_62 = arith.constant 1.000000e+00 : f32
    %119 = vector.broadcast %cst_62 : f32 to vector<2x32xf32>
    %120 = arith.addf %119, %118 : vector<2x32xf32>
    %121 = arith.divf %119, %120 : vector<2x32xf32>
    %cst_63 = arith.constant dense<0.000000e+00> : vector<2x32xf32>
    %122 = tpu.matmul %111, %3, %cst_63 {dimension_numbers = #tpu.dot_dimension_numbers<[1], [0], [0], [1], [0, 0, 1, 1], [], []>} : vector<2x32xbf16>, vector<32x32xbf16>, vector<2x32xf32> -> vector<2x32xf32>
    %123 = arith.addf %113, %122 : vector<2x32xf32>
    %124 = arith.negf %123 : vector<2x32xf32>
    %125 = math.exp %124 : vector<2x32xf32>
    %cst_64 = arith.constant 1.000000e+00 : f32
    %126 = vector.broadcast %cst_64 : f32 to vector<2x32xf32>
    %127 = arith.addf %126, %125 : vector<2x32xf32>
    %128 = arith.divf %126, %127 : vector<2x32xf32>
    %cst_65 = arith.constant dense<0.000000e+00> : vector<2x32xf32>
    %129 = tpu.matmul %111, %5, %cst_65 {dimension_numbers = #tpu.dot_dimension_numbers<[1], [0], [0], [1], [0, 0, 1, 1], [], []>} : vector<2x32xbf16>, vector<32x32xbf16>, vector<2x32xf32> -> vector<2x32xf32>
    %130 = arith.addf %129, %25 : vector<2x32xf32>
    %131 = arith.mulf %121, %130 : vector<2x32xf32>
    %132 = arith.addf %114, %131 : vector<2x32xf32>
    %133 = math.tanh %132 : vector<2x32xf32>
    %cst_66 = arith.constant 1.000000e+00 : f32
    %134 = vector.broadcast %cst_66 : f32 to vector<2x32xf32>
    %135 = arith.subf %134, %128 : vector<2x32xf32>
    %136 = arith.mulf %135, %133 : vector<2x32xf32>
    %137 = arith.mulf %128, %110 : vector<2x32xf32>
    %138 = arith.addf %136, %137 : vector<2x32xf32>
    %139 = arith.truncf %138 : vector<2x32xf32> to vector<2x32xbf16>
    %140 = vector.extract_strided_slice %47 {offsets = [6, 0], sizes = [2, 32], strides = [1, 1]} : vector<16x32xf32> to vector<2x32xf32>
    %141 = vector.extract_strided_slice %50 {offsets = [6, 0], sizes = [2, 32], strides = [1, 1]} : vector<16x32xf32> to vector<2x32xf32>
    %142 = vector.extract_strided_slice %53 {offsets = [6, 0], sizes = [2, 32], strides = [1, 1]} : vector<16x32xf32> to vector<2x32xf32>
    %cst_67 = arith.constant dense<0.000000e+00> : vector<2x32xf32>
    %143 = tpu.matmul %139, %1, %cst_67 {dimension_numbers = #tpu.dot_dimension_numbers<[1], [0], [0], [1], [0, 0, 1, 1], [], []>} : vector<2x32xbf16>, vector<32x32xbf16>, vector<2x32xf32> -> vector<2x32xf32>
    %144 = arith.addf %140, %143 : vector<2x32xf32>
    %145 = arith.negf %144 : vector<2x32xf32>
    %146 = math.exp %145 : vector<2x32xf32>
    %cst_68 = arith.constant 1.000000e+00 : f32
    %147 = vector.broadcast %cst_68 : f32 to vector<2x32xf32>
    %148 = arith.addf %147, %146 : vector<2x32xf32>
    %149 = arith.divf %147, %148 : vector<2x32xf32>
    %cst_69 = arith.constant dense<0.000000e+00> : vector<2x32xf32>
    %150 = tpu.matmul %139, %3, %cst_69 {dimension_numbers = #tpu.dot_dimension_numbers<[1], [0], [0], [1], [0, 0, 1, 1], [], []>} : vector<2x32xbf16>, vector<32x32xbf16>, vector<2x32xf32> -> vector<2x32xf32>
    %151 = arith.addf %141, %150 : vector<2x32xf32>
    %152 = arith.negf %151 : vector<2x32xf32>
    %153 = math.exp %152 : vector<2x32xf32>
    %cst_70 = arith.constant 1.000000e+00 : f32
    %154 = vector.broadcast %cst_70 : f32 to vector<2x32xf32>
    %155 = arith.addf %154, %153 : vector<2x32xf32>
    %156 = arith.divf %154, %155 : vector<2x32xf32>
    %cst_71 = arith.constant dense<0.000000e+00> : vector<2x32xf32>
    %157 = tpu.matmul %139, %5, %cst_71 {dimension_numbers = #tpu.dot_dimension_numbers<[1], [0], [0], [1], [0, 0, 1, 1], [], []>} : vector<2x32xbf16>, vector<32x32xbf16>, vector<2x32xf32> -> vector<2x32xf32>
    %158 = arith.addf %157, %25 : vector<2x32xf32>
    %159 = arith.mulf %149, %158 : vector<2x32xf32>
    %160 = arith.addf %142, %159 : vector<2x32xf32>
    %161 = math.tanh %160 : vector<2x32xf32>
    %cst_72 = arith.constant 1.000000e+00 : f32
    %162 = vector.broadcast %cst_72 : f32 to vector<2x32xf32>
    %163 = arith.subf %162, %156 : vector<2x32xf32>
    %164 = arith.mulf %163, %161 : vector<2x32xf32>
    %165 = arith.mulf %156, %138 : vector<2x32xf32>
    %166 = arith.addf %164, %165 : vector<2x32xf32>
    %167 = arith.truncf %166 : vector<2x32xf32> to vector<2x32xbf16>
    %168 = vector.extract_strided_slice %47 {offsets = [8, 0], sizes = [2, 32], strides = [1, 1]} : vector<16x32xf32> to vector<2x32xf32>
    %169 = vector.extract_strided_slice %50 {offsets = [8, 0], sizes = [2, 32], strides = [1, 1]} : vector<16x32xf32> to vector<2x32xf32>
    %170 = vector.extract_strided_slice %53 {offsets = [8, 0], sizes = [2, 32], strides = [1, 1]} : vector<16x32xf32> to vector<2x32xf32>
    %cst_73 = arith.constant dense<0.000000e+00> : vector<2x32xf32>
    %171 = tpu.matmul %167, %1, %cst_73 {dimension_numbers = #tpu.dot_dimension_numbers<[1], [0], [0], [1], [0, 0, 1, 1], [], []>} : vector<2x32xbf16>, vector<32x32xbf16>, vector<2x32xf32> -> vector<2x32xf32>
    %172 = arith.addf %168, %171 : vector<2x32xf32>
    %173 = arith.negf %172 : vector<2x32xf32>
    %174 = math.exp %173 : vector<2x32xf32>
    %cst_74 = arith.constant 1.000000e+00 : f32
    %175 = vector.broadcast %cst_74 : f32 to vector<2x32xf32>
    %176 = arith.addf %175, %174 : vector<2x32xf32>
    %177 = arith.divf %175, %176 : vector<2x32xf32>
    %cst_75 = arith.constant dense<0.000000e+00> : vector<2x32xf32>
    %178 = tpu.matmul %167, %3, %cst_75 {dimension_numbers = #tpu.dot_dimension_numbers<[1], [0], [0], [1], [0, 0, 1, 1], [], []>} : vector<2x32xbf16>, vector<32x32xbf16>, vector<2x32xf32> -> vector<2x32xf32>
    %179 = arith.addf %169, %178 : vector<2x32xf32>
    %180 = arith.negf %179 : vector<2x32xf32>
    %181 = math.exp %180 : vector<2x32xf32>
    %cst_76 = arith.constant 1.000000e+00 : f32
    %182 = vector.broadcast %cst_76 : f32 to vector<2x32xf32>
    %183 = arith.addf %182, %181 : vector<2x32xf32>
    %184 = arith.divf %182, %183 : vector<2x32xf32>
    %cst_77 = arith.constant dense<0.000000e+00> : vector<2x32xf32>
    %185 = tpu.matmul %167, %5, %cst_77 {dimension_numbers = #tpu.dot_dimension_numbers<[1], [0], [0], [1], [0, 0, 1, 1], [], []>} : vector<2x32xbf16>, vector<32x32xbf16>, vector<2x32xf32> -> vector<2x32xf32>
    %186 = arith.addf %185, %25 : vector<2x32xf32>
    %187 = arith.mulf %177, %186 : vector<2x32xf32>
    %188 = arith.addf %170, %187 : vector<2x32xf32>
    %189 = math.tanh %188 : vector<2x32xf32>
    %cst_78 = arith.constant 1.000000e+00 : f32
    %190 = vector.broadcast %cst_78 : f32 to vector<2x32xf32>
    %191 = arith.subf %190, %184 : vector<2x32xf32>
    %192 = arith.mulf %191, %189 : vector<2x32xf32>
    %193 = arith.mulf %184, %166 : vector<2x32xf32>
    %194 = arith.addf %192, %193 : vector<2x32xf32>
    %195 = arith.truncf %194 : vector<2x32xf32> to vector<2x32xbf16>
    %196 = vector.extract_strided_slice %47 {offsets = [10, 0], sizes = [2, 32], strides = [1, 1]} : vector<16x32xf32> to vector<2x32xf32>
    %197 = vector.extract_strided_slice %50 {offsets = [10, 0], sizes = [2, 32], strides = [1, 1]} : vector<16x32xf32> to vector<2x32xf32>
    %198 = vector.extract_strided_slice %53 {offsets = [10, 0], sizes = [2, 32], strides = [1, 1]} : vector<16x32xf32> to vector<2x32xf32>
    %cst_79 = arith.constant dense<0.000000e+00> : vector<2x32xf32>
    %199 = tpu.matmul %195, %1, %cst_79 {dimension_numbers = #tpu.dot_dimension_numbers<[1], [0], [0], [1], [0, 0, 1, 1], [], []>} : vector<2x32xbf16>, vector<32x32xbf16>, vector<2x32xf32> -> vector<2x32xf32>
    %200 = arith.addf %196, %199 : vector<2x32xf32>
    %201 = arith.negf %200 : vector<2x32xf32>
    %202 = math.exp %201 : vector<2x32xf32>
    %cst_80 = arith.constant 1.000000e+00 : f32
    %203 = vector.broadcast %cst_80 : f32 to vector<2x32xf32>
    %204 = arith.addf %203, %202 : vector<2x32xf32>
    %205 = arith.divf %203, %204 : vector<2x32xf32>
    %cst_81 = arith.constant dense<0.000000e+00> : vector<2x32xf32>
    %206 = tpu.matmul %195, %3, %cst_81 {dimension_numbers = #tpu.dot_dimension_numbers<[1], [0], [0], [1], [0, 0, 1, 1], [], []>} : vector<2x32xbf16>, vector<32x32xbf16>, vector<2x32xf32> -> vector<2x32xf32>
    %207 = arith.addf %197, %206 : vector<2x32xf32>
    %208 = arith.negf %207 : vector<2x32xf32>
    %209 = math.exp %208 : vector<2x32xf32>
    %cst_82 = arith.constant 1.000000e+00 : f32
    %210 = vector.broadcast %cst_82 : f32 to vector<2x32xf32>
    %211 = arith.addf %210, %209 : vector<2x32xf32>
    %212 = arith.divf %210, %211 : vector<2x32xf32>
    %cst_83 = arith.constant dense<0.000000e+00> : vector<2x32xf32>
    %213 = tpu.matmul %195, %5, %cst_83 {dimension_numbers = #tpu.dot_dimension_numbers<[1], [0], [0], [1], [0, 0, 1, 1], [], []>} : vector<2x32xbf16>, vector<32x32xbf16>, vector<2x32xf32> -> vector<2x32xf32>
    %214 = arith.addf %213, %25 : vector<2x32xf32>
    %215 = arith.mulf %205, %214 : vector<2x32xf32>
    %216 = arith.addf %198, %215 : vector<2x32xf32>
    %217 = math.tanh %216 : vector<2x32xf32>
    %cst_84 = arith.constant 1.000000e+00 : f32
    %218 = vector.broadcast %cst_84 : f32 to vector<2x32xf32>
    %219 = arith.subf %218, %212 : vector<2x32xf32>
    %220 = arith.mulf %219, %217 : vector<2x32xf32>
    %221 = arith.mulf %212, %194 : vector<2x32xf32>
    %222 = arith.addf %220, %221 : vector<2x32xf32>
    %223 = arith.truncf %222 : vector<2x32xf32> to vector<2x32xbf16>
    %224 = vector.extract_strided_slice %47 {offsets = [12, 0], sizes = [2, 32], strides = [1, 1]} : vector<16x32xf32> to vector<2x32xf32>
    %225 = vector.extract_strided_slice %50 {offsets = [12, 0], sizes = [2, 32], strides = [1, 1]} : vector<16x32xf32> to vector<2x32xf32>
    %226 = vector.extract_strided_slice %53 {offsets = [12, 0], sizes = [2, 32], strides = [1, 1]} : vector<16x32xf32> to vector<2x32xf32>
    %cst_85 = arith.constant dense<0.000000e+00> : vector<2x32xf32>
    %227 = tpu.matmul %223, %1, %cst_85 {dimension_numbers = #tpu.dot_dimension_numbers<[1], [0], [0], [1], [0, 0, 1, 1], [], []>} : vector<2x32xbf16>, vector<32x32xbf16>, vector<2x32xf32> -> vector<2x32xf32>
    %228 = arith.addf %224, %227 : vector<2x32xf32>
    %229 = arith.negf %228 : vector<2x32xf32>
    %230 = math.exp %229 : vector<2x32xf32>
    %cst_86 = arith.constant 1.000000e+00 : f32
    %231 = vector.broadcast %cst_86 : f32 to vector<2x32xf32>
    %232 = arith.addf %231, %230 : vector<2x32xf32>
    %233 = arith.divf %231, %232 : vector<2x32xf32>
    %cst_87 = arith.constant dense<0.000000e+00> : vector<2x32xf32>
    %234 = tpu.matmul %223, %3, %cst_87 {dimension_numbers = #tpu.dot_dimension_numbers<[1], [0], [0], [1], [0, 0, 1, 1], [], []>} : vector<2x32xbf16>, vector<32x32xbf16>, vector<2x32xf32> -> vector<2x32xf32>
    %235 = arith.addf %225, %234 : vector<2x32xf32>
    %236 = arith.negf %235 : vector<2x32xf32>
    %237 = math.exp %236 : vector<2x32xf32>
    %cst_88 = arith.constant 1.000000e+00 : f32
    %238 = vector.broadcast %cst_88 : f32 to vector<2x32xf32>
    %239 = arith.addf %238, %237 : vector<2x32xf32>
    %240 = arith.divf %238, %239 : vector<2x32xf32>
    %cst_89 = arith.constant dense<0.000000e+00> : vector<2x32xf32>
    %241 = tpu.matmul %223, %5, %cst_89 {dimension_numbers = #tpu.dot_dimension_numbers<[1], [0], [0], [1], [0, 0, 1, 1], [], []>} : vector<2x32xbf16>, vector<32x32xbf16>, vector<2x32xf32> -> vector<2x32xf32>
    %242 = arith.addf %241, %25 : vector<2x32xf32>
    %243 = arith.mulf %233, %242 : vector<2x32xf32>
    %244 = arith.addf %226, %243 : vector<2x32xf32>
    %245 = math.tanh %244 : vector<2x32xf32>
    %cst_90 = arith.constant 1.000000e+00 : f32
    %246 = vector.broadcast %cst_90 : f32 to vector<2x32xf32>
    %247 = arith.subf %246, %240 : vector<2x32xf32>
    %248 = arith.mulf %247, %245 : vector<2x32xf32>
    %249 = arith.mulf %240, %222 : vector<2x32xf32>
    %250 = arith.addf %248, %249 : vector<2x32xf32>
    %251 = arith.truncf %250 : vector<2x32xf32> to vector<2x32xbf16>
    %252 = vector.extract_strided_slice %47 {offsets = [14, 0], sizes = [2, 32], strides = [1, 1]} : vector<16x32xf32> to vector<2x32xf32>
    %253 = vector.extract_strided_slice %50 {offsets = [14, 0], sizes = [2, 32], strides = [1, 1]} : vector<16x32xf32> to vector<2x32xf32>
    %254 = vector.extract_strided_slice %53 {offsets = [14, 0], sizes = [2, 32], strides = [1, 1]} : vector<16x32xf32> to vector<2x32xf32>
    %cst_91 = arith.constant dense<0.000000e+00> : vector<2x32xf32>
    %255 = tpu.matmul %251, %1, %cst_91 {dimension_numbers = #tpu.dot_dimension_numbers<[1], [0], [0], [1], [0, 0, 1, 1], [], []>} : vector<2x32xbf16>, vector<32x32xbf16>, vector<2x32xf32> -> vector<2x32xf32>
    %256 = arith.addf %252, %255 : vector<2x32xf32>
    %257 = arith.negf %256 : vector<2x32xf32>
    %258 = math.exp %257 : vector<2x32xf32>
    %cst_92 = arith.constant 1.000000e+00 : f32
    %259 = vector.broadcast %cst_92 : f32 to vector<2x32xf32>
    %260 = arith.addf %259, %258 : vector<2x32xf32>
    %261 = arith.divf %259, %260 : vector<2x32xf32>
    %cst_93 = arith.constant dense<0.000000e+00> : vector<2x32xf32>
    %262 = tpu.matmul %251, %3, %cst_93 {dimension_numbers = #tpu.dot_dimension_numbers<[1], [0], [0], [1], [0, 0, 1, 1], [], []>} : vector<2x32xbf16>, vector<32x32xbf16>, vector<2x32xf32> -> vector<2x32xf32>
    %263 = arith.addf %253, %262 : vector<2x32xf32>
    %264 = arith.negf %263 : vector<2x32xf32>
    %265 = math.exp %264 : vector<2x32xf32>
    %cst_94 = arith.constant 1.000000e+00 : f32
    %266 = vector.broadcast %cst_94 : f32 to vector<2x32xf32>
    %267 = arith.addf %266, %265 : vector<2x32xf32>
    %268 = arith.divf %266, %267 : vector<2x32xf32>
    %cst_95 = arith.constant dense<0.000000e+00> : vector<2x32xf32>
    %269 = tpu.matmul %251, %5, %cst_95 {dimension_numbers = #tpu.dot_dimension_numbers<[1], [0], [0], [1], [0, 0, 1, 1], [], []>} : vector<2x32xbf16>, vector<32x32xbf16>, vector<2x32xf32> -> vector<2x32xf32>
    %270 = arith.addf %269, %25 : vector<2x32xf32>
    %271 = arith.mulf %261, %270 : vector<2x32xf32>
    %272 = arith.addf %254, %271 : vector<2x32xf32>
    %273 = math.tanh %272 : vector<2x32xf32>
    %cst_96 = arith.constant 1.000000e+00 : f32
    %274 = vector.broadcast %cst_96 : f32 to vector<2x32xf32>
    %275 = arith.subf %274, %268 : vector<2x32xf32>
    %276 = arith.mulf %275, %273 : vector<2x32xf32>
    %277 = arith.mulf %268, %250 : vector<2x32xf32>
    %278 = arith.addf %276, %277 : vector<2x32xf32>
    %279 = tpu.concatenate %82, %110, %138, %166, %194, %222, %250, %278 in 0 : vector<2x32xf32>, vector<2x32xf32>, vector<2x32xf32>, vector<2x32xf32>, vector<2x32xf32>, vector<2x32xf32>, vector<2x32xf32>, vector<2x32xf32> -> vector<16x32xf32>
    %280 = arith.truncf %279 : vector<16x32xf32> to vector<16x32xbf16>
    %281 = tpu.iota {dimensions = array<i32: 1>} : vector<2x16xi32>
    %282 = tpu.iota {dimensions = array<i32: 0>} : vector<2x16xi32>
    %c1_i32 = arith.constant 1 : i32
    %283 = vector.broadcast %c1_i32 : i32 to vector<2x16xi32>
    %284 = arith.andi %281, %283 : vector<2x16xi32>
    %285 = arith.cmpi eq, %284, %282 : vector<2x16xi32>
    %cst_97 = arith.constant 0.000000e+00 : f32
    %cst_98 = arith.constant -1.000000e+30 : f32
    %286 = vector.broadcast %cst_97 : f32 to vector<2x16xf32>
    %287 = vector.broadcast %cst_98 : f32 to vector<2x16xf32>
    %288 = arith.select %285, %286, %287 : vector<2x16xi1>, vector<2x16xf32>
    %289 = tpu.iota {dimensions = array<i32: 1>} : vector<2x16xi32>
    %c16_i32 = arith.constant 16 : i32
    %290 = vector.broadcast %c16_i32 : i32 to vector<2x16xi32>
    %c1_i32_99 = arith.constant 1 : i32
    %291 = vector.broadcast %c1_i32_99 : i32 to vector<2x16xi32>
    %292 = arith.cmpi eq, %289, %291 : vector<2x16xi32>
    %293 = arith.extui %292 : vector<2x16xi1> to vector<2x16xi32>
    %294 = arith.sitofp %293 : vector<2x16xi32> to vector<2x16xf32>
    %295 = arith.truncf %294 : vector<2x16xf32> to vector<2x16xbf16>
    %cst_100 = arith.constant dense<0.000000e+00> : vector<2x32xf32>
    %296 = tpu.matmul %295, %13, %cst_100 {dimension_numbers = #tpu.dot_dimension_numbers<[1], [0], [0], [1], [0, 0, 1, 1], [], []>} : vector<2x16xbf16>, vector<16x32xbf16>, vector<2x32xf32> -> vector<2x32xf32>
    %cst_101 = arith.constant dense<0.000000e+00> : vector<2x32xf32>
    %297 = tpu.matmul %295, %15, %cst_101 {dimension_numbers = #tpu.dot_dimension_numbers<[1], [0], [0], [1], [0, 0, 1, 1], [], []>} : vector<2x16xbf16>, vector<16x32xbf16>, vector<2x32xf32> -> vector<2x32xf32>
    %cst_102 = arith.constant dense<0.000000e+00> : vector<2x32xf32>
    %298 = tpu.matmul %295, %17, %cst_102 {dimension_numbers = #tpu.dot_dimension_numbers<[1], [0], [0], [1], [0, 0, 1, 1], [], []>} : vector<2x16xbf16>, vector<16x32xbf16>, vector<2x32xf32> -> vector<2x32xf32>
    %299 = arith.truncf %278 : vector<2x32xf32> to vector<2x32xbf16>
    %cst_103 = arith.constant dense<0.000000e+00> : vector<2x32xf32>
    %300 = tpu.matmul %299, %7, %cst_103 {dimension_numbers = #tpu.dot_dimension_numbers<[1], [0], [0], [1], [0, 0, 1, 1], [], []>} : vector<2x32xbf16>, vector<32x32xbf16>, vector<2x32xf32> -> vector<2x32xf32>
    %301 = arith.addf %296, %300 : vector<2x32xf32>
    %302 = arith.negf %301 : vector<2x32xf32>
    %303 = math.exp %302 : vector<2x32xf32>
    %cst_104 = arith.constant 1.000000e+00 : f32
    %304 = vector.broadcast %cst_104 : f32 to vector<2x32xf32>
    %305 = arith.addf %304, %303 : vector<2x32xf32>
    %306 = arith.divf %304, %305 : vector<2x32xf32>
    %cst_105 = arith.constant dense<0.000000e+00> : vector<2x32xf32>
    %307 = tpu.matmul %299, %9, %cst_105 {dimension_numbers = #tpu.dot_dimension_numbers<[1], [0], [0], [1], [0, 0, 1, 1], [], []>} : vector<2x32xbf16>, vector<32x32xbf16>, vector<2x32xf32> -> vector<2x32xf32>
    %308 = arith.addf %297, %307 : vector<2x32xf32>
    %309 = arith.negf %308 : vector<2x32xf32>
    %310 = math.exp %309 : vector<2x32xf32>
    %cst_106 = arith.constant 1.000000e+00 : f32
    %311 = vector.broadcast %cst_106 : f32 to vector<2x32xf32>
    %312 = arith.addf %311, %310 : vector<2x32xf32>
    %313 = arith.divf %311, %312 : vector<2x32xf32>
    %cst_107 = arith.constant dense<0.000000e+00> : vector<2x32xf32>
    %314 = tpu.matmul %299, %11, %cst_107 {dimension_numbers = #tpu.dot_dimension_numbers<[1], [0], [0], [1], [0, 0, 1, 1], [], []>} : vector<2x32xbf16>, vector<32x32xbf16>, vector<2x32xf32> -> vector<2x32xf32>
    %315 = arith.addf %314, %29 : vector<2x32xf32>
    %316 = arith.mulf %306, %315 : vector<2x32xf32>
    %317 = arith.addf %298, %316 : vector<2x32xf32>
    %318 = math.tanh %317 : vector<2x32xf32>
    %cst_108 = arith.constant 1.000000e+00 : f32
    %319 = vector.broadcast %cst_108 : f32 to vector<2x32xf32>
    %320 = arith.subf %319, %313 : vector<2x32xf32>
    %321 = arith.mulf %320, %318 : vector<2x32xf32>
    %322 = arith.mulf %313, %278 : vector<2x32xf32>
    %323 = arith.addf %321, %322 : vector<2x32xf32>
    %324 = arith.truncf %323 : vector<2x32xf32> to vector<2x32xbf16>
    %cst_109 = arith.constant dense<0.000000e+00> : vector<2x16xf32>
    %325 = tpu.matmul %324, %280, %cst_109 {dimension_numbers = #tpu.dot_dimension_numbers<[1], [1], [0], [0], [0, 0, 1, 0], [], []>} : vector<2x32xbf16>, vector<16x32xbf16>, vector<2x16xf32> -> vector<2x16xf32>
    %326 = arith.addf %325, %288 : vector<2x16xf32>
    %cst_110 = arith.constant dense<0xFF800000> : vector<2xf32>
    %327 = vector.multi_reduction <maximumf>, %326, %cst_110 [1] : vector<2x16xf32> to vector<2xf32>
    %328 = vector.shape_cast %327 : vector<2xf32> to vector<2x1xf32>
    %329 = vector.broadcast %328 : vector<2x1xf32> to vector<2x16xf32>
    %330 = arith.subf %326, %329 : vector<2x16xf32>
    %331 = math.exp %330 : vector<2x16xf32>
    %cst_111 = arith.constant dense<0.000000e+00> : vector<2xf32>
    %332 = vector.multi_reduction <add>, %331, %cst_111 [1] : vector<2x16xf32> to vector<2xf32>
    %333 = vector.shape_cast %332 : vector<2xf32> to vector<2x1xf32>
    %334 = tpu.reciprocal %333 {approx = true} : vector<2x1xf32> -> vector<2x1xf32>
    %335 = vector.broadcast %334 : vector<2x1xf32> to vector<2x16xf32>
    %336 = arith.mulf %331, %335 : vector<2x16xf32>
    %337 = arith.truncf %336 : vector<2x16xf32> to vector<2x16xbf16>
    %cst_112 = arith.constant dense<0.000000e+00> : vector<2x32xf32>
    %338 = tpu.matmul %337, %280, %cst_112 {dimension_numbers = #tpu.dot_dimension_numbers<[1], [0], [0], [1], [0, 0, 1, 1], [], []>} : vector<2x16xbf16>, vector<16x32xbf16>, vector<2x32xf32> -> vector<2x32xf32>
    %339 = arith.truncf %338 : vector<2x32xf32> to vector<2x32xbf16>
    %cst_113 = arith.constant dense<0.000000e+00> : vector<2x32xf32>
    %340 = tpu.matmul %339, %19, %cst_113 {dimension_numbers = #tpu.dot_dimension_numbers<[1], [0], [0], [1], [0, 0, 1, 1], [], []>} : vector<2x32xbf16>, vector<32x32xbf16>, vector<2x32xf32> -> vector<2x32xf32>
    %cst_114 = arith.constant dense<0.000000e+00> : vector<2x32xf32>
    %341 = tpu.matmul %324, %20, %cst_114 {dimension_numbers = #tpu.dot_dimension_numbers<[1], [0], [0], [1], [0, 0, 1, 1], [], []>} : vector<2x32xbf16>, vector<32x32xbf16>, vector<2x32xf32> -> vector<2x32xf32>
    %342 = arith.addf %340, %341 : vector<2x32xf32>
    %343 = arith.addf %342, %33 : vector<2x32xf32>
    %344 = math.tanh %343 : vector<2x32xf32>
    %345 = arith.truncf %344 : vector<2x32xf32> to vector<2x32xbf16>
    %cst_115 = arith.constant dense<0.000000e+00> : vector<2x16xf32>
    %346 = tpu.matmul %345, %21, %cst_115 {dimension_numbers = #tpu.dot_dimension_numbers<[1], [0], [0], [1], [0, 0, 1, 1], [], []>} : vector<2x32xbf16>, vector<32x16xbf16>, vector<2x16xf32> -> vector<2x16xf32>
    %347 = arith.addf %346, %38 : vector<2x16xf32>
    %cst_116 = arith.constant dense<0xFF800000> : vector<2xf32>
    %348 = vector.multi_reduction <maximumf>, %347, %cst_116 [1] : vector<2x16xf32> to vector<2xf32>
    %349 = vector.shape_cast %348 : vector<2xf32> to vector<2x1xf32>
    %350 = vector.broadcast %349 : vector<2x1xf32> to vector<2x16xf32>
    %351 = arith.subf %347, %350 : vector<2x16xf32>
    %352 = math.exp %351 : vector<2x16xf32>
    %cst_117 = arith.constant dense<0.000000e+00> : vector<2xf32>
    %353 = vector.multi_reduction <add>, %352, %cst_117 [1] : vector<2x16xf32> to vector<2xf32>
    %354 = vector.shape_cast %353 : vector<2xf32> to vector<2x1xf32>
    %355 = math.log %354 : vector<2x1xf32>
    %356 = vector.broadcast %355 : vector<2x1xf32> to vector<2x16xf32>
    %357 = arith.subf %351, %356 : vector<2x16xf32>
    %358 = vector.broadcast %349 : vector<2x1xf32> to vector<2x16xf32>
    %359 = arith.cmpf oge, %347, %358 : vector<2x16xf32>
    %360 = arith.select %359, %289, %290 : vector<2x16xi1>, vector<2x16xi32>
    %cst_118 = arith.constant dense<2147483647> : vector<2xi32>
    %361 = vector.multi_reduction <minsi>, %360, %cst_118 [1] : vector<2x16xi32> to vector<2xi32>
    %362 = vector.shape_cast %361 : vector<2xi32> to vector<2x1xi32>
    %363 = vector.broadcast %362 : vector<2x1xi32> to vector<2x16xi32>
    %364 = arith.cmpi eq, %289, %363 : vector<2x16xi32>
    %365 = arith.extui %364 : vector<2x16xi1> to vector<2x16xi32>
    %366 = arith.sitofp %365 : vector<2x16xi32> to vector<2x16xf32>
    %367 = arith.truncf %366 : vector<2x16xf32> to vector<2x16xbf16>
    %cst_119 = arith.constant dense<0.000000e+00> : vector<2x32xf32>
    %368 = tpu.matmul %367, %13, %cst_119 {dimension_numbers = #tpu.dot_dimension_numbers<[1], [0], [0], [1], [0, 0, 1, 1], [], []>} : vector<2x16xbf16>, vector<16x32xbf16>, vector<2x32xf32> -> vector<2x32xf32>
    %cst_120 = arith.constant dense<0.000000e+00> : vector<2x32xf32>
    %369 = tpu.matmul %367, %15, %cst_120 {dimension_numbers = #tpu.dot_dimension_numbers<[1], [0], [0], [1], [0, 0, 1, 1], [], []>} : vector<2x16xbf16>, vector<16x32xbf16>, vector<2x32xf32> -> vector<2x32xf32>
    %cst_121 = arith.constant dense<0.000000e+00> : vector<2x32xf32>
    %370 = tpu.matmul %367, %17, %cst_121 {dimension_numbers = #tpu.dot_dimension_numbers<[1], [0], [0], [1], [0, 0, 1, 1], [], []>} : vector<2x16xbf16>, vector<16x32xbf16>, vector<2x32xf32> -> vector<2x32xf32>
    %371 = arith.truncf %323 : vector<2x32xf32> to vector<2x32xbf16>
    %cst_122 = arith.constant dense<0.000000e+00> : vector<2x32xf32>
    %372 = tpu.matmul %371, %7, %cst_122 {dimension_numbers = #tpu.dot_dimension_numbers<[1], [0], [0], [1], [0, 0, 1, 1], [], []>} : vector<2x32xbf16>, vector<32x32xbf16>, vector<2x32xf32> -> vector<2x32xf32>
    %373 = arith.addf %368, %372 : vector<2x32xf32>
    %374 = arith.negf %373 : vector<2x32xf32>
    %375 = math.exp %374 : vector<2x32xf32>
    %cst_123 = arith.constant 1.000000e+00 : f32
    %376 = vector.broadcast %cst_123 : f32 to vector<2x32xf32>
    %377 = arith.addf %376, %375 : vector<2x32xf32>
    %378 = arith.divf %376, %377 : vector<2x32xf32>
    %cst_124 = arith.constant dense<0.000000e+00> : vector<2x32xf32>
    %379 = tpu.matmul %371, %9, %cst_124 {dimension_numbers = #tpu.dot_dimension_numbers<[1], [0], [0], [1], [0, 0, 1, 1], [], []>} : vector<2x32xbf16>, vector<32x32xbf16>, vector<2x32xf32> -> vector<2x32xf32>
    %380 = arith.addf %369, %379 : vector<2x32xf32>
    %381 = arith.negf %380 : vector<2x32xf32>
    %382 = math.exp %381 : vector<2x32xf32>
    %cst_125 = arith.constant 1.000000e+00 : f32
    %383 = vector.broadcast %cst_125 : f32 to vector<2x32xf32>
    %384 = arith.addf %383, %382 : vector<2x32xf32>
    %385 = arith.divf %383, %384 : vector<2x32xf32>
    %cst_126 = arith.constant dense<0.000000e+00> : vector<2x32xf32>
    %386 = tpu.matmul %371, %11, %cst_126 {dimension_numbers = #tpu.dot_dimension_numbers<[1], [0], [0], [1], [0, 0, 1, 1], [], []>} : vector<2x32xbf16>, vector<32x32xbf16>, vector<2x32xf32> -> vector<2x32xf32>
    %387 = arith.addf %386, %29 : vector<2x32xf32>
    %388 = arith.mulf %378, %387 : vector<2x32xf32>
    %389 = arith.addf %370, %388 : vector<2x32xf32>
    %390 = math.tanh %389 : vector<2x32xf32>
    %cst_127 = arith.constant 1.000000e+00 : f32
    %391 = vector.broadcast %cst_127 : f32 to vector<2x32xf32>
    %392 = arith.subf %391, %385 : vector<2x32xf32>
    %393 = arith.mulf %392, %390 : vector<2x32xf32>
    %394 = arith.mulf %385, %323 : vector<2x32xf32>
    %395 = arith.addf %393, %394 : vector<2x32xf32>
    %396 = arith.truncf %395 : vector<2x32xf32> to vector<2x32xbf16>
    %cst_128 = arith.constant dense<0.000000e+00> : vector<2x16xf32>
    %397 = tpu.matmul %396, %280, %cst_128 {dimension_numbers = #tpu.dot_dimension_numbers<[1], [1], [0], [0], [0, 0, 1, 0], [], []>} : vector<2x32xbf16>, vector<16x32xbf16>, vector<2x16xf32> -> vector<2x16xf32>
    %398 = arith.addf %397, %288 : vector<2x16xf32>
    %cst_129 = arith.constant dense<0xFF800000> : vector<2xf32>
    %399 = vector.multi_reduction <maximumf>, %398, %cst_129 [1] : vector<2x16xf32> to vector<2xf32>
    %400 = vector.shape_cast %399 : vector<2xf32> to vector<2x1xf32>
    %401 = vector.broadcast %400 : vector<2x1xf32> to vector<2x16xf32>
    %402 = arith.subf %398, %401 : vector<2x16xf32>
    %403 = math.exp %402 : vector<2x16xf32>
    %cst_130 = arith.constant dense<0.000000e+00> : vector<2xf32>
    %404 = vector.multi_reduction <add>, %403, %cst_130 [1] : vector<2x16xf32> to vector<2xf32>
    %405 = vector.shape_cast %404 : vector<2xf32> to vector<2x1xf32>
    %406 = tpu.reciprocal %405 {approx = true} : vector<2x1xf32> -> vector<2x1xf32>
    %407 = vector.broadcast %406 : vector<2x1xf32> to vector<2x16xf32>
    %408 = arith.mulf %403, %407 : vector<2x16xf32>
    %409 = arith.truncf %408 : vector<2x16xf32> to vector<2x16xbf16>
    %cst_131 = arith.constant dense<0.000000e+00> : vector<2x32xf32>
    %410 = tpu.matmul %409, %280, %cst_131 {dimension_numbers = #tpu.dot_dimension_numbers<[1], [0], [0], [1], [0, 0, 1, 1], [], []>} : vector<2x16xbf16>, vector<16x32xbf16>, vector<2x32xf32> -> vector<2x32xf32>
    %411 = arith.truncf %410 : vector<2x32xf32> to vector<2x32xbf16>
    %cst_132 = arith.constant dense<0.000000e+00> : vector<2x32xf32>
    %412 = tpu.matmul %411, %19, %cst_132 {dimension_numbers = #tpu.dot_dimension_numbers<[1], [0], [0], [1], [0, 0, 1, 1], [], []>} : vector<2x32xbf16>, vector<32x32xbf16>, vector<2x32xf32> -> vector<2x32xf32>
    %cst_133 = arith.constant dense<0.000000e+00> : vector<2x32xf32>
    %413 = tpu.matmul %396, %20, %cst_133 {dimension_numbers = #tpu.dot_dimension_numbers<[1], [0], [0], [1], [0, 0, 1, 1], [], []>} : vector<2x32xbf16>, vector<32x32xbf16>, vector<2x32xf32> -> vector<2x32xf32>
    %414 = arith.addf %412, %413 : vector<2x32xf32>
    %415 = arith.addf %414, %33 : vector<2x32xf32>
    %416 = math.tanh %415 : vector<2x32xf32>
    %417 = arith.truncf %416 : vector<2x32xf32> to vector<2x32xbf16>
    %cst_134 = arith.constant dense<0.000000e+00> : vector<2x16xf32>
    %418 = tpu.matmul %417, %21, %cst_134 {dimension_numbers = #tpu.dot_dimension_numbers<[1], [0], [0], [1], [0, 0, 1, 1], [], []>} : vector<2x32xbf16>, vector<32x16xbf16>, vector<2x16xf32> -> vector<2x16xf32>
    %419 = arith.addf %418, %38 : vector<2x16xf32>
    %cst_135 = arith.constant dense<0xFF800000> : vector<2xf32>
    %420 = vector.multi_reduction <maximumf>, %419, %cst_135 [1] : vector<2x16xf32> to vector<2xf32>
    %421 = vector.shape_cast %420 : vector<2xf32> to vector<2x1xf32>
    %422 = vector.broadcast %421 : vector<2x1xf32> to vector<2x16xf32>
    %423 = arith.subf %419, %422 : vector<2x16xf32>
    %424 = math.exp %423 : vector<2x16xf32>
    %cst_136 = arith.constant dense<0.000000e+00> : vector<2xf32>
    %425 = vector.multi_reduction <add>, %424, %cst_136 [1] : vector<2x16xf32> to vector<2xf32>
    %426 = vector.shape_cast %425 : vector<2xf32> to vector<2x1xf32>
    %427 = math.log %426 : vector<2x1xf32>
    %428 = vector.broadcast %427 : vector<2x1xf32> to vector<2x16xf32>
    %429 = arith.subf %423, %428 : vector<2x16xf32>
    %430 = vector.broadcast %421 : vector<2x1xf32> to vector<2x16xf32>
    %431 = arith.cmpf oge, %419, %430 : vector<2x16xf32>
    %432 = arith.select %431, %289, %290 : vector<2x16xi1>, vector<2x16xi32>
    %cst_137 = arith.constant dense<2147483647> : vector<2xi32>
    %433 = vector.multi_reduction <minsi>, %432, %cst_137 [1] : vector<2x16xi32> to vector<2xi32>
    %434 = vector.shape_cast %433 : vector<2xi32> to vector<2x1xi32>
    %435 = vector.broadcast %434 : vector<2x1xi32> to vector<2x16xi32>
    %436 = arith.cmpi eq, %289, %435 : vector<2x16xi32>
    %437 = arith.extui %436 : vector<2x16xi1> to vector<2x16xi32>
    %438 = arith.sitofp %437 : vector<2x16xi32> to vector<2x16xf32>
    %439 = arith.truncf %438 : vector<2x16xf32> to vector<2x16xbf16>
    %cst_138 = arith.constant dense<0.000000e+00> : vector<2x32xf32>
    %440 = tpu.matmul %439, %13, %cst_138 {dimension_numbers = #tpu.dot_dimension_numbers<[1], [0], [0], [1], [0, 0, 1, 1], [], []>} : vector<2x16xbf16>, vector<16x32xbf16>, vector<2x32xf32> -> vector<2x32xf32>
    %cst_139 = arith.constant dense<0.000000e+00> : vector<2x32xf32>
    %441 = tpu.matmul %439, %15, %cst_139 {dimension_numbers = #tpu.dot_dimension_numbers<[1], [0], [0], [1], [0, 0, 1, 1], [], []>} : vector<2x16xbf16>, vector<16x32xbf16>, vector<2x32xf32> -> vector<2x32xf32>
    %cst_140 = arith.constant dense<0.000000e+00> : vector<2x32xf32>
    %442 = tpu.matmul %439, %17, %cst_140 {dimension_numbers = #tpu.dot_dimension_numbers<[1], [0], [0], [1], [0, 0, 1, 1], [], []>} : vector<2x16xbf16>, vector<16x32xbf16>, vector<2x32xf32> -> vector<2x32xf32>
    %443 = arith.truncf %395 : vector<2x32xf32> to vector<2x32xbf16>
    %cst_141 = arith.constant dense<0.000000e+00> : vector<2x32xf32>
    %444 = tpu.matmul %443, %7, %cst_141 {dimension_numbers = #tpu.dot_dimension_numbers<[1], [0], [0], [1], [0, 0, 1, 1], [], []>} : vector<2x32xbf16>, vector<32x32xbf16>, vector<2x32xf32> -> vector<2x32xf32>
    %445 = arith.addf %440, %444 : vector<2x32xf32>
    %446 = arith.negf %445 : vector<2x32xf32>
    %447 = math.exp %446 : vector<2x32xf32>
    %cst_142 = arith.constant 1.000000e+00 : f32
    %448 = vector.broadcast %cst_142 : f32 to vector<2x32xf32>
    %449 = arith.addf %448, %447 : vector<2x32xf32>
    %450 = arith.divf %448, %449 : vector<2x32xf32>
    %cst_143 = arith.constant dense<0.000000e+00> : vector<2x32xf32>
    %451 = tpu.matmul %443, %9, %cst_143 {dimension_numbers = #tpu.dot_dimension_numbers<[1], [0], [0], [1], [0, 0, 1, 1], [], []>} : vector<2x32xbf16>, vector<32x32xbf16>, vector<2x32xf32> -> vector<2x32xf32>
    %452 = arith.addf %441, %451 : vector<2x32xf32>
    %453 = arith.negf %452 : vector<2x32xf32>
    %454 = math.exp %453 : vector<2x32xf32>
    %cst_144 = arith.constant 1.000000e+00 : f32
    %455 = vector.broadcast %cst_144 : f32 to vector<2x32xf32>
    %456 = arith.addf %455, %454 : vector<2x32xf32>
    %457 = arith.divf %455, %456 : vector<2x32xf32>
    %cst_145 = arith.constant dense<0.000000e+00> : vector<2x32xf32>
    %458 = tpu.matmul %443, %11, %cst_145 {dimension_numbers = #tpu.dot_dimension_numbers<[1], [0], [0], [1], [0, 0, 1, 1], [], []>} : vector<2x32xbf16>, vector<32x32xbf16>, vector<2x32xf32> -> vector<2x32xf32>
    %459 = arith.addf %458, %29 : vector<2x32xf32>
    %460 = arith.mulf %450, %459 : vector<2x32xf32>
    %461 = arith.addf %442, %460 : vector<2x32xf32>
    %462 = math.tanh %461 : vector<2x32xf32>
    %cst_146 = arith.constant 1.000000e+00 : f32
    %463 = vector.broadcast %cst_146 : f32 to vector<2x32xf32>
    %464 = arith.subf %463, %457 : vector<2x32xf32>
    %465 = arith.mulf %464, %462 : vector<2x32xf32>
    %466 = arith.mulf %457, %395 : vector<2x32xf32>
    %467 = arith.addf %465, %466 : vector<2x32xf32>
    %468 = arith.truncf %467 : vector<2x32xf32> to vector<2x32xbf16>
    %cst_147 = arith.constant dense<0.000000e+00> : vector<2x16xf32>
    %469 = tpu.matmul %468, %280, %cst_147 {dimension_numbers = #tpu.dot_dimension_numbers<[1], [1], [0], [0], [0, 0, 1, 0], [], []>} : vector<2x32xbf16>, vector<16x32xbf16>, vector<2x16xf32> -> vector<2x16xf32>
    %470 = arith.addf %469, %288 : vector<2x16xf32>
    %cst_148 = arith.constant dense<0xFF800000> : vector<2xf32>
    %471 = vector.multi_reduction <maximumf>, %470, %cst_148 [1] : vector<2x16xf32> to vector<2xf32>
    %472 = vector.shape_cast %471 : vector<2xf32> to vector<2x1xf32>
    %473 = vector.broadcast %472 : vector<2x1xf32> to vector<2x16xf32>
    %474 = arith.subf %470, %473 : vector<2x16xf32>
    %475 = math.exp %474 : vector<2x16xf32>
    %cst_149 = arith.constant dense<0.000000e+00> : vector<2xf32>
    %476 = vector.multi_reduction <add>, %475, %cst_149 [1] : vector<2x16xf32> to vector<2xf32>
    %477 = vector.shape_cast %476 : vector<2xf32> to vector<2x1xf32>
    %478 = tpu.reciprocal %477 {approx = true} : vector<2x1xf32> -> vector<2x1xf32>
    %479 = vector.broadcast %478 : vector<2x1xf32> to vector<2x16xf32>
    %480 = arith.mulf %475, %479 : vector<2x16xf32>
    %481 = arith.truncf %480 : vector<2x16xf32> to vector<2x16xbf16>
    %cst_150 = arith.constant dense<0.000000e+00> : vector<2x32xf32>
    %482 = tpu.matmul %481, %280, %cst_150 {dimension_numbers = #tpu.dot_dimension_numbers<[1], [0], [0], [1], [0, 0, 1, 1], [], []>} : vector<2x16xbf16>, vector<16x32xbf16>, vector<2x32xf32> -> vector<2x32xf32>
    %483 = arith.truncf %482 : vector<2x32xf32> to vector<2x32xbf16>
    %cst_151 = arith.constant dense<0.000000e+00> : vector<2x32xf32>
    %484 = tpu.matmul %483, %19, %cst_151 {dimension_numbers = #tpu.dot_dimension_numbers<[1], [0], [0], [1], [0, 0, 1, 1], [], []>} : vector<2x32xbf16>, vector<32x32xbf16>, vector<2x32xf32> -> vector<2x32xf32>
    %cst_152 = arith.constant dense<0.000000e+00> : vector<2x32xf32>
    %485 = tpu.matmul %468, %20, %cst_152 {dimension_numbers = #tpu.dot_dimension_numbers<[1], [0], [0], [1], [0, 0, 1, 1], [], []>} : vector<2x32xbf16>, vector<32x32xbf16>, vector<2x32xf32> -> vector<2x32xf32>
    %486 = arith.addf %484, %485 : vector<2x32xf32>
    %487 = arith.addf %486, %33 : vector<2x32xf32>
    %488 = math.tanh %487 : vector<2x32xf32>
    %489 = arith.truncf %488 : vector<2x32xf32> to vector<2x32xbf16>
    %cst_153 = arith.constant dense<0.000000e+00> : vector<2x16xf32>
    %490 = tpu.matmul %489, %21, %cst_153 {dimension_numbers = #tpu.dot_dimension_numbers<[1], [0], [0], [1], [0, 0, 1, 1], [], []>} : vector<2x32xbf16>, vector<32x16xbf16>, vector<2x16xf32> -> vector<2x16xf32>
    %491 = arith.addf %490, %38 : vector<2x16xf32>
    %cst_154 = arith.constant dense<0xFF800000> : vector<2xf32>
    %492 = vector.multi_reduction <maximumf>, %491, %cst_154 [1] : vector<2x16xf32> to vector<2xf32>
    %493 = vector.shape_cast %492 : vector<2xf32> to vector<2x1xf32>
    %494 = vector.broadcast %493 : vector<2x1xf32> to vector<2x16xf32>
    %495 = arith.subf %491, %494 : vector<2x16xf32>
    %496 = math.exp %495 : vector<2x16xf32>
    %cst_155 = arith.constant dense<0.000000e+00> : vector<2xf32>
    %497 = vector.multi_reduction <add>, %496, %cst_155 [1] : vector<2x16xf32> to vector<2xf32>
    %498 = vector.shape_cast %497 : vector<2xf32> to vector<2x1xf32>
    %499 = math.log %498 : vector<2x1xf32>
    %500 = vector.broadcast %499 : vector<2x1xf32> to vector<2x16xf32>
    %501 = arith.subf %495, %500 : vector<2x16xf32>
    %502 = vector.broadcast %493 : vector<2x1xf32> to vector<2x16xf32>
    %503 = arith.cmpf oge, %491, %502 : vector<2x16xf32>
    %504 = arith.select %503, %289, %290 : vector<2x16xi1>, vector<2x16xi32>
    %cst_156 = arith.constant dense<2147483647> : vector<2xi32>
    %505 = vector.multi_reduction <minsi>, %504, %cst_156 [1] : vector<2x16xi32> to vector<2xi32>
    %506 = vector.shape_cast %505 : vector<2xi32> to vector<2x1xi32>
    %507 = vector.broadcast %506 : vector<2x1xi32> to vector<2x16xi32>
    %508 = arith.cmpi eq, %289, %507 : vector<2x16xi32>
    %509 = arith.extui %508 : vector<2x16xi1> to vector<2x16xi32>
    %510 = arith.sitofp %509 : vector<2x16xi32> to vector<2x16xf32>
    %511 = arith.truncf %510 : vector<2x16xf32> to vector<2x16xbf16>
    %cst_157 = arith.constant dense<0.000000e+00> : vector<2x32xf32>
    %512 = tpu.matmul %511, %13, %cst_157 {dimension_numbers = #tpu.dot_dimension_numbers<[1], [0], [0], [1], [0, 0, 1, 1], [], []>} : vector<2x16xbf16>, vector<16x32xbf16>, vector<2x32xf32> -> vector<2x32xf32>
    %cst_158 = arith.constant dense<0.000000e+00> : vector<2x32xf32>
    %513 = tpu.matmul %511, %15, %cst_158 {dimension_numbers = #tpu.dot_dimension_numbers<[1], [0], [0], [1], [0, 0, 1, 1], [], []>} : vector<2x16xbf16>, vector<16x32xbf16>, vector<2x32xf32> -> vector<2x32xf32>
    %cst_159 = arith.constant dense<0.000000e+00> : vector<2x32xf32>
    %514 = tpu.matmul %511, %17, %cst_159 {dimension_numbers = #tpu.dot_dimension_numbers<[1], [0], [0], [1], [0, 0, 1, 1], [], []>} : vector<2x16xbf16>, vector<16x32xbf16>, vector<2x32xf32> -> vector<2x32xf32>
    %515 = arith.truncf %467 : vector<2x32xf32> to vector<2x32xbf16>
    %cst_160 = arith.constant dense<0.000000e+00> : vector<2x32xf32>
    %516 = tpu.matmul %515, %7, %cst_160 {dimension_numbers = #tpu.dot_dimension_numbers<[1], [0], [0], [1], [0, 0, 1, 1], [], []>} : vector<2x32xbf16>, vector<32x32xbf16>, vector<2x32xf32> -> vector<2x32xf32>
    %517 = arith.addf %512, %516 : vector<2x32xf32>
    %518 = arith.negf %517 : vector<2x32xf32>
    %519 = math.exp %518 : vector<2x32xf32>
    %cst_161 = arith.constant 1.000000e+00 : f32
    %520 = vector.broadcast %cst_161 : f32 to vector<2x32xf32>
    %521 = arith.addf %520, %519 : vector<2x32xf32>
    %522 = arith.divf %520, %521 : vector<2x32xf32>
    %cst_162 = arith.constant dense<0.000000e+00> : vector<2x32xf32>
    %523 = tpu.matmul %515, %9, %cst_162 {dimension_numbers = #tpu.dot_dimension_numbers<[1], [0], [0], [1], [0, 0, 1, 1], [], []>} : vector<2x32xbf16>, vector<32x32xbf16>, vector<2x32xf32> -> vector<2x32xf32>
    %524 = arith.addf %513, %523 : vector<2x32xf32>
    %525 = arith.negf %524 : vector<2x32xf32>
    %526 = math.exp %525 : vector<2x32xf32>
    %cst_163 = arith.constant 1.000000e+00 : f32
    %527 = vector.broadcast %cst_163 : f32 to vector<2x32xf32>
    %528 = arith.addf %527, %526 : vector<2x32xf32>
    %529 = arith.divf %527, %528 : vector<2x32xf32>
    %cst_164 = arith.constant dense<0.000000e+00> : vector<2x32xf32>
    %530 = tpu.matmul %515, %11, %cst_164 {dimension_numbers = #tpu.dot_dimension_numbers<[1], [0], [0], [1], [0, 0, 1, 1], [], []>} : vector<2x32xbf16>, vector<32x32xbf16>, vector<2x32xf32> -> vector<2x32xf32>
    %531 = arith.addf %530, %29 : vector<2x32xf32>
    %532 = arith.mulf %522, %531 : vector<2x32xf32>
    %533 = arith.addf %514, %532 : vector<2x32xf32>
    %534 = math.tanh %533 : vector<2x32xf32>
    %cst_165 = arith.constant 1.000000e+00 : f32
    %535 = vector.broadcast %cst_165 : f32 to vector<2x32xf32>
    %536 = arith.subf %535, %529 : vector<2x32xf32>
    %537 = arith.mulf %536, %534 : vector<2x32xf32>
    %538 = arith.mulf %529, %467 : vector<2x32xf32>
    %539 = arith.addf %537, %538 : vector<2x32xf32>
    %540 = arith.truncf %539 : vector<2x32xf32> to vector<2x32xbf16>
    %cst_166 = arith.constant dense<0.000000e+00> : vector<2x16xf32>
    %541 = tpu.matmul %540, %280, %cst_166 {dimension_numbers = #tpu.dot_dimension_numbers<[1], [1], [0], [0], [0, 0, 1, 0], [], []>} : vector<2x32xbf16>, vector<16x32xbf16>, vector<2x16xf32> -> vector<2x16xf32>
    %542 = arith.addf %541, %288 : vector<2x16xf32>
    %cst_167 = arith.constant dense<0xFF800000> : vector<2xf32>
    %543 = vector.multi_reduction <maximumf>, %542, %cst_167 [1] : vector<2x16xf32> to vector<2xf32>
    %544 = vector.shape_cast %543 : vector<2xf32> to vector<2x1xf32>
    %545 = vector.broadcast %544 : vector<2x1xf32> to vector<2x16xf32>
    %546 = arith.subf %542, %545 : vector<2x16xf32>
    %547 = math.exp %546 : vector<2x16xf32>
    %cst_168 = arith.constant dense<0.000000e+00> : vector<2xf32>
    %548 = vector.multi_reduction <add>, %547, %cst_168 [1] : vector<2x16xf32> to vector<2xf32>
    %549 = vector.shape_cast %548 : vector<2xf32> to vector<2x1xf32>
    %550 = tpu.reciprocal %549 {approx = true} : vector<2x1xf32> -> vector<2x1xf32>
    %551 = vector.broadcast %550 : vector<2x1xf32> to vector<2x16xf32>
    %552 = arith.mulf %547, %551 : vector<2x16xf32>
    %553 = arith.truncf %552 : vector<2x16xf32> to vector<2x16xbf16>
    %cst_169 = arith.constant dense<0.000000e+00> : vector<2x32xf32>
    %554 = tpu.matmul %553, %280, %cst_169 {dimension_numbers = #tpu.dot_dimension_numbers<[1], [0], [0], [1], [0, 0, 1, 1], [], []>} : vector<2x16xbf16>, vector<16x32xbf16>, vector<2x32xf32> -> vector<2x32xf32>
    %555 = arith.truncf %554 : vector<2x32xf32> to vector<2x32xbf16>
    %cst_170 = arith.constant dense<0.000000e+00> : vector<2x32xf32>
    %556 = tpu.matmul %555, %19, %cst_170 {dimension_numbers = #tpu.dot_dimension_numbers<[1], [0], [0], [1], [0, 0, 1, 1], [], []>} : vector<2x32xbf16>, vector<32x32xbf16>, vector<2x32xf32> -> vector<2x32xf32>
    %cst_171 = arith.constant dense<0.000000e+00> : vector<2x32xf32>
    %557 = tpu.matmul %540, %20, %cst_171 {dimension_numbers = #tpu.dot_dimension_numbers<[1], [0], [0], [1], [0, 0, 1, 1], [], []>} : vector<2x32xbf16>, vector<32x32xbf16>, vector<2x32xf32> -> vector<2x32xf32>
    %558 = arith.addf %556, %557 : vector<2x32xf32>
    %559 = arith.addf %558, %33 : vector<2x32xf32>
    %560 = math.tanh %559 : vector<2x32xf32>
    %561 = arith.truncf %560 : vector<2x32xf32> to vector<2x32xbf16>
    %cst_172 = arith.constant dense<0.000000e+00> : vector<2x16xf32>
    %562 = tpu.matmul %561, %21, %cst_172 {dimension_numbers = #tpu.dot_dimension_numbers<[1], [0], [0], [1], [0, 0, 1, 1], [], []>} : vector<2x32xbf16>, vector<32x16xbf16>, vector<2x16xf32> -> vector<2x16xf32>
    %563 = arith.addf %562, %38 : vector<2x16xf32>
    %cst_173 = arith.constant dense<0xFF800000> : vector<2xf32>
    %564 = vector.multi_reduction <maximumf>, %563, %cst_173 [1] : vector<2x16xf32> to vector<2xf32>
    %565 = vector.shape_cast %564 : vector<2xf32> to vector<2x1xf32>
    %566 = vector.broadcast %565 : vector<2x1xf32> to vector<2x16xf32>
    %567 = arith.subf %563, %566 : vector<2x16xf32>
    %568 = math.exp %567 : vector<2x16xf32>
    %cst_174 = arith.constant dense<0.000000e+00> : vector<2xf32>
    %569 = vector.multi_reduction <add>, %568, %cst_174 [1] : vector<2x16xf32> to vector<2xf32>
    %570 = vector.shape_cast %569 : vector<2xf32> to vector<2x1xf32>
    %571 = math.log %570 : vector<2x1xf32>
    %572 = vector.broadcast %571 : vector<2x1xf32> to vector<2x16xf32>
    %573 = arith.subf %567, %572 : vector<2x16xf32>
    %574 = vector.broadcast %565 : vector<2x1xf32> to vector<2x16xf32>
    %575 = arith.cmpf oge, %563, %574 : vector<2x16xf32>
    %576 = arith.select %575, %289, %290 : vector<2x16xi1>, vector<2x16xi32>
    %cst_175 = arith.constant dense<2147483647> : vector<2xi32>
    %577 = vector.multi_reduction <minsi>, %576, %cst_175 [1] : vector<2x16xi32> to vector<2xi32>
    %578 = vector.shape_cast %577 : vector<2xi32> to vector<2x1xi32>
    %579 = vector.broadcast %578 : vector<2x1xi32> to vector<2x16xi32>
    %580 = arith.cmpi eq, %289, %579 : vector<2x16xi32>
    %581 = arith.extui %580 : vector<2x16xi1> to vector<2x16xi32>
    %582 = arith.sitofp %581 : vector<2x16xi32> to vector<2x16xf32>
    %583 = arith.truncf %582 : vector<2x16xf32> to vector<2x16xbf16>
    %cst_176 = arith.constant dense<0.000000e+00> : vector<2x32xf32>
    %584 = tpu.matmul %583, %13, %cst_176 {dimension_numbers = #tpu.dot_dimension_numbers<[1], [0], [0], [1], [0, 0, 1, 1], [], []>} : vector<2x16xbf16>, vector<16x32xbf16>, vector<2x32xf32> -> vector<2x32xf32>
    %cst_177 = arith.constant dense<0.000000e+00> : vector<2x32xf32>
    %585 = tpu.matmul %583, %15, %cst_177 {dimension_numbers = #tpu.dot_dimension_numbers<[1], [0], [0], [1], [0, 0, 1, 1], [], []>} : vector<2x16xbf16>, vector<16x32xbf16>, vector<2x32xf32> -> vector<2x32xf32>
    %cst_178 = arith.constant dense<0.000000e+00> : vector<2x32xf32>
    %586 = tpu.matmul %583, %17, %cst_178 {dimension_numbers = #tpu.dot_dimension_numbers<[1], [0], [0], [1], [0, 0, 1, 1], [], []>} : vector<2x16xbf16>, vector<16x32xbf16>, vector<2x32xf32> -> vector<2x32xf32>
    %587 = arith.truncf %539 : vector<2x32xf32> to vector<2x32xbf16>
    %cst_179 = arith.constant dense<0.000000e+00> : vector<2x32xf32>
    %588 = tpu.matmul %587, %7, %cst_179 {dimension_numbers = #tpu.dot_dimension_numbers<[1], [0], [0], [1], [0, 0, 1, 1], [], []>} : vector<2x32xbf16>, vector<32x32xbf16>, vector<2x32xf32> -> vector<2x32xf32>
    %589 = arith.addf %584, %588 : vector<2x32xf32>
    %590 = arith.negf %589 : vector<2x32xf32>
    %591 = math.exp %590 : vector<2x32xf32>
    %cst_180 = arith.constant 1.000000e+00 : f32
    %592 = vector.broadcast %cst_180 : f32 to vector<2x32xf32>
    %593 = arith.addf %592, %591 : vector<2x32xf32>
    %594 = arith.divf %592, %593 : vector<2x32xf32>
    %cst_181 = arith.constant dense<0.000000e+00> : vector<2x32xf32>
    %595 = tpu.matmul %587, %9, %cst_181 {dimension_numbers = #tpu.dot_dimension_numbers<[1], [0], [0], [1], [0, 0, 1, 1], [], []>} : vector<2x32xbf16>, vector<32x32xbf16>, vector<2x32xf32> -> vector<2x32xf32>
    %596 = arith.addf %585, %595 : vector<2x32xf32>
    %597 = arith.negf %596 : vector<2x32xf32>
    %598 = math.exp %597 : vector<2x32xf32>
    %cst_182 = arith.constant 1.000000e+00 : f32
    %599 = vector.broadcast %cst_182 : f32 to vector<2x32xf32>
    %600 = arith.addf %599, %598 : vector<2x32xf32>
    %601 = arith.divf %599, %600 : vector<2x32xf32>
    %cst_183 = arith.constant dense<0.000000e+00> : vector<2x32xf32>
    %602 = tpu.matmul %587, %11, %cst_183 {dimension_numbers = #tpu.dot_dimension_numbers<[1], [0], [0], [1], [0, 0, 1, 1], [], []>} : vector<2x32xbf16>, vector<32x32xbf16>, vector<2x32xf32> -> vector<2x32xf32>
    %603 = arith.addf %602, %29 : vector<2x32xf32>
    %604 = arith.mulf %594, %603 : vector<2x32xf32>
    %605 = arith.addf %586, %604 : vector<2x32xf32>
    %606 = math.tanh %605 : vector<2x32xf32>
    %cst_184 = arith.constant 1.000000e+00 : f32
    %607 = vector.broadcast %cst_184 : f32 to vector<2x32xf32>
    %608 = arith.subf %607, %601 : vector<2x32xf32>
    %609 = arith.mulf %608, %606 : vector<2x32xf32>
    %610 = arith.mulf %601, %539 : vector<2x32xf32>
    %611 = arith.addf %609, %610 : vector<2x32xf32>
    %612 = arith.truncf %611 : vector<2x32xf32> to vector<2x32xbf16>
    %cst_185 = arith.constant dense<0.000000e+00> : vector<2x16xf32>
    %613 = tpu.matmul %612, %280, %cst_185 {dimension_numbers = #tpu.dot_dimension_numbers<[1], [1], [0], [0], [0, 0, 1, 0], [], []>} : vector<2x32xbf16>, vector<16x32xbf16>, vector<2x16xf32> -> vector<2x16xf32>
    %614 = arith.addf %613, %288 : vector<2x16xf32>
    %cst_186 = arith.constant dense<0xFF800000> : vector<2xf32>
    %615 = vector.multi_reduction <maximumf>, %614, %cst_186 [1] : vector<2x16xf32> to vector<2xf32>
    %616 = vector.shape_cast %615 : vector<2xf32> to vector<2x1xf32>
    %617 = vector.broadcast %616 : vector<2x1xf32> to vector<2x16xf32>
    %618 = arith.subf %614, %617 : vector<2x16xf32>
    %619 = math.exp %618 : vector<2x16xf32>
    %cst_187 = arith.constant dense<0.000000e+00> : vector<2xf32>
    %620 = vector.multi_reduction <add>, %619, %cst_187 [1] : vector<2x16xf32> to vector<2xf32>
    %621 = vector.shape_cast %620 : vector<2xf32> to vector<2x1xf32>
    %622 = tpu.reciprocal %621 {approx = true} : vector<2x1xf32> -> vector<2x1xf32>
    %623 = vector.broadcast %622 : vector<2x1xf32> to vector<2x16xf32>
    %624 = arith.mulf %619, %623 : vector<2x16xf32>
    %625 = arith.truncf %624 : vector<2x16xf32> to vector<2x16xbf16>
    %cst_188 = arith.constant dense<0.000000e+00> : vector<2x32xf32>
    %626 = tpu.matmul %625, %280, %cst_188 {dimension_numbers = #tpu.dot_dimension_numbers<[1], [0], [0], [1], [0, 0, 1, 1], [], []>} : vector<2x16xbf16>, vector<16x32xbf16>, vector<2x32xf32> -> vector<2x32xf32>
    %627 = arith.truncf %626 : vector<2x32xf32> to vector<2x32xbf16>
    %cst_189 = arith.constant dense<0.000000e+00> : vector<2x32xf32>
    %628 = tpu.matmul %627, %19, %cst_189 {dimension_numbers = #tpu.dot_dimension_numbers<[1], [0], [0], [1], [0, 0, 1, 1], [], []>} : vector<2x32xbf16>, vector<32x32xbf16>, vector<2x32xf32> -> vector<2x32xf32>
    %cst_190 = arith.constant dense<0.000000e+00> : vector<2x32xf32>
    %629 = tpu.matmul %612, %20, %cst_190 {dimension_numbers = #tpu.dot_dimension_numbers<[1], [0], [0], [1], [0, 0, 1, 1], [], []>} : vector<2x32xbf16>, vector<32x32xbf16>, vector<2x32xf32> -> vector<2x32xf32>
    %630 = arith.addf %628, %629 : vector<2x32xf32>
    %631 = arith.addf %630, %33 : vector<2x32xf32>
    %632 = math.tanh %631 : vector<2x32xf32>
    %633 = arith.truncf %632 : vector<2x32xf32> to vector<2x32xbf16>
    %cst_191 = arith.constant dense<0.000000e+00> : vector<2x16xf32>
    %634 = tpu.matmul %633, %21, %cst_191 {dimension_numbers = #tpu.dot_dimension_numbers<[1], [0], [0], [1], [0, 0, 1, 1], [], []>} : vector<2x32xbf16>, vector<32x16xbf16>, vector<2x16xf32> -> vector<2x16xf32>
    %635 = arith.addf %634, %38 : vector<2x16xf32>
    %cst_192 = arith.constant dense<0xFF800000> : vector<2xf32>
    %636 = vector.multi_reduction <maximumf>, %635, %cst_192 [1] : vector<2x16xf32> to vector<2xf32>
    %637 = vector.shape_cast %636 : vector<2xf32> to vector<2x1xf32>
    %638 = vector.broadcast %637 : vector<2x1xf32> to vector<2x16xf32>
    %639 = arith.subf %635, %638 : vector<2x16xf32>
    %640 = math.exp %639 : vector<2x16xf32>
    %cst_193 = arith.constant dense<0.000000e+00> : vector<2xf32>
    %641 = vector.multi_reduction <add>, %640, %cst_193 [1] : vector<2x16xf32> to vector<2xf32>
    %642 = vector.shape_cast %641 : vector<2xf32> to vector<2x1xf32>
    %643 = math.log %642 : vector<2x1xf32>
    %644 = vector.broadcast %643 : vector<2x1xf32> to vector<2x16xf32>
    %645 = arith.subf %639, %644 : vector<2x16xf32>
    %646 = vector.broadcast %637 : vector<2x1xf32> to vector<2x16xf32>
    %647 = arith.cmpf oge, %635, %646 : vector<2x16xf32>
    %648 = arith.select %647, %289, %290 : vector<2x16xi1>, vector<2x16xi32>
    %cst_194 = arith.constant dense<2147483647> : vector<2xi32>
    %649 = vector.multi_reduction <minsi>, %648, %cst_194 [1] : vector<2x16xi32> to vector<2xi32>
    %650 = vector.shape_cast %649 : vector<2xi32> to vector<2x1xi32>
    %651 = vector.broadcast %650 : vector<2x1xi32> to vector<2x16xi32>
    %652 = arith.cmpi eq, %289, %651 : vector<2x16xi32>
    %653 = arith.extui %652 : vector<2x16xi1> to vector<2x16xi32>
    %654 = arith.sitofp %653 : vector<2x16xi32> to vector<2x16xf32>
    %655 = arith.truncf %654 : vector<2x16xf32> to vector<2x16xbf16>
    %cst_195 = arith.constant dense<0.000000e+00> : vector<2x32xf32>
    %656 = tpu.matmul %655, %13, %cst_195 {dimension_numbers = #tpu.dot_dimension_numbers<[1], [0], [0], [1], [0, 0, 1, 1], [], []>} : vector<2x16xbf16>, vector<16x32xbf16>, vector<2x32xf32> -> vector<2x32xf32>
    %cst_196 = arith.constant dense<0.000000e+00> : vector<2x32xf32>
    %657 = tpu.matmul %655, %15, %cst_196 {dimension_numbers = #tpu.dot_dimension_numbers<[1], [0], [0], [1], [0, 0, 1, 1], [], []>} : vector<2x16xbf16>, vector<16x32xbf16>, vector<2x32xf32> -> vector<2x32xf32>
    %cst_197 = arith.constant dense<0.000000e+00> : vector<2x32xf32>
    %658 = tpu.matmul %655, %17, %cst_197 {dimension_numbers = #tpu.dot_dimension_numbers<[1], [0], [0], [1], [0, 0, 1, 1], [], []>} : vector<2x16xbf16>, vector<16x32xbf16>, vector<2x32xf32> -> vector<2x32xf32>
    %659 = arith.truncf %611 : vector<2x32xf32> to vector<2x32xbf16>
    %cst_198 = arith.constant dense<0.000000e+00> : vector<2x32xf32>
    %660 = tpu.matmul %659, %7, %cst_198 {dimension_numbers = #tpu.dot_dimension_numbers<[1], [0], [0], [1], [0, 0, 1, 1], [], []>} : vector<2x32xbf16>, vector<32x32xbf16>, vector<2x32xf32> -> vector<2x32xf32>
    %661 = arith.addf %656, %660 : vector<2x32xf32>
    %662 = arith.negf %661 : vector<2x32xf32>
    %663 = math.exp %662 : vector<2x32xf32>
    %cst_199 = arith.constant 1.000000e+00 : f32
    %664 = vector.broadcast %cst_199 : f32 to vector<2x32xf32>
    %665 = arith.addf %664, %663 : vector<2x32xf32>
    %666 = arith.divf %664, %665 : vector<2x32xf32>
    %cst_200 = arith.constant dense<0.000000e+00> : vector<2x32xf32>
    %667 = tpu.matmul %659, %9, %cst_200 {dimension_numbers = #tpu.dot_dimension_numbers<[1], [0], [0], [1], [0, 0, 1, 1], [], []>} : vector<2x32xbf16>, vector<32x32xbf16>, vector<2x32xf32> -> vector<2x32xf32>
    %668 = arith.addf %657, %667 : vector<2x32xf32>
    %669 = arith.negf %668 : vector<2x32xf32>
    %670 = math.exp %669 : vector<2x32xf32>
    %cst_201 = arith.constant 1.000000e+00 : f32
    %671 = vector.broadcast %cst_201 : f32 to vector<2x32xf32>
    %672 = arith.addf %671, %670 : vector<2x32xf32>
    %673 = arith.divf %671, %672 : vector<2x32xf32>
    %cst_202 = arith.constant dense<0.000000e+00> : vector<2x32xf32>
    %674 = tpu.matmul %659, %11, %cst_202 {dimension_numbers = #tpu.dot_dimension_numbers<[1], [0], [0], [1], [0, 0, 1, 1], [], []>} : vector<2x32xbf16>, vector<32x32xbf16>, vector<2x32xf32> -> vector<2x32xf32>
    %675 = arith.addf %674, %29 : vector<2x32xf32>
    %676 = arith.mulf %666, %675 : vector<2x32xf32>
    %677 = arith.addf %658, %676 : vector<2x32xf32>
    %678 = math.tanh %677 : vector<2x32xf32>
    %cst_203 = arith.constant 1.000000e+00 : f32
    %679 = vector.broadcast %cst_203 : f32 to vector<2x32xf32>
    %680 = arith.subf %679, %673 : vector<2x32xf32>
    %681 = arith.mulf %680, %678 : vector<2x32xf32>
    %682 = arith.mulf %673, %611 : vector<2x32xf32>
    %683 = arith.addf %681, %682 : vector<2x32xf32>
    %684 = arith.truncf %683 : vector<2x32xf32> to vector<2x32xbf16>
    %cst_204 = arith.constant dense<0.000000e+00> : vector<2x16xf32>
    %685 = tpu.matmul %684, %280, %cst_204 {dimension_numbers = #tpu.dot_dimension_numbers<[1], [1], [0], [0], [0, 0, 1, 0], [], []>} : vector<2x32xbf16>, vector<16x32xbf16>, vector<2x16xf32> -> vector<2x16xf32>
    %686 = arith.addf %685, %288 : vector<2x16xf32>
    %cst_205 = arith.constant dense<0xFF800000> : vector<2xf32>
    %687 = vector.multi_reduction <maximumf>, %686, %cst_205 [1] : vector<2x16xf32> to vector<2xf32>
    %688 = vector.shape_cast %687 : vector<2xf32> to vector<2x1xf32>
    %689 = vector.broadcast %688 : vector<2x1xf32> to vector<2x16xf32>
    %690 = arith.subf %686, %689 : vector<2x16xf32>
    %691 = math.exp %690 : vector<2x16xf32>
    %cst_206 = arith.constant dense<0.000000e+00> : vector<2xf32>
    %692 = vector.multi_reduction <add>, %691, %cst_206 [1] : vector<2x16xf32> to vector<2xf32>
    %693 = vector.shape_cast %692 : vector<2xf32> to vector<2x1xf32>
    %694 = tpu.reciprocal %693 {approx = true} : vector<2x1xf32> -> vector<2x1xf32>
    %695 = vector.broadcast %694 : vector<2x1xf32> to vector<2x16xf32>
    %696 = arith.mulf %691, %695 : vector<2x16xf32>
    %697 = arith.truncf %696 : vector<2x16xf32> to vector<2x16xbf16>
    %cst_207 = arith.constant dense<0.000000e+00> : vector<2x32xf32>
    %698 = tpu.matmul %697, %280, %cst_207 {dimension_numbers = #tpu.dot_dimension_numbers<[1], [0], [0], [1], [0, 0, 1, 1], [], []>} : vector<2x16xbf16>, vector<16x32xbf16>, vector<2x32xf32> -> vector<2x32xf32>
    %699 = arith.truncf %698 : vector<2x32xf32> to vector<2x32xbf16>
    %cst_208 = arith.constant dense<0.000000e+00> : vector<2x32xf32>
    %700 = tpu.matmul %699, %19, %cst_208 {dimension_numbers = #tpu.dot_dimension_numbers<[1], [0], [0], [1], [0, 0, 1, 1], [], []>} : vector<2x32xbf16>, vector<32x32xbf16>, vector<2x32xf32> -> vector<2x32xf32>
    %cst_209 = arith.constant dense<0.000000e+00> : vector<2x32xf32>
    %701 = tpu.matmul %684, %20, %cst_209 {dimension_numbers = #tpu.dot_dimension_numbers<[1], [0], [0], [1], [0, 0, 1, 1], [], []>} : vector<2x32xbf16>, vector<32x32xbf16>, vector<2x32xf32> -> vector<2x32xf32>
    %702 = arith.addf %700, %701 : vector<2x32xf32>
    %703 = arith.addf %702, %33 : vector<2x32xf32>
    %704 = math.tanh %703 : vector<2x32xf32>
    %705 = arith.truncf %704 : vector<2x32xf32> to vector<2x32xbf16>
    %cst_210 = arith.constant dense<0.000000e+00> : vector<2x16xf32>
    %706 = tpu.matmul %705, %21, %cst_210 {dimension_numbers = #tpu.dot_dimension_numbers<[1], [0], [0], [1], [0, 0, 1, 1], [], []>} : vector<2x32xbf16>, vector<32x16xbf16>, vector<2x16xf32> -> vector<2x16xf32>
    %707 = arith.addf %706, %38 : vector<2x16xf32>
    %cst_211 = arith.constant dense<0xFF800000> : vector<2xf32>
    %708 = vector.multi_reduction <maximumf>, %707, %cst_211 [1] : vector<2x16xf32> to vector<2xf32>
    %709 = vector.shape_cast %708 : vector<2xf32> to vector<2x1xf32>
    %710 = vector.broadcast %709 : vector<2x1xf32> to vector<2x16xf32>
    %711 = arith.subf %707, %710 : vector<2x16xf32>
    %712 = math.exp %711 : vector<2x16xf32>
    %cst_212 = arith.constant dense<0.000000e+00> : vector<2xf32>
    %713 = vector.multi_reduction <add>, %712, %cst_212 [1] : vector<2x16xf32> to vector<2xf32>
    %714 = vector.shape_cast %713 : vector<2xf32> to vector<2x1xf32>
    %715 = math.log %714 : vector<2x1xf32>
    %716 = vector.broadcast %715 : vector<2x1xf32> to vector<2x16xf32>
    %717 = arith.subf %711, %716 : vector<2x16xf32>
    %718 = vector.broadcast %709 : vector<2x1xf32> to vector<2x16xf32>
    %719 = arith.cmpf oge, %707, %718 : vector<2x16xf32>
    %720 = arith.select %719, %289, %290 : vector<2x16xi1>, vector<2x16xi32>
    %cst_213 = arith.constant dense<2147483647> : vector<2xi32>
    %721 = vector.multi_reduction <minsi>, %720, %cst_213 [1] : vector<2x16xi32> to vector<2xi32>
    %722 = vector.shape_cast %721 : vector<2xi32> to vector<2x1xi32>
    %723 = vector.broadcast %722 : vector<2x1xi32> to vector<2x16xi32>
    %724 = arith.cmpi eq, %289, %723 : vector<2x16xi32>
    %725 = arith.extui %724 : vector<2x16xi1> to vector<2x16xi32>
    %726 = arith.sitofp %725 : vector<2x16xi32> to vector<2x16xf32>
    %727 = arith.truncf %726 : vector<2x16xf32> to vector<2x16xbf16>
    %cst_214 = arith.constant dense<0.000000e+00> : vector<2x32xf32>
    %728 = tpu.matmul %727, %13, %cst_214 {dimension_numbers = #tpu.dot_dimension_numbers<[1], [0], [0], [1], [0, 0, 1, 1], [], []>} : vector<2x16xbf16>, vector<16x32xbf16>, vector<2x32xf32> -> vector<2x32xf32>
    %cst_215 = arith.constant dense<0.000000e+00> : vector<2x32xf32>
    %729 = tpu.matmul %727, %15, %cst_215 {dimension_numbers = #tpu.dot_dimension_numbers<[1], [0], [0], [1], [0, 0, 1, 1], [], []>} : vector<2x16xbf16>, vector<16x32xbf16>, vector<2x32xf32> -> vector<2x32xf32>
    %cst_216 = arith.constant dense<0.000000e+00> : vector<2x32xf32>
    %730 = tpu.matmul %727, %17, %cst_216 {dimension_numbers = #tpu.dot_dimension_numbers<[1], [0], [0], [1], [0, 0, 1, 1], [], []>} : vector<2x16xbf16>, vector<16x32xbf16>, vector<2x32xf32> -> vector<2x32xf32>
    %731 = arith.truncf %683 : vector<2x32xf32> to vector<2x32xbf16>
    %cst_217 = arith.constant dense<0.000000e+00> : vector<2x32xf32>
    %732 = tpu.matmul %731, %7, %cst_217 {dimension_numbers = #tpu.dot_dimension_numbers<[1], [0], [0], [1], [0, 0, 1, 1], [], []>} : vector<2x32xbf16>, vector<32x32xbf16>, vector<2x32xf32> -> vector<2x32xf32>
    %733 = arith.addf %728, %732 : vector<2x32xf32>
    %734 = arith.negf %733 : vector<2x32xf32>
    %735 = math.exp %734 : vector<2x32xf32>
    %cst_218 = arith.constant 1.000000e+00 : f32
    %736 = vector.broadcast %cst_218 : f32 to vector<2x32xf32>
    %737 = arith.addf %736, %735 : vector<2x32xf32>
    %738 = arith.divf %736, %737 : vector<2x32xf32>
    %cst_219 = arith.constant dense<0.000000e+00> : vector<2x32xf32>
    %739 = tpu.matmul %731, %9, %cst_219 {dimension_numbers = #tpu.dot_dimension_numbers<[1], [0], [0], [1], [0, 0, 1, 1], [], []>} : vector<2x32xbf16>, vector<32x32xbf16>, vector<2x32xf32> -> vector<2x32xf32>
    %740 = arith.addf %729, %739 : vector<2x32xf32>
    %741 = arith.negf %740 : vector<2x32xf32>
    %742 = math.exp %741 : vector<2x32xf32>
    %cst_220 = arith.constant 1.000000e+00 : f32
    %743 = vector.broadcast %cst_220 : f32 to vector<2x32xf32>
    %744 = arith.addf %743, %742 : vector<2x32xf32>
    %745 = arith.divf %743, %744 : vector<2x32xf32>
    %cst_221 = arith.constant dense<0.000000e+00> : vector<2x32xf32>
    %746 = tpu.matmul %731, %11, %cst_221 {dimension_numbers = #tpu.dot_dimension_numbers<[1], [0], [0], [1], [0, 0, 1, 1], [], []>} : vector<2x32xbf16>, vector<32x32xbf16>, vector<2x32xf32> -> vector<2x32xf32>
    %747 = arith.addf %746, %29 : vector<2x32xf32>
    %748 = arith.mulf %738, %747 : vector<2x32xf32>
    %749 = arith.addf %730, %748 : vector<2x32xf32>
    %750 = math.tanh %749 : vector<2x32xf32>
    %cst_222 = arith.constant 1.000000e+00 : f32
    %751 = vector.broadcast %cst_222 : f32 to vector<2x32xf32>
    %752 = arith.subf %751, %745 : vector<2x32xf32>
    %753 = arith.mulf %752, %750 : vector<2x32xf32>
    %754 = arith.mulf %745, %683 : vector<2x32xf32>
    %755 = arith.addf %753, %754 : vector<2x32xf32>
    %756 = arith.truncf %755 : vector<2x32xf32> to vector<2x32xbf16>
    %cst_223 = arith.constant dense<0.000000e+00> : vector<2x16xf32>
    %757 = tpu.matmul %756, %280, %cst_223 {dimension_numbers = #tpu.dot_dimension_numbers<[1], [1], [0], [0], [0, 0, 1, 0], [], []>} : vector<2x32xbf16>, vector<16x32xbf16>, vector<2x16xf32> -> vector<2x16xf32>
    %758 = arith.addf %757, %288 : vector<2x16xf32>
    %cst_224 = arith.constant dense<0xFF800000> : vector<2xf32>
    %759 = vector.multi_reduction <maximumf>, %758, %cst_224 [1] : vector<2x16xf32> to vector<2xf32>
    %760 = vector.shape_cast %759 : vector<2xf32> to vector<2x1xf32>
    %761 = vector.broadcast %760 : vector<2x1xf32> to vector<2x16xf32>
    %762 = arith.subf %758, %761 : vector<2x16xf32>
    %763 = math.exp %762 : vector<2x16xf32>
    %cst_225 = arith.constant dense<0.000000e+00> : vector<2xf32>
    %764 = vector.multi_reduction <add>, %763, %cst_225 [1] : vector<2x16xf32> to vector<2xf32>
    %765 = vector.shape_cast %764 : vector<2xf32> to vector<2x1xf32>
    %766 = tpu.reciprocal %765 {approx = true} : vector<2x1xf32> -> vector<2x1xf32>
    %767 = vector.broadcast %766 : vector<2x1xf32> to vector<2x16xf32>
    %768 = arith.mulf %763, %767 : vector<2x16xf32>
    %769 = arith.truncf %768 : vector<2x16xf32> to vector<2x16xbf16>
    %cst_226 = arith.constant dense<0.000000e+00> : vector<2x32xf32>
    %770 = tpu.matmul %769, %280, %cst_226 {dimension_numbers = #tpu.dot_dimension_numbers<[1], [0], [0], [1], [0, 0, 1, 1], [], []>} : vector<2x16xbf16>, vector<16x32xbf16>, vector<2x32xf32> -> vector<2x32xf32>
    %771 = arith.truncf %770 : vector<2x32xf32> to vector<2x32xbf16>
    %cst_227 = arith.constant dense<0.000000e+00> : vector<2x32xf32>
    %772 = tpu.matmul %771, %19, %cst_227 {dimension_numbers = #tpu.dot_dimension_numbers<[1], [0], [0], [1], [0, 0, 1, 1], [], []>} : vector<2x32xbf16>, vector<32x32xbf16>, vector<2x32xf32> -> vector<2x32xf32>
    %cst_228 = arith.constant dense<0.000000e+00> : vector<2x32xf32>
    %773 = tpu.matmul %756, %20, %cst_228 {dimension_numbers = #tpu.dot_dimension_numbers<[1], [0], [0], [1], [0, 0, 1, 1], [], []>} : vector<2x32xbf16>, vector<32x32xbf16>, vector<2x32xf32> -> vector<2x32xf32>
    %774 = arith.addf %772, %773 : vector<2x32xf32>
    %775 = arith.addf %774, %33 : vector<2x32xf32>
    %776 = math.tanh %775 : vector<2x32xf32>
    %777 = arith.truncf %776 : vector<2x32xf32> to vector<2x32xbf16>
    %cst_229 = arith.constant dense<0.000000e+00> : vector<2x16xf32>
    %778 = tpu.matmul %777, %21, %cst_229 {dimension_numbers = #tpu.dot_dimension_numbers<[1], [0], [0], [1], [0, 0, 1, 1], [], []>} : vector<2x32xbf16>, vector<32x16xbf16>, vector<2x16xf32> -> vector<2x16xf32>
    %779 = arith.addf %778, %38 : vector<2x16xf32>
    %cst_230 = arith.constant dense<0xFF800000> : vector<2xf32>
    %780 = vector.multi_reduction <maximumf>, %779, %cst_230 [1] : vector<2x16xf32> to vector<2xf32>
    %781 = vector.shape_cast %780 : vector<2xf32> to vector<2x1xf32>
    %782 = vector.broadcast %781 : vector<2x1xf32> to vector<2x16xf32>
    %783 = arith.subf %779, %782 : vector<2x16xf32>
    %784 = math.exp %783 : vector<2x16xf32>
    %cst_231 = arith.constant dense<0.000000e+00> : vector<2xf32>
    %785 = vector.multi_reduction <add>, %784, %cst_231 [1] : vector<2x16xf32> to vector<2xf32>
    %786 = vector.shape_cast %785 : vector<2xf32> to vector<2x1xf32>
    %787 = math.log %786 : vector<2x1xf32>
    %788 = vector.broadcast %787 : vector<2x1xf32> to vector<2x16xf32>
    %789 = arith.subf %783, %788 : vector<2x16xf32>
    %790 = vector.broadcast %781 : vector<2x1xf32> to vector<2x16xf32>
    %791 = arith.cmpf oge, %779, %790 : vector<2x16xf32>
    %792 = arith.select %791, %289, %290 : vector<2x16xi1>, vector<2x16xi32>
    %cst_232 = arith.constant dense<2147483647> : vector<2xi32>
    %793 = vector.multi_reduction <minsi>, %792, %cst_232 [1] : vector<2x16xi32> to vector<2xi32>
    %794 = vector.shape_cast %793 : vector<2xi32> to vector<2x1xi32>
    %795 = vector.broadcast %794 : vector<2x1xi32> to vector<2x16xi32>
    %796 = arith.cmpi eq, %289, %795 : vector<2x16xi32>
    %797 = arith.extui %796 : vector<2x16xi1> to vector<2x16xi32>
    %798 = arith.sitofp %797 : vector<2x16xi32> to vector<2x16xf32>
    %799 = arith.truncf %798 : vector<2x16xf32> to vector<2x16xbf16>
    %cst_233 = arith.constant dense<0.000000e+00> : vector<2x32xf32>
    %800 = tpu.matmul %799, %13, %cst_233 {dimension_numbers = #tpu.dot_dimension_numbers<[1], [0], [0], [1], [0, 0, 1, 1], [], []>} : vector<2x16xbf16>, vector<16x32xbf16>, vector<2x32xf32> -> vector<2x32xf32>
    %cst_234 = arith.constant dense<0.000000e+00> : vector<2x32xf32>
    %801 = tpu.matmul %799, %15, %cst_234 {dimension_numbers = #tpu.dot_dimension_numbers<[1], [0], [0], [1], [0, 0, 1, 1], [], []>} : vector<2x16xbf16>, vector<16x32xbf16>, vector<2x32xf32> -> vector<2x32xf32>
    %cst_235 = arith.constant dense<0.000000e+00> : vector<2x32xf32>
    %802 = tpu.matmul %799, %17, %cst_235 {dimension_numbers = #tpu.dot_dimension_numbers<[1], [0], [0], [1], [0, 0, 1, 1], [], []>} : vector<2x16xbf16>, vector<16x32xbf16>, vector<2x32xf32> -> vector<2x32xf32>
    %803 = arith.truncf %755 : vector<2x32xf32> to vector<2x32xbf16>
    %cst_236 = arith.constant dense<0.000000e+00> : vector<2x32xf32>
    %804 = tpu.matmul %803, %7, %cst_236 {dimension_numbers = #tpu.dot_dimension_numbers<[1], [0], [0], [1], [0, 0, 1, 1], [], []>} : vector<2x32xbf16>, vector<32x32xbf16>, vector<2x32xf32> -> vector<2x32xf32>
    %805 = arith.addf %800, %804 : vector<2x32xf32>
    %806 = arith.negf %805 : vector<2x32xf32>
    %807 = math.exp %806 : vector<2x32xf32>
    %cst_237 = arith.constant 1.000000e+00 : f32
    %808 = vector.broadcast %cst_237 : f32 to vector<2x32xf32>
    %809 = arith.addf %808, %807 : vector<2x32xf32>
    %810 = arith.divf %808, %809 : vector<2x32xf32>
    %cst_238 = arith.constant dense<0.000000e+00> : vector<2x32xf32>
    %811 = tpu.matmul %803, %9, %cst_238 {dimension_numbers = #tpu.dot_dimension_numbers<[1], [0], [0], [1], [0, 0, 1, 1], [], []>} : vector<2x32xbf16>, vector<32x32xbf16>, vector<2x32xf32> -> vector<2x32xf32>
    %812 = arith.addf %801, %811 : vector<2x32xf32>
    %813 = arith.negf %812 : vector<2x32xf32>
    %814 = math.exp %813 : vector<2x32xf32>
    %cst_239 = arith.constant 1.000000e+00 : f32
    %815 = vector.broadcast %cst_239 : f32 to vector<2x32xf32>
    %816 = arith.addf %815, %814 : vector<2x32xf32>
    %817 = arith.divf %815, %816 : vector<2x32xf32>
    %cst_240 = arith.constant dense<0.000000e+00> : vector<2x32xf32>
    %818 = tpu.matmul %803, %11, %cst_240 {dimension_numbers = #tpu.dot_dimension_numbers<[1], [0], [0], [1], [0, 0, 1, 1], [], []>} : vector<2x32xbf16>, vector<32x32xbf16>, vector<2x32xf32> -> vector<2x32xf32>
    %819 = arith.addf %818, %29 : vector<2x32xf32>
    %820 = arith.mulf %810, %819 : vector<2x32xf32>
    %821 = arith.addf %802, %820 : vector<2x32xf32>
    %822 = math.tanh %821 : vector<2x32xf32>
    %cst_241 = arith.constant 1.000000e+00 : f32
    %823 = vector.broadcast %cst_241 : f32 to vector<2x32xf32>
    %824 = arith.subf %823, %817 : vector<2x32xf32>
    %825 = arith.mulf %824, %822 : vector<2x32xf32>
    %826 = arith.mulf %817, %755 : vector<2x32xf32>
    %827 = arith.addf %825, %826 : vector<2x32xf32>
    %828 = arith.truncf %827 : vector<2x32xf32> to vector<2x32xbf16>
    %cst_242 = arith.constant dense<0.000000e+00> : vector<2x16xf32>
    %829 = tpu.matmul %828, %280, %cst_242 {dimension_numbers = #tpu.dot_dimension_numbers<[1], [1], [0], [0], [0, 0, 1, 0], [], []>} : vector<2x32xbf16>, vector<16x32xbf16>, vector<2x16xf32> -> vector<2x16xf32>
    %830 = arith.addf %829, %288 : vector<2x16xf32>
    %cst_243 = arith.constant dense<0xFF800000> : vector<2xf32>
    %831 = vector.multi_reduction <maximumf>, %830, %cst_243 [1] : vector<2x16xf32> to vector<2xf32>
    %832 = vector.shape_cast %831 : vector<2xf32> to vector<2x1xf32>
    %833 = vector.broadcast %832 : vector<2x1xf32> to vector<2x16xf32>
    %834 = arith.subf %830, %833 : vector<2x16xf32>
    %835 = math.exp %834 : vector<2x16xf32>
    %cst_244 = arith.constant dense<0.000000e+00> : vector<2xf32>
    %836 = vector.multi_reduction <add>, %835, %cst_244 [1] : vector<2x16xf32> to vector<2xf32>
    %837 = vector.shape_cast %836 : vector<2xf32> to vector<2x1xf32>
    %838 = tpu.reciprocal %837 {approx = true} : vector<2x1xf32> -> vector<2x1xf32>
    %839 = vector.broadcast %838 : vector<2x1xf32> to vector<2x16xf32>
    %840 = arith.mulf %835, %839 : vector<2x16xf32>
    %841 = arith.truncf %840 : vector<2x16xf32> to vector<2x16xbf16>
    %cst_245 = arith.constant dense<0.000000e+00> : vector<2x32xf32>
    %842 = tpu.matmul %841, %280, %cst_245 {dimension_numbers = #tpu.dot_dimension_numbers<[1], [0], [0], [1], [0, 0, 1, 1], [], []>} : vector<2x16xbf16>, vector<16x32xbf16>, vector<2x32xf32> -> vector<2x32xf32>
    %843 = arith.truncf %842 : vector<2x32xf32> to vector<2x32xbf16>
    %cst_246 = arith.constant dense<0.000000e+00> : vector<2x32xf32>
    %844 = tpu.matmul %843, %19, %cst_246 {dimension_numbers = #tpu.dot_dimension_numbers<[1], [0], [0], [1], [0, 0, 1, 1], [], []>} : vector<2x32xbf16>, vector<32x32xbf16>, vector<2x32xf32> -> vector<2x32xf32>
    %cst_247 = arith.constant dense<0.000000e+00> : vector<2x32xf32>
    %845 = tpu.matmul %828, %20, %cst_247 {dimension_numbers = #tpu.dot_dimension_numbers<[1], [0], [0], [1], [0, 0, 1, 1], [], []>} : vector<2x32xbf16>, vector<32x32xbf16>, vector<2x32xf32> -> vector<2x32xf32>
    %846 = arith.addf %844, %845 : vector<2x32xf32>
    %847 = arith.addf %846, %33 : vector<2x32xf32>
    %848 = math.tanh %847 : vector<2x32xf32>
    %849 = arith.truncf %848 : vector<2x32xf32> to vector<2x32xbf16>
    %cst_248 = arith.constant dense<0.000000e+00> : vector<2x16xf32>
    %850 = tpu.matmul %849, %21, %cst_248 {dimension_numbers = #tpu.dot_dimension_numbers<[1], [0], [0], [1], [0, 0, 1, 1], [], []>} : vector<2x32xbf16>, vector<32x16xbf16>, vector<2x16xf32> -> vector<2x16xf32>
    %851 = arith.addf %850, %38 : vector<2x16xf32>
    %cst_249 = arith.constant dense<0xFF800000> : vector<2xf32>
    %852 = vector.multi_reduction <maximumf>, %851, %cst_249 [1] : vector<2x16xf32> to vector<2xf32>
    %853 = vector.shape_cast %852 : vector<2xf32> to vector<2x1xf32>
    %854 = vector.broadcast %853 : vector<2x1xf32> to vector<2x16xf32>
    %855 = arith.subf %851, %854 : vector<2x16xf32>
    %856 = math.exp %855 : vector<2x16xf32>
    %cst_250 = arith.constant dense<0.000000e+00> : vector<2xf32>
    %857 = vector.multi_reduction <add>, %856, %cst_250 [1] : vector<2x16xf32> to vector<2xf32>
    %858 = vector.shape_cast %857 : vector<2xf32> to vector<2x1xf32>
    %859 = math.log %858 : vector<2x1xf32>
    %860 = vector.broadcast %859 : vector<2x1xf32> to vector<2x16xf32>
    %861 = arith.subf %855, %860 : vector<2x16xf32>
    %862 = tpu.concatenate %357, %429, %501, %573, %645, %717, %789, %861 in 1 : vector<2x16xf32>, vector<2x16xf32>, vector<2x16xf32>, vector<2x16xf32>, vector<2x16xf32>, vector<2x16xf32>, vector<2x16xf32>, vector<2x16xf32> -> vector<2x128xf32>
    %c0_251 = arith.constant 0 : index
    %c0_252 = arith.constant 0 : index
    %863 = vector.load %arg6[%c0_251, %c0_252] : memref<2x128xf32, #tpu.memory_space<vmem>>, vector<2x128xf32>
    tpu.vector_store %arg6[%c0_251, %c0_252], %862 {strides = array<i32>} : memref<2x128xf32, #tpu.memory_space<vmem>>, vector<2x128xf32>,
    return
  }
}

</mosaic_0001>

<bundles_post_ra>
// kernel: seq2seq_forward.1
= control target key start
LH: loop header
LB: loop body
LE: loop exit
PB: predicated region body
PF: predicated region fallthrough
CT: control target
= control target key end

     0   :  { %v7703_v0 = vmov 0   ;;  %v7704_v12 = vmov 0.0   ;;  %v106_v13 = vlaneseq  ;;  %vm122_vm0 = vcmask 130048   ;;  %s7709_s7 = smov 16   ;;  %s7710_s8 = smov 48   ;;  %s9080_s0 = inlined_call_operand.vmem [shape: s32[16,1], index: 0, kind: input, shape index: {}]   ;;  %s9081_s1 = inlined_call_operand.vmem [shape: f32[3,16,32], index: 1, kind: input, shape index: {}]   ;;  %s9082_s2 = inlined_call_operand.vmem [shape: bf16[6,32,32], index: 2, kind: input, shape index: {}]   ;;  %s9083_s5 = inlined_call_operand.vmem [shape: f32[4,1,32], index: 5, kind: input, shape index: {}]   ;;  %s9084_s3 = inlined_call_operand.vmem [shape: bf16[3,16,32], index: 3, kind: input, shape index: {}]   ;;  %s9085_s4 = inlined_call_operand.vmem [shape: bf16[96,32], index: 4, kind: input, shape index: {}]   ;;  %s9086_s6 = inlined_call_operand.vmem [shape: f32[2,128], index: 6, kind: output, shape index: {}]  }
   0x1   :  { %7416 = vset.pattern.permute.xlu0 %v7703_v0  ;;  %v104_v1 = vld [vmem:[%s9080_s0] sm:$0xff]  ;;  %v121_v3 = vld [vmem:[%s9081_s1 + $0x8] sm:$0xff]  ;;  %v6006_v4 = vld [vmem:[%s9081_s1 + $0x10] sm:$0xff]  ;;  %vm7705_vm3 = vmmov 0   ;;  %vm372_vm4 = vcmask 261120   ;;  %vm1641_vm5 = vcmask 1041408  }
   0x2   :  { %v120_v2 = vld [vmem:[%s9081_s1] sm:$0xff]  ;;  %109 = vperm.xlu0 %7416, %v104_v1   ;;  %v6007_v5 = vld [vmem:[%s9081_s1 + $0x18] sm:$0xff]  ;;  %v105_v6 = vld [vmem:[%s9080_s0 + $0x8] sm:$0xff]  ;;  %v7776_v14 = vand.u32 127, %v106_v13  ;;  %vm1643_vm6 = vcmask 1043456   ;;  %vm1645_vm7 = vcmask 1045504  }
   0x3   :  { %v7329_v7 = vpack.c.bf16 %v121_v3, %v120_v2  ;;  %v7333_v8 = vpack.c.bf16 %v6007_v5, %v6006_v4  ;;  %v6010_v9 = vld [vmem:[%s9081_s1 + $0x20] sm:$0xff]  ;;  %v6011_v10 = vld [vmem:[%s9081_s1 + $0x28] sm:$0xff]  ;;  %v7800_v21 = vld [vmem:[%s9082_s2 + $0x10] sm:$0xff]   ;;  %vm2031_vm10 = vcmask 123904   ;;  %s7711_s9 = smov 64   ;;  %s7712_s10 = smov 96  }
   0x4   :  { %v7337_v11 = vpack.c.bf16 %v6011_v10, %v6010_v9  ;;  %v7785_v18 = vld [vmem:[%s9082_s2] sm:$0xff]   ;;  %v7795_v20 = vld [vmem:[%s9082_s2 + $0x8] sm:$0xff]   ;;  %v7813_v22 = vld [vmem:[%s9082_s2 + $0x18] sm:$0xff]   ;;  %vm1656_vm8 = vcmp.eq.s32.totalorder %v7776_v14, 1  ;;  %s7713_s11 = smov 112  }
   0x5   :  { %7330 = vmatprep.subr.bf16.mxu0 %v7329_v7  ;;  %7334 = vmatprep.subr.bf16.mxu1 %v7333_v8  ;;  %v7818_v23 = vld [vmem:[%s9082_s2 + $0x20] sm:$0xff]   ;;  %v7830_v24 = vld [vmem:[%s9082_s2 + $0x28] sm:$0xff]  }
   0x6   :  { %112 = vperm.xlu0 %7416, %v105_v6   ;;  %7332 = vmatpush3.bf16.msra.mxu0 %v7329_v7  ;;  %v7869_v50 = vld [vmem:[%s9083_s5] ss:$0 sm:$0xff] }
   0x7   :  { %7336 = vmatpush3.bf16.msra.mxu1 %v7333_v8  ;;  %7338 = vmatprep.subr.bf16.mxu0 %v7337_v11 }
   0x8   :  { %6513 = vmatprep.subr.bf16.mxu1 %v7704_v12 }
  0x81   :  { %v110_v15 = vpop.permute.xlu0 %109 }
  0x82   :  { %vm114_vm1 = vcmp.eq.s32.totalorder %v7776_v14, %v110_v15 }
  0x83   :  { %v6002_v16 = vsel %vm114_vm1, 1.0, %v7704_v12 }
  0x84   :  { %6496 = vmatprep.mubr.msk.f32.mxu0 %vm122_vm0, %v6002_v16  ;;  %6503 = vmatprep.mubr.msk.f32.mxu1 %vm122_vm0, %v6002_v16 }
  0x85   :  { %v113_v17 = vpop.permute.xlu0 %112 }
  0x86   :  { %vm115_vm2 = vcmp.eq.s32.totalorder %v7776_v14, %v113_v17 }
  0x87   :  { %v6003_v19 = vsel %vm115_vm2, 1.0, %v7704_v12 }
  0x88   :  { %6497 = vmatmul.mubr.msk.f32.vlgmr.msra.gmra.mrb[0].mxu0 %vm122_vm0, %v6003_v19  ;;  %6504 = vmatmul.mubr.msk.f32.vlgmr.msra.gmra.mrb[0].mxu1 %vm122_vm0, %v6003_v19 }
  0x89   :  { %7340 = vmatpush3.bf16.msra.mxu0 %v7337_v11  ;;  %6514 = vmatpush3.bf16.msra.mxu1 %v7785_v18 }
  0x8a   :  { %6510 = vmatprep.mubr.msk.f32.mxu0 %vm122_vm0, %v6002_v16  ;;  %6515 = vmatprep.subr.bf16.mxu1 %v7704_v12 }
  0x8b   :  { %6521 = vmatprep.subr.bf16.mxu0 %v7704_v12  ;;  %6517 = vmatprep.mubr.msk.bf16.mxu1 %vm7705_vm3, %v7704_v12 }
  0x8c   :  { %6511 = vmatmul.mubr.msk.f32.vlgmr.msra.gmra.mrb[2].mxu0 %vm122_vm0, %v6003_v19 }
  0x8d   :  { %6516 = vmatpush3.bf16.msra.mxu1 %v7795_v20  ;;  %6522 = vmatpush3.bf16.msra.mxu0 %v7800_v21 }
  0x8e   :  { %6523 = vmatprep.subr.bf16.mxu0 %v7704_v12  ;;  %6525 = vmatprep.mubr.msk.bf16.mxu0 %vm7705_vm3, %v7704_v12 }
  0x8f   :  { %6529 = vmatprep.subr.bf16.mxu1 %v7704_v12 }
  0x90   :  { %6518 = vmatmul.mubr.bf16.vlgmr.msra.gmra.mrb[4].mxu1 %v7703_v0 }
  0x91   :  { %6524 = vmatpush3.bf16.msra.mxu0 %v7813_v22  ;;  %6530 = vmatpush3.bf16.msra.mxu1 %v7818_v23 }
  0x92   :  { %6531 = vmatprep.subr.bf16.mxu1 %v7704_v12  ;;  %6533 = vmatprep.mubr.msk.bf16.mxu1 %vm7705_vm3, %v7704_v12 }
  0x93   :  { %6537 = vmatprep.subr.bf16.mxu0 %v7704_v12 }
  0x94   :  { %6526 = vmatmul.mubr.bf16.vlgmr.msra.gmra.mrb[4].mxu0 %v7703_v0 }
  0x95   :  { %6532 = vmatpush3.bf16.msra.mxu1 %v7830_v24  ;;  %6538 = vmatpush3.bf16.msra.mxu0 %v7785_v18 }
  0x96   :  { %6545 = vmatprep.subr.bf16.mxu1 %v7704_v12  ;;  %6539 = vmatprep.subr.bf16.mxu0 %v7704_v12 }
  0x97   :  { %6541 = vmatprep.mubr.msk.bf16.mxu0 %vm7705_vm3, %v7704_v12 }
  0x98   :  { %6534 = vmatmul.mubr.bf16.vlgmr.msra.gmra.mrb[8].mxu1 %v7703_v0 }
  0x99   :  { %6546 = vmatpush3.bf16.msra.mxu1 %v7800_v21  ;;  %6540 = vmatpush3.bf16.msra.mxu0 %v7795_v20 }
  0x9a   :  { %6547 = vmatprep.subr.bf16.mxu1 %v7704_v12  ;;  %6549 = vmatprep.mubr.msk.bf16.mxu1 %vm7705_vm3, %v7704_v12 }
  0x9b   :  { %6553 = vmatprep.subr.bf16.mxu0 %v7704_v12 }
  0x9d   :  { %6548 = vmatpush3.bf16.msra.mxu1 %v7813_v22 }
  0x9e   :  { %6561 = vmatprep.subr.bf16.mxu1 %v7704_v12 }
 0x15b   :  { %v7852_v25 = vpop.f32.mrb[0].mxu0  ;;  %v7854_v26 = vpop.f32.mrb[0].mxu1 }
 0x15c   :  { %v7856_v27 = vpop.f32.mrb[1].mxu0  ;;  %v7858_v28 = vpop.f32.mrb[1].mxu1 }
 0x15f   :  { %v7860_v29 = vpop.f32.mrb[2].mxu0 }
 0x160   :  { %v7862_v30 = vpop.f32.mrb[3].mxu0 }
 0x163   :  { %v410_v31 = vpop.f32.mrb[4].mxu1 }
 0x164   :  { %v416_v32 = vadd.f32 %v410_v31, %v7856_v27  ;;  %v6519_v33 = vpop.f32.mrb[5].mxu1 }
 0x165   :  { %v413_v34 = vpop.f32.mrb[6].mxu1 }
 0x166   :  { %v6016_v35 = vmul.f32 -1.442695, %v416_v32  ;;  %v6520_v36 = vpop.f32.mrb[7].mxu1 }
 0x167   :  { %v469_v37 = vpop.f32.mrb[4].mxu0 }
 0x168   :  { %7438 = vpow2.f32 %v6016_v35  ;;  %v475_v38 = vadd.f32 %v469_v37, %v7858_v28  ;;  %v6527_v39 = vpop.f32.mrb[5].mxu0 }
 0x169   :  { %v472_v40 = vpop.f32.mrb[6].mxu0 }
 0x16a   :  { %v6528_v41 = vpop.f32.mrb[7].mxu0  ;;  %v6019_v42 = vmul.f32 -1.442695, %v475_v38 }
 0x16b   :  { %v528_v43 = vpop.f32.mrb[8].mxu1 }
 0x16c   :  { %v6535_v44 = vpop.f32.mrb[9].mxu1  ;;  %7440 = vpow2.f32 %v6019_v42  ;;  %v529_v52 = vadd.f32 %v7869_v50, %v528_v43 }
 0x16d   :  { %v531_v45 = vpop.f32.mrb[10].mxu1 }
 0x16e   :  { %v6536_v46 = vpop.f32.mrb[11].mxu1 }
 0x172   :  { %v7439_v47 = vpop.eup %7438 }
 0x173   :  { %v420_v48 = vadd.f32 1.0, %v7439_v47 }
 0x175   :  { %7442 = vrcp.f32 %v420_v48 }
 0x176   :  { %v7441_v49 = vpop.eup %7440 }
 0x177   :  { %v479_v51 = vadd.f32 1.0, %v7441_v49 }
 0x179   :  { %7444 = vrcp.f32 %v479_v51 }
 0x17f   :  { %v7443_v53 = vpop.eup %7442 }
 0x180   :  { %v534_v54 = vmul.f32 %v7443_v53, %v529_v52 }
 0x182   :  { %v535_v55 = vadd.f32 %v534_v54, %v7862_v30 }
 0x183   :  { %v7445_v56 = vpop.eup %7444 }
 0x184   :  { %7446 = vtanh.f32 %v535_v55  ;;  %v537_v57 = vsub.f32 1.0, %v7445_v56  ;;  %v539_v59 = vmul.f32 0.0, %v7445_v56 }
 0x18e   :  { %v7447_v58 = vpop.eup %7446 }
 0x18f   :  { %v538_v60 = vmul.f32 %v7447_v58, %v537_v57 }
 0x191   :  { %v7873_v61 = vadd.f32 %v539_v59, %v538_v60 }
 0x193   :  { %v541_v62 = vpack.c.bf16 %v7873_v61, %v7873_v61  ;;  %v694_v43 = vrot.slane %v7873_v61, 6 }
 0x195   :  { %6542 = vmatmul.mubr.msk.bf16.vlgmr.msra.gmra.mrb[8].mxu0 %vm372_vm4, %v541_v62  ;;  %6550 = vmatmul.mubr.msk.bf16.vlgmr.msra.gmra.mrb[12].mxu1 %vm372_vm4, %v541_v62 }
 0x196   :  { %6554 = vmatpush3.bf16.msra.mxu0 %v7818_v23  ;;  %6557 = vmatprep.mubr.msk.bf16.mxu0 %vm7705_vm3, %v7704_v12 }
 0x197   :  { %6555 = vmatprep.subr.bf16.mxu0 %v7704_v12  ;;  %6562 = vmatpush3.bf16.msra.mxu1 %v7785_v18 }
 0x198   :  { %6563 = vmatprep.subr.bf16.mxu1 %v7704_v12  ;;  %6565 = vmatprep.mubr.msk.bf16.mxu1 %vm7705_vm3, %v7704_v12 }
 0x19a   :  { %6556 = vmatpush3.bf16.msra.mxu0 %v7830_v24 }
 0x19b   :  { %6569 = vmatprep.subr.bf16.mxu0 %v7704_v12  ;;  %6564 = vmatpush3.bf16.msra.mxu1 %v7795_v20 }
 0x19c   :  { %6577 = vmatprep.subr.bf16.mxu1 %v7704_v12 }
 0x19d   :  { %6558 = vmatmul.mubr.msk.bf16.vlgmr.msra.gmra.mrb[12].mxu0 %vm372_vm4, %v541_v62 }
 0x19e   :  { %6570 = vmatpush3.bf16.msra.mxu0 %v7800_v21  ;;  %6573 = vmatprep.mubr.msk.bf16.mxu0 %vm7705_vm3, %v7704_v12 }
 0x19f   :  { %6571 = vmatprep.subr.bf16.mxu0 %v7704_v12 }
 0x1a2   :  { %6572 = vmatpush3.bf16.msra.mxu0 %v7813_v22 }
 0x1a3   :  { %6585 = vmatprep.subr.bf16.mxu0 %v7704_v12 }
 0x268   :  { %v579_v63 = vpop.f32.mrb[8].mxu0  ;;  %v629_v0 = vpop.f32.mrb[12].mxu1 }
 0x269   :  { %v586_v1 = vrot.slane %v579_v63, 6  ;;  %v636_v2 = vrot.slane %v629_v0, 6  ;;  %v6543_v3 = vpop.f32.mrb[9].mxu0  ;;  %v6551_v4 = vpop.f32.mrb[13].mxu1 }
 0x26a   :  { %v582_v5 = vpop.f32.mrb[10].mxu0  ;;  %v632_v6 = vpop.f32.mrb[14].mxu1 }
 0x26b   :  { %v588_v7 = vadd.f32 %v586_v1, %v7856_v27  ;;  %v638_v8 = vadd.f32 %v636_v2, %v7858_v28  ;;  %v6544_v9 = vpop.f32.mrb[11].mxu0  ;;  %v6552_v10 = vpop.f32.mrb[15].mxu1 }
 0x26d   :  { %v6023_v11 = vmul.f32 -1.442695, %v588_v7  ;;  %v6025_v17 = vmul.f32 -1.442695, %v638_v8 }
 0x26f   :  { %7448 = vpow2.f32 %v6023_v11 }
 0x270   :  { %v679_v15 = vpop.f32.mrb[12].mxu0  ;;  %7450 = vpow2.f32 %v6025_v17 }
 0x271   :  { %v6559_v16 = vpop.f32.mrb[13].mxu0  ;;  %v680_v35 = vadd.f32 %v7869_v50, %v679_v15 }
 0x272   :  { %v682_v19 = vpop.f32.mrb[14].mxu0 }
 0x273   :  { %v6560_v31 = vpop.f32.mrb[15].mxu0  ;;  %v686_v37 = vrot.slane %v680_v35, 6 }
 0x279   :  { %v7449_v32 = vpop.eup %7448 }
 0x27a   :  { %v592_v33 = vadd.f32 1.0, %v7449_v32  ;;  %v7451_v34 = vpop.eup %7450 }
 0x27b   :  { %v642_v36 = vadd.f32 1.0, %v7451_v34 }
 0x27c   :  { %7452 = vrcp.f32 %v592_v33 }
 0x27d   :  { %7454 = vrcp.f32 %v642_v36 }
 0x286   :  { %v7453_v38 = vpop.eup %7452 }
 0x287   :  { %v688_v39 = vmul.f32 %v7453_v38, %v686_v37  ;;  %v7455_v41 = vpop.eup %7454 }
 0x288   :  { %v691_v42 = vsub.f32 1.0, %v7455_v41  ;;  %v696_v45 = vmul.f32 %v7455_v41, %v694_v43 }
 0x289   :  { %v689_v40 = vadd.f32 %v688_v39, %v7862_v30 }
 0x28b   :  { %7456 = vtanh.f32 %v689_v40 }
 0x295   :  { %v7457_v44 = vpop.eup %7456 }
 0x296   :  { %v692_v46 = vmul.f32 %v7457_v44, %v691_v42 }
 0x298   :  { %v7903_v47 = vadd.f32 %v696_v45, %v692_v46 }
 0x29a   :  { %v698_v48 = vpack.c.bf16 %v7903_v47, %v7903_v47  ;;  %v853_v16 = vrot.slane %v7903_v47, 6  ;;  %v1642_v37 = vsel %vm1641_vm5, %v7873_v61, %v7903_v47 }
 0x29c   :  { %v700_v49 = vrot.slane %v698_v48, 1 }
 0x29e   :  { %6566 = vmatmul.mubr.msk.bf16.vlgmr.msra.gmra.mrb[16].mxu1 %vm372_vm4, %v700_v49  ;;  %6574 = vmatmul.mubr.msk.bf16.vlgmr.msra.gmra.mrb[16].mxu0 %vm372_vm4, %v700_v49 }
 0x29f   :  { %6578 = vmatpush3.bf16.msra.mxu1 %v7818_v23  ;;  %6581 = vmatprep.mubr.msk.bf16.mxu1 %vm7705_vm3, %v7704_v12 }
 0x2a0   :  { %6579 = vmatprep.subr.bf16.mxu1 %v7704_v12  ;;  %6586 = vmatpush3.bf16.msra.mxu0 %v7785_v18 }
 0x2a1   :  { %6587 = vmatprep.subr.bf16.mxu0 %v7704_v12  ;;  %6589 = vmatprep.mubr.msk.bf16.mxu0 %vm7705_vm3, %v7704_v12 }
 0x2a3   :  { %6580 = vmatpush3.bf16.msra.mxu1 %v7830_v24 }
 0x2a4   :  { %6593 = vmatprep.subr.bf16.mxu1 %v7704_v12  ;;  %6588 = vmatpush3.bf16.msra.mxu0 %v7795_v20 }
 0x2a5   :  { %6601 = vmatprep.subr.bf16.mxu0 %v7704_v12 }
 0x2a6   :  { %6582 = vmatmul.mubr.msk.bf16.vlgmr.msra.gmra.mrb[20].mxu1 %vm372_vm4, %v700_v49 }
 0x2a7   :  { %6594 = vmatpush3.bf16.msra.mxu1 %v7800_v21  ;;  %6597 = vmatprep.mubr.msk.bf16.mxu1 %vm7705_vm3, %v7704_v12 }
 0x2a8   :  { %6595 = vmatprep.subr.bf16.mxu1 %v7704_v12 }
 0x2ab   :  { %6596 = vmatpush3.bf16.msra.mxu1 %v7813_v22 }
 0x2ac   :  { %6609 = vmatprep.subr.bf16.mxu1 %v7704_v12 }
 0x371   :  { %v738_v51 = vpop.f32.mrb[16].mxu1  ;;  %v788_v52 = vpop.f32.mrb[16].mxu0 }
 0x372   :  { %v745_v53 = vrot.slane %v738_v51, 4  ;;  %v795_v54 = vrot.slane %v788_v52, 4  ;;  %v6567_v55 = vpop.f32.mrb[17].mxu1  ;;  %v6575_v56 = vpop.f32.mrb[17].mxu0 }
 0x373   :  { %v741_v57 = vpop.f32.mrb[18].mxu1  ;;  %v791_v58 = vpop.f32.mrb[18].mxu0 }
 0x374   :  { %v747_v59 = vadd.f32 %v745_v53, %v7856_v27  ;;  %v797_v60 = vadd.f32 %v795_v54, %v7858_v28  ;;  %v6568_v62 = vpop.f32.mrb[19].mxu1  ;;  %v6576_v63 = vpop.f32.mrb[19].mxu0 }
 0x376   :  { %v6028_v0 = vmul.f32 -1.442695, %v747_v59  ;;  %v6030_v1 = vmul.f32 -1.442695, %v797_v60 }
 0x378   :  { %7458 = vpow2.f32 %v6028_v0 }
 0x379   :  { %7460 = vpow2.f32 %v6030_v1  ;;  %v838_v2 = vpop.f32.mrb[20].mxu1 }
 0x37a   :  { %v6583_v3 = vpop.f32.mrb[21].mxu1  ;;  %v839_v10 = vadd.f32 %v7869_v50, %v838_v2 }
 0x37b   :  { %v841_v4 = vpop.f32.mrb[22].mxu1 }
 0x37c   :  { %v6584_v5 = vpop.f32.mrb[23].mxu1  ;;  %v845_v11 = vrot.slane %v839_v10, 4 }
 0x382   :  { %v7459_v6 = vpop.eup %7458 }
 0x383   :  { %v7461_v7 = vpop.eup %7460  ;;  %v751_v8 = vadd.f32 1.0, %v7459_v6 }
 0x384   :  { %v801_v9 = vadd.f32 1.0, %v7461_v7 }
 0x385   :  { %7462 = vrcp.f32 %v751_v8 }
 0x386   :  { %7464 = vrcp.f32 %v801_v9 }
 0x38f   :  { %v7463_v15 = vpop.eup %7462 }
 0x390   :  { %v7465_v17 = vpop.eup %7464  ;;  %v847_v19 = vmul.f32 %v7463_v15, %v845_v11 }
 0x391   :  { %v855_v31 = vmul.f32 %v7465_v17, %v853_v16  ;;  %v850_v33 = vsub.f32 1.0, %v7465_v17 }
 0x392   :  { %v848_v32 = vadd.f32 %v847_v19, %v7862_v30 }
 0x394   :  { %7466 = vtanh.f32 %v848_v32 }
 0x39e   :  { %v7467_v34 = vpop.eup %7466 }
 0x39f   :  { %v851_v35 = vmul.f32 %v7467_v34, %v850_v33 }
 0x3a1   :  { %v856_v36 = vadd.f32 %v855_v31, %v851_v35 }
 0x3a3   :  { %v857_v38 = vpack.c.bf16 %v856_v36, %v856_v36  ;;  %v1644_v39 = vsel %vm1643_vm6, %v1642_v37, %v856_v36  ;;  %v1012_v1 = vrot.slane %v856_v36, 6 }
 0x3a5   :  { %v859_v40 = vrot.slane %v857_v38, 2 }
 0x3a7   :  { %6590 = vmatmul.mubr.msk.bf16.vlgmr.msra.gmra.mrb[20].mxu0 %vm372_vm4, %v859_v40  ;;  %6598 = vmatmul.mubr.msk.bf16.vlgmr.msra.gmra.mrb[24].mxu1 %vm372_vm4, %v859_v40 }
 0x3a8   :  { %6602 = vmatpush3.bf16.msra.mxu0 %v7818_v23  ;;  %6605 = vmatprep.mubr.msk.bf16.mxu0 %vm7705_vm3, %v7704_v12 }
 0x3a9   :  { %6603 = vmatprep.subr.bf16.mxu0 %v7704_v12  ;;  %6610 = vmatpush3.bf16.msra.mxu1 %v7785_v18 }
 0x3aa   :  { %6611 = vmatprep.subr.bf16.mxu1 %v7704_v12  ;;  %6613 = vmatprep.mubr.msk.bf16.mxu1 %vm7705_vm3, %v7704_v12 }
 0x3ac   :  { %6604 = vmatpush3.bf16.msra.mxu0 %v7830_v24 }
 0x3ad   :  { %6617 = vmatprep.subr.bf16.mxu0 %v7704_v12  ;;  %6612 = vmatpush3.bf16.msra.mxu1 %v7795_v20 }
 0x3ae   :  { %6625 = vmatprep.subr.bf16.mxu1 %v7704_v12 }
 0x3af   :  { %6606 = vmatmul.mubr.msk.bf16.vlgmr.msra.gmra.mrb[24].mxu0 %vm372_vm4, %v859_v40 }
 0x3b0   :  { %6618 = vmatpush3.bf16.msra.mxu0 %v7800_v21  ;;  %6621 = vmatprep.mubr.msk.bf16.mxu0 %vm7705_vm3, %v7704_v12 }
 0x3b1   :  { %6619 = vmatprep.subr.bf16.mxu0 %v7704_v12 }
 0x3b4   :  { %6620 = vmatpush3.bf16.msra.mxu0 %v7813_v22 }
 0x3b5   :  { %6633 = vmatprep.subr.bf16.mxu0 %v7704_v12 }
 0x47a   :  { %v897_v61 = vpop.f32.mrb[20].mxu0  ;;  %v947_v41 = vpop.f32.mrb[24].mxu1 }
 0x47b   :  { %v904_v42 = vrot.slane %v897_v61, 2  ;;  %v954_v43 = vrot.slane %v947_v41, 2  ;;  %v6591_v44 = vpop.f32.mrb[21].mxu0  ;;  %v6599_v45 = vpop.f32.mrb[25].mxu1 }
 0x47c   :  { %v900_v46 = vpop.f32.mrb[22].mxu0  ;;  %v950_v47 = vpop.f32.mrb[26].mxu1 }
 0x47d   :  { %v906_v48 = vadd.f32 %v904_v42, %v7856_v27  ;;  %v956_v49 = vadd.f32 %v954_v43, %v7858_v28  ;;  %v6592_v51 = vpop.f32.mrb[23].mxu0  ;;  %v6600_v52 = vpop.f32.mrb[27].mxu1 }
 0x47f   :  { %v6033_v53 = vmul.f32 -1.442695, %v906_v48  ;;  %v6035_v54 = vmul.f32 -1.442695, %v956_v49 }
 0x481   :  { %7468 = vpow2.f32 %v6033_v53 }
 0x482   :  { %7470 = vpow2.f32 %v6035_v54  ;;  %v997_v55 = vpop.f32.mrb[24].mxu0 }
 0x483   :  { %v6607_v56 = vpop.f32.mrb[25].mxu0  ;;  %v998_v27 = vadd.f32 %v7869_v50, %v997_v55 }
 0x484   :  { %v1000_v57 = vpop.f32.mrb[26].mxu0 }
 0x485   :  { %v6608_v58 = vpop.f32.mrb[27].mxu0  ;;  %v1004_v0 = vrot.slane %v998_v27, 2 }
 0x48b   :  { %v7469_v59 = vpop.eup %7468 }
 0x48c   :  { %v7471_v60 = vpop.eup %7470  ;;  %v910_v62 = vadd.f32 1.0, %v7469_v59 }
 0x48d   :  { %v960_v63 = vadd.f32 1.0, %v7471_v60 }
 0x48e   :  { %7472 = vrcp.f32 %v910_v62 }
 0x48f   :  { %7474 = vrcp.f32 %v960_v63 }
 0x498   :  { %v7473_v28 = vpop.eup %7472 }
 0x499   :  { %v7475_v2 = vpop.eup %7474  ;;  %v1006_v3 = vmul.f32 %v7473_v28, %v1004_v0 }
 0x49a   :  { %v1014_v4 = vmul.f32 %v7475_v2, %v1012_v1  ;;  %v1009_v6 = vsub.f32 1.0, %v7475_v2 }
 0x49b   :  { %v1007_v5 = vadd.f32 %v1006_v3, %v7862_v30 }
 0x49d   :  { %7476 = vtanh.f32 %v1007_v5 }
 0x4a7   :  { %v7477_v7 = vpop.eup %7476 }
 0x4a8   :  { %v1010_v8 = vmul.f32 %v7477_v7, %v1009_v6 }
 0x4aa   :  { %v1015_v9 = vadd.f32 %v1014_v4, %v1010_v8 }
 0x4ac   :  { %v1016_v10 = vpack.c.bf16 %v1015_v9, %v1015_v9  ;;  %v7963_v11 = vsel %vm1645_vm7, %v1644_v39, %v1015_v9  ;;  %v1162_v48 = vrot.slane %v1015_v9, 6 }
 0x4ae   :  { %v1018_v15 = vrot.slane %v1016_v10, 3 }
 0x4b0   :  { %6614 = vmatmul.mubr.msk.bf16.vlgmr.msra.gmra.mrb[28].mxu1 %vm372_vm4, %v1018_v15  ;;  %6622 = vmatmul.mubr.msk.bf16.vlgmr.msra.gmra.mrb[28].mxu0 %vm372_vm4, %v1018_v15 }
 0x4b1   :  { %6626 = vmatpush3.bf16.msra.mxu1 %v7818_v23  ;;  %6629 = vmatprep.mubr.msk.bf16.mxu1 %vm7705_vm3, %v7704_v12 }
 0x4b2   :  { %6627 = vmatprep.subr.bf16.mxu1 %v7704_v12  ;;  %6634 = vmatpush3.bf16.msra.mxu0 %v7785_v18 }
 0x4b3   :  { %6635 = vmatprep.subr.bf16.mxu0 %v7704_v12  ;;  %6637 = vmatprep.mubr.msk.bf16.mxu0 %vm7705_vm3, %v7704_v12 }
 0x4b5   :  { %6628 = vmatpush3.bf16.msra.mxu1 %v7830_v24 }
 0x4b6   :  { %6641 = vmatprep.subr.bf16.mxu1 %v7704_v12  ;;  %6636 = vmatpush3.bf16.msra.mxu0 %v7795_v20 }
 0x4b7   :  { %6649 = vmatprep.subr.bf16.mxu0 %v7704_v12 }
 0x4b8   :  { %6630 = vmatmul.mubr.msk.bf16.vlgmr.msra.gmra.mrb[32].mxu1 %vm372_vm4, %v1018_v15 }
 0x4b9   :  { %6642 = vmatpush3.bf16.msra.mxu1 %v7800_v21  ;;  %6645 = vmatprep.mubr.msk.bf16.mxu1 %vm7705_vm3, %v7704_v12 }
 0x4ba   :  { %6643 = vmatprep.subr.bf16.mxu1 %v7704_v12 }
 0x4bd   :  { %6644 = vmatpush3.bf16.msra.mxu1 %v7813_v22 }
 0x4be   :  { %6657 = vmatprep.subr.bf16.mxu1 %v7704_v12 }
 0x583   :  { %v1056_v30 = vpop.f32.mrb[28].mxu1  ;;  %v1103_v16 = vpop.f32.mrb[28].mxu0 }
 0x584   :  { %v1062_v17 = vadd.f32 %v7852_v25, %v1056_v30  ;;  %v1109_v19 = vadd.f32 %v7854_v26, %v1103_v16  ;;  %v6615_v31 = vpop.f32.mrb[29].mxu1  ;;  %v6623_v32 = vpop.f32.mrb[29].mxu0 }
 0x585   :  { %v1059_v33 = vpop.f32.mrb[30].mxu1  ;;  %v1106_v34 = vpop.f32.mrb[30].mxu0 }
 0x586   :  { %v6038_v35 = vmul.f32 -1.442695, %v1062_v17  ;;  %v6040_v36 = vmul.f32 -1.442695, %v1109_v19  ;;  %v6616_v37 = vpop.f32.mrb[31].mxu1  ;;  %v6624_v38 = vpop.f32.mrb[31].mxu0 }
 0x588   :  { %7478 = vpow2.f32 %v6038_v35 }
 0x589   :  { %7480 = vpow2.f32 %v6040_v36 }
 0x58b   :  { %v1150_v39 = vpop.f32.mrb[32].mxu1 }
 0x58c   :  { %v6631_v40 = vpop.f32.mrb[33].mxu1  ;;  %v1151_v46 = vadd.f32 %v7869_v50, %v1150_v39 }
 0x58d   :  { %v1153_v61 = vpop.f32.mrb[34].mxu1 }
 0x58e   :  { %v6632_v41 = vpop.f32.mrb[35].mxu1 }
 0x592   :  { %v7479_v42 = vpop.eup %7478 }
 0x593   :  { %v7481_v43 = vpop.eup %7480  ;;  %v1066_v44 = vadd.f32 1.0, %v7479_v42 }
 0x594   :  { %v1113_v45 = vadd.f32 1.0, %v7481_v43 }
 0x595   :  { %7482 = vrcp.f32 %v1066_v44 }
 0x596   :  { %7484 = vrcp.f32 %v1113_v45 }
 0x59f   :  { %v7483_v47 = vpop.eup %7482 }
 0x5a0   :  { %v7485_v49 = vpop.eup %7484  ;;  %v1156_v51 = vmul.f32 %v7483_v47, %v1151_v46 }
 0x5a1   :  { %v1164_v52 = vmul.f32 %v7485_v49, %v1162_v48  ;;  %v1159_v54 = vsub.f32 1.0, %v7485_v49 }
 0x5a2   :  { %v1157_v53 = vadd.f32 %v7860_v29, %v1156_v51 }
 0x5a4   :  { %7486 = vtanh.f32 %v1157_v53 }
 0x5ae   :  { %v7487_v55 = vpop.eup %7486 }
 0x5af   :  { %v1160_v56 = vmul.f32 %v7487_v55, %v1159_v54 }
 0x5b1   :  { %v7990_v57 = vadd.f32 %v1164_v52, %v1160_v56 }
 0x5b3   :  { %v1166_v58 = vpack.c.bf16 %v7990_v57, %v7990_v57  ;;  %v1319_v38 = vrot.slane %v7990_v57, 6 }
 0x5b5   :  { %6638 = vmatmul.mubr.msk.bf16.vlgmr.msra.gmra.mrb[32].mxu0 %vm372_vm4, %v1166_v58  ;;  %6646 = vmatmul.mubr.msk.bf16.vlgmr.msra.gmra.mrb[36].mxu1 %vm372_vm4, %v1166_v58 }
 0x5b6   :  { %6650 = vmatpush3.bf16.msra.mxu0 %v7818_v23  ;;  %6653 = vmatprep.mubr.msk.bf16.mxu0 %vm7705_vm3, %v7704_v12 }
 0x5b7   :  { %6651 = vmatprep.subr.bf16.mxu0 %v7704_v12  ;;  %6658 = vmatpush3.bf16.msra.mxu1 %v7785_v18 }
 0x5b8   :  { %6659 = vmatprep.subr.bf16.mxu1 %v7704_v12  ;;  %6661 = vmatprep.mubr.msk.bf16.mxu1 %vm7705_vm3, %v7704_v12 }
 0x5ba   :  { %6652 = vmatpush3.bf16.msra.mxu0 %v7830_v24 }
 0x5bb   :  { %6665 = vmatprep.subr.bf16.mxu0 %v7704_v12  ;;  %6660 = vmatpush3.bf16.msra.mxu1 %v7795_v20 }
 0x5bc   :  { %6673 = vmatprep.subr.bf16.mxu1 %v7704_v12 }
 0x5bd   :  { %6654 = vmatmul.mubr.msk.bf16.vlgmr.msra.gmra.mrb[36].mxu0 %vm372_vm4, %v1166_v58 }
 0x5be   :  { %6666 = vmatpush3.bf16.msra.mxu0 %v7800_v21  ;;  %6669 = vmatprep.mubr.msk.bf16.mxu0 %vm7705_vm3, %v7704_v12 }
 0x5bf   :  { %6667 = vmatprep.subr.bf16.mxu0 %v7704_v12 }
 0x5c2   :  { %6668 = vmatpush3.bf16.msra.mxu0 %v7813_v22 }
 0x5c3   :  { %6681 = vmatprep.subr.bf16.mxu0 %v7704_v12 }
 0x688   :  { %v1204_v59 = vpop.f32.mrb[32].mxu0  ;;  %v1254_v60 = vpop.f32.mrb[36].mxu1 }
 0x689   :  { %v1211_v62 = vrot.slane %v1204_v59, 6  ;;  %v1261_v63 = vrot.slane %v1254_v60, 6  ;;  %v6639_v27 = vpop.f32.mrb[33].mxu0  ;;  %v6647_v0 = vpop.f32.mrb[37].mxu1 }
 0x68a   :  { %v1207_v28 = vpop.f32.mrb[34].mxu0  ;;  %v1257_v1 = vpop.f32.mrb[38].mxu1 }
 0x68b   :  { %v1213_v2 = vadd.f32 %v7852_v25, %v1211_v62  ;;  %v1263_v3 = vadd.f32 %v7854_v26, %v1261_v63  ;;  %v6640_v4 = vpop.f32.mrb[35].mxu0  ;;  %v6648_v5 = vpop.f32.mrb[39].mxu1 }
 0x68d   :  { %v6043_v6 = vmul.f32 -1.442695, %v1213_v2  ;;  %v6045_v9 = vmul.f32 -1.442695, %v1263_v3 }
 0x68f   :  { %7488 = vpow2.f32 %v6043_v6 }
 0x690   :  { %v1304_v7 = vpop.f32.mrb[36].mxu0  ;;  %7490 = vpow2.f32 %v6045_v9 }
 0x691   :  { %v6655_v8 = vpop.f32.mrb[37].mxu0  ;;  %v1305_v19 = vadd.f32 %v7869_v50, %v1304_v7 }
 0x692   :  { %v1307_v10 = vpop.f32.mrb[38].mxu0 }
 0x693   :  { %v6656_v15 = vpop.f32.mrb[39].mxu0  ;;  %v1311_v32 = vrot.slane %v1305_v19, 6  ;;  %v8083_v19 = vld [vmem:[%s9082_s2 + $0x48] sm:$0xff]  }
 0x699   :  { %v7489_v30 = vpop.eup %7488 }
 0x69a   :  { %v1217_v16 = vadd.f32 1.0, %v7489_v30  ;;  %v7491_v17 = vpop.eup %7490 }
 0x69b   :  { %v1267_v31 = vadd.f32 1.0, %v7491_v17 }
 0x69c   :  { %7492 = vrcp.f32 %v1217_v16 }
 0x69d   :  { %7494 = vrcp.f32 %v1267_v31 }
 0x6a6   :  { %v7493_v33 = vpop.eup %7492 }
 0x6a7   :  { %v1313_v34 = vmul.f32 %v7493_v33, %v1311_v32  ;;  %v7495_v36 = vpop.eup %7494 }
 0x6a8   :  { %v1316_v37 = vsub.f32 1.0, %v7495_v36  ;;  %v1321_v40 = vmul.f32 %v7495_v36, %v1319_v38 }
 0x6a9   :  { %v1314_v35 = vadd.f32 %v7860_v29, %v1313_v34 }
 0x6ab   :  { %7496 = vtanh.f32 %v1314_v35 }
 0x6b5   :  { %v7497_v39 = vpop.eup %7496 }
 0x6b6   :  { %v1317_v61 = vmul.f32 %v7497_v39, %v1316_v37 }
 0x6b8   :  { %v1322_v41 = vadd.f32 %v1321_v40, %v1317_v61 }
 0x6ba   :  { %v1323_v42 = vpack.c.bf16 %v1322_v41, %v1322_v41  ;;  %v1478_v2 = vrot.slane %v1322_v41, 6  ;;  %v1647_v15 = vsel %vm1641_vm5, %v7990_v57, %v1322_v41  ;;  %v8071_v57 = vld [vmem:[%s9082_s2 + $0x40] sm:$0xff]  }
 0x6bc   :  { %v1325_v43 = vrot.slane %v1323_v42, 1 }
 0x6be   :  { %6662 = vmatmul.mubr.msk.bf16.vlgmr.msra.gmra.mrb[40].mxu1 %vm372_vm4, %v1325_v43  ;;  %6670 = vmatmul.mubr.msk.bf16.vlgmr.msra.gmra.mrb[40].mxu0 %vm372_vm4, %v1325_v43 }
 0x6bf   :  { %6674 = vmatpush3.bf16.msra.mxu1 %v7818_v23  ;;  %6677 = vmatprep.mubr.msk.bf16.mxu1 %vm7705_vm3, %v7704_v12 }
 0x6c0   :  { %6675 = vmatprep.subr.bf16.mxu1 %v7704_v12  ;;  %6682 = vmatpush3.bf16.msra.mxu0 %v7785_v18 }
 0x6c1   :  { %6683 = vmatprep.subr.bf16.mxu0 %v7704_v12  ;;  %6685 = vmatprep.mubr.msk.bf16.mxu0 %vm7705_vm3, %v7704_v12 }
 0x6c3   :  { %6676 = vmatpush3.bf16.msra.mxu1 %v7830_v24 }
 0x6c4   :  { %6689 = vmatprep.subr.bf16.mxu1 %v7704_v12  ;;  %6684 = vmatpush3.bf16.msra.mxu0 %v7795_v20 }
 0x6c5   :  { %6697 = vmatprep.subr.bf16.mxu0 %v7704_v12 }
 0x6c6   :  { %6678 = vmatmul.mubr.msk.bf16.vlgmr.msra.gmra.mrb[44].mxu1 %vm372_vm4, %v1325_v43 }
 0x6c7   :  { %6690 = vmatpush3.bf16.msra.mxu1 %v7800_v21  ;;  %6693 = vmatprep.mubr.msk.bf16.mxu1 %vm7705_vm3, %v7704_v12 }
 0x6c8   :  { %6691 = vmatprep.subr.bf16.mxu1 %v7704_v12 }
 0x6cb   :  { %6692 = vmatpush3.bf16.msra.mxu1 %v7813_v22 }
 0x6cc   :  { %6705 = vmatprep.subr.bf16.mxu1 %v7704_v12 }
 0x791   :  { %v1363_v18 = vpop.f32.mrb[40].mxu1  ;;  %v1413_v44 = vpop.f32.mrb[40].mxu0 }
 0x792   :  { %v1370_v45 = vrot.slane %v1363_v18, 4  ;;  %v1420_v46 = vrot.slane %v1413_v44, 4  ;;  %v6663_v20 = vpop.f32.mrb[41].mxu1  ;;  %v6671_v47 = vpop.f32.mrb[41].mxu0 }
 0x793   :  { %v1366_v48 = vpop.f32.mrb[42].mxu1  ;;  %v1416_v49 = vpop.f32.mrb[42].mxu0 }
 0x794   :  { %v1372_v51 = vadd.f32 %v7852_v25, %v1370_v45  ;;  %v1422_v21 = vadd.f32 %v7854_v26, %v1420_v46  ;;  %v6664_v52 = vpop.f32.mrb[43].mxu1  ;;  %v6672_v53 = vpop.f32.mrb[43].mxu0 }
 0x796   :  { %v6048_v54 = vmul.f32 -1.442695, %v1372_v51  ;;  %v6050_v55 = vmul.f32 -1.442695, %v1422_v21 }
 0x798   :  { %7498 = vpow2.f32 %v6048_v54 }
 0x799   :  { %7500 = vpow2.f32 %v6050_v55  ;;  %v1463_v22 = vpop.f32.mrb[44].mxu1 }
 0x79a   :  { %v6679_v56 = vpop.f32.mrb[45].mxu1  ;;  %v1464_v0 = vadd.f32 %v7869_v50, %v1463_v22 }
 0x79b   :  { %v1466_v58 = vpop.f32.mrb[46].mxu1 }
 0x79c   :  { %v6680_v59 = vpop.f32.mrb[47].mxu1  ;;  %v1470_v28 = vrot.slane %v1464_v0, 4 }
 0x7a2   :  { %v7499_v60 = vpop.eup %7498 }
 0x7a3   :  { %v7501_v62 = vpop.eup %7500  ;;  %v1376_v63 = vadd.f32 1.0, %v7499_v60 }
 0x7a4   :  { %v1426_v27 = vadd.f32 1.0, %v7501_v62 }
 0x7a5   :  { %7502 = vrcp.f32 %v1376_v63  ;;  %v8113_v63 = vld [vmem:[%s9084_s3 + $0x8] sm:$0xff]  }
 0x7a6   :  { %7504 = vrcp.f32 %v1426_v27 }
 0x7af   :  { %v7503_v1 = vpop.eup %7502 }
 0x7b0   :  { %v7505_v3 = vpop.eup %7504  ;;  %v1472_v4 = vmul.f32 %v7503_v1, %v1470_v28  ;;  %v8130_v28 = vld [vmem:[%s9082_s2 + $0x50] sm:$0xff]  }
 0x7b1   :  { %v1480_v5 = vmul.f32 %v7505_v3, %v1478_v2  ;;  %v1475_v7 = vsub.f32 1.0, %v7505_v3  ;;  %v8135_v1 = vld [vmem:[%s9084_s3 + $0x10] sm:$0xff]   ;;  %v8143_v2 = vld [vmem:[%s9082_s2 + $0x58] sm:$0xff]  }
 0x7b2   :  { %v1473_v6 = vadd.f32 %v7860_v29, %v1472_v4 }
 0x7b4   :  { %7506 = vtanh.f32 %v1473_v6 }
 0x7be   :  { %v7507_v8 = vpop.eup %7506 }
 0x7bf   :  { %v1476_v9 = vmul.f32 %v7507_v8, %v1475_v7 }
 0x7c1   :  { %v1481_v10 = vadd.f32 %v1480_v5, %v1476_v9 }
 0x7c3   :  { %v1482_v30 = vpack.c.bf16 %v1481_v10, %v1481_v10  ;;  %v8048_v16 = vsel %vm1643_vm6, %v1647_v15, %v1481_v10  ;;  %v1637_v21 = vrot.slane %v1481_v10, 6 }
 0x7c5   :  { %v1484_v17 = vrot.slane %v1482_v30, 2 }
 0x7c7   :  { %6686 = vmatmul.mubr.msk.bf16.vlgmr.msra.gmra.mrb[44].mxu0 %vm372_vm4, %v1484_v17  ;;  %6694 = vmatmul.mubr.msk.bf16.vlgmr.msra.gmra.mrb[48].mxu1 %vm372_vm4, %v1484_v17 }
 0x7c8   :  { %6698 = vmatpush3.bf16.msra.mxu0 %v7818_v23  ;;  %6701 = vmatprep.mubr.msk.bf16.mxu0 %vm7705_vm3, %v7704_v12  ;;  %v8066_v23 = vld [vmem:[%s9082_s2 + $0x30] sm:$0xff]  }
 0x7c9   :  { %6699 = vmatprep.subr.bf16.mxu0 %v7704_v12  ;;  %6709 = vmatprep.mubr.msk.bf16.mxu1 %vm7705_vm3, %v7704_v12 }
 0x7ca   :  { %6706 = vmatpush3.bf16.msra.mxu1 %v8066_v23 }
 0x7cb   :  { %6707 = vmatprep.subr.bf16.mxu1 %v7704_v12 }
 0x7cc   :  { %6700 = vmatpush3.bf16.msra.mxu0 %v7830_v24  ;;  %v8078_v24 = vld [vmem:[%s9082_s2 + $0x38] sm:$0xff]  }
 0x7cd   :  { %6719 = vmatprep.subr.bf16.mxu0 %v7704_v12 }
 0x7ce   :  { %6708 = vmatpush3.bf16.msra.mxu1 %v8078_v24 }
 0x7cf   :  { %6702 = vmatmul.mubr.msk.bf16.vlgmr.msra.gmra.mrb[48].mxu0 %vm372_vm4, %v1484_v17  ;;  %6713 = vmatprep.subr.bf16.mxu1 %v7704_v12 }
 0x7d0   :  { %6723 = vmatprep.mubr.msk.bf16.mxu0 %vm7705_vm3, %v7704_v12  ;;  %6720 = vmatpush3.bf16.msra.mxu0 %v8071_v57 }
 0x7d1   :  { %6721 = vmatprep.subr.bf16.mxu0 %v7704_v12 }
 0x7d4   :  { %6722 = vmatpush3.bf16.msra.mxu0 %v8083_v19 }
 0x7d5   :  { %6727 = vmatprep.subr.bf16.mxu0 %v7704_v12 }
 0x89a   :  { %v1522_v31 = vpop.f32.mrb[44].mxu0  ;;  %v1572_v32 = vpop.f32.mrb[48].mxu1 }
 0x89b   :  { %v1529_v33 = vrot.slane %v1522_v31, 2  ;;  %v1579_v34 = vrot.slane %v1572_v32, 2  ;;  %v6687_v35 = vpop.f32.mrb[45].mxu0  ;;  %v6695_v36 = vpop.f32.mrb[49].mxu1 }
 0x89c   :  { %v1525_v37 = vpop.f32.mrb[46].mxu0  ;;  %v1575_v38 = vpop.f32.mrb[50].mxu1 }
 0x89d   :  { %v1531_v39 = vadd.f32 %v7852_v25, %v1529_v33  ;;  %v1581_v40 = vadd.f32 %v7854_v26, %v1579_v34  ;;  %v6688_v61 = vpop.f32.mrb[47].mxu0  ;;  %v6696_v41 = vpop.f32.mrb[51].mxu1 }
 0x89e   :  { %v8171_v41 = vld [vmem:[%s9083_s5 + $0x1] ss:$0 sm:$0xff] }
 0x89f   :  { %v6053_v42 = vmul.f32 -1.442695, %v1531_v39  ;;  %v6055_v43 = vmul.f32 -1.442695, %v1581_v40 }
 0x8a1   :  { %7508 = vpow2.f32 %v6053_v42 }
 0x8a2   :  { %7510 = vpow2.f32 %v6055_v43  ;;  %v1622_v18 = vpop.f32.mrb[48].mxu0 }
 0x8a3   :  { %v6703_v44 = vpop.f32.mrb[49].mxu0  ;;  %v1623_v25 = vadd.f32 %v7869_v50, %v1622_v18 }
 0x8a4   :  { %v1625_v45 = vpop.f32.mrb[50].mxu0 }
 0x8a5   :  { %v6704_v46 = vpop.f32.mrb[51].mxu0  ;;  %v1629_v51 = vrot.slane %v1623_v25, 2 }
 0x8ab   :  { %v7509_v20 = vpop.eup %7508 }
 0x8ac   :  { %v7511_v47 = vpop.eup %7510  ;;  %v1535_v48 = vadd.f32 1.0, %v7509_v20 }
 0x8ad   :  { %v1585_v49 = vadd.f32 1.0, %v7511_v47 }
 0x8ae   :  { %7512 = vrcp.f32 %v1535_v48 }
 0x8af   :  { %7514 = vrcp.f32 %v1585_v49 }
 0x8b8   :  { %v7513_v26 = vpop.eup %7512 }
 0x8b9   :  { %v7515_v52 = vpop.eup %7514  ;;  %v1631_v53 = vmul.f32 %v7513_v26, %v1629_v51  ;;  %v8180_v51 = vld [vmem:[%s9085_s4 + $0x10] sm:$0xff]  }
 0x8ba   :  { %v1639_v54 = vmul.f32 %v7515_v52, %v1637_v21  ;;  %v1634_v22 = vsub.f32 1.0, %v7515_v52  ;;  %v8192_v21 = vld [vmem:[%s9085_s4 + $0x18] sm:$0xff]   ;;  %v1652_v52 = vshrl.u32 %v106_v13, 7 }
 0x8bb   :  { %v1632_v55 = vadd.f32 %v7860_v29, %v1631_v53  ;;  %v8108_v29 = vld [vmem:[%s9084_s3] sm:$0xff]   ;;  %v1653_v53 = vand.u32 1, %v7776_v14 }
 0x8bd   :  { %7516 = vtanh.f32 %v1632_v55  ;;  %vm1654_vm9 = vcmp.eq.s32.totalorder %v1653_v53, %v1652_v52 }
 0x8c7   :  { %v7517_v56 = vpop.eup %7516 }
 0x8c8   :  { %v1635_v58 = vmul.f32 %v7517_v56, %v1634_v22 }
 0x8ca   :  { %v8095_v59 = vadd.f32 %v1639_v54, %v1635_v58  ;;  %v7706_v54 = vmov -1e+30  }
 0x8cb   :  { %v8205_v55 = vsel %vm1654_vm9, 0.0, %v7706_v54 }
 0x8cc   :  { %v1649_v60 = vsel %vm1645_vm7, %v8048_v16, %v8095_v59  ;;  %v1660_v50 = vpack.c.bf16 %v8095_v59, %v8095_v59  ;;  %v1980_v18 = vrot.slane %v8095_v59, 6 }
 0x8cd   :  { %v8103_v62 = vpack.c.bf16 %v1649_v60, %v7963_v11  ;;  %v6057_v11 = vsel %vm1656_vm8, 1.0, %v7704_v12 }
 0x8ce   :  { %v1662_v27 = vrot.slane %v1660_v50, 3  ;;  %v1659_v0 = vpack.c.bf16 %v6057_v11, %v6057_v11 }
 0x8cf   :  { %v8164_v3 = vsel %vm372_vm4, %v8103_v62, 0 }
 0x8d0   :  { %6710 = vmatmul.mubr.msk.bf16.vlgmr.msra.gmra.mrb[52].mxu1 %vm372_vm4, %v1662_v27  ;;  %6724 = vmatmul.mubr.msk.bf16.vlgmr.msra.gmra.mrb[52].mxu0 %vm372_vm4, %v1662_v27 }
 0x8d1   :  { %6714 = vmatpush3.bf16.msra.mxu1 %v8108_v29  ;;  %6728 = vmatpush3.bf16.msra.mxu0 %v8113_v63 }
 0x8d2   :  { %6715 = vmatprep.mubr.msk.bf16.mxu1 %vm7705_vm3, %v7704_v12  ;;  %6729 = vmatprep.mubr.msk.bf16.mxu0 %vm7705_vm3, %v7704_v12 }
 0x8d3   :  { %6733 = vmatprep.subr.bf16.mxu1 %v7704_v12  ;;  %6741 = vmatprep.subr.bf16.mxu0 %v7704_v12 }
 0x8dc   :  { %6716 = vmatmul.mubr.msk.bf16.vlgmr.msra.gmra.mrb[52].mxu1 %vm122_vm0, %v1659_v0  ;;  %6730 = vmatmul.mubr.msk.bf16.vlgmr.msra.gmra.mrb[52].mxu0 %vm122_vm0, %v1659_v0 }
 0x8dd   :  { %6734 = vmatpush3.bf16.msra.mxu1 %v8130_v28  ;;  %6742 = vmatpush3.bf16.msra.mxu0 %v8135_v1 }
 0x8de   :  { %6735 = vmatprep.subr.bf16.mxu1 %v7704_v12  ;;  %6737 = vmatprep.mubr.msk.bf16.mxu1 %vm7705_vm3, %v7704_v12 }
 0x8df   :  { %6743 = vmatprep.mubr.msk.bf16.mxu0 %vm7705_vm3, %v7704_v12  ;;  %6753 = vmatprep.subr.bf16.mxu0 %v7704_v12 }
 0x8e1   :  { %6736 = vmatpush3.bf16.msra.mxu1 %v8143_v2 }
 0x8e2   :  { %6747 = vmatprep.subr.bf16.mxu1 %v7704_v12 }
 0x8e4   :  { %6738 = vmatmul.mubr.msk.bf16.vlgmr.msra.gmra.mrb[56].mxu1 %vm372_vm4, %v1662_v27  ;;  %6744 = vmatmul.mubr.msk.bf16.vlgmr.msra.gmra.mrb[56].mxu0 %vm122_vm0, %v1659_v0 }
 0x8e5   :  { %6754 = vmatpush3.bf16.msra.mxu0 %v8103_v62  ;;  %6749 = vmatprep.mubr.msk.bf16.mxu1 %vm7705_vm3, %v7704_v12 }
 0x8e6   :  { %6755 = vmatprep.mubr.msk.bf16.mxu0 %vm7705_vm3, %v7704_v12  ;;  %6767 = vmatprep.subr.bf16.mxu0 %v7704_v12 }
 0x8ea   :  { %6748 = vmatpush3.bf16.xpose.msra.mxu1 %v8164_v3 }
 0x8eb   :  { %6759 = vmatprep.subr.bf16.mxu1 %v7704_v12 }
 0x9af   :  { %v1761_v4 = vpop.f32.mrb[52].mxu1  ;;  %v1865_v5 = vpop.f32.mrb[52].mxu0 }
 0x9b0   :  { %v6063_v6 = vmul.f32 -1.442695, %v1761_v4  ;;  %v6069_v7 = vmul.f32 -1.442695, %v1865_v5  ;;  %v6717_v8 = vpop.f32.mrb[53].mxu1  ;;  %v6731_v9 = vpop.f32.mrb[53].mxu0 }
 0x9b1   :  { %v1764_v10 = vpop.f32.mrb[54].mxu1  ;;  %v1868_v15 = vpop.f32.mrb[54].mxu0 }
 0x9b2   :  { %7518 = vpow2.f32 %v6063_v6  ;;  %v6718_v30 = vpop.f32.mrb[55].mxu1  ;;  %v6732_v16 = vpop.f32.mrb[55].mxu0 }
 0x9b3   :  { %7520 = vpow2.f32 %v6069_v7  ;;  %v8213_v30 = vld [vmem:[%s9085_s4] sm:$0xff]  }
 0x9b7   :  { %v1923_v17 = vpop.f32.mrb[56].mxu1  ;;  %v1970_v31 = vpop.f32.mrb[56].mxu0 }
 0x9b8   :  { %v6739_v32 = vpop.f32.mrb[57].mxu1  ;;  %v6745_v33 = vpop.f32.mrb[57].mxu0  ;;  %v1924_v42 = vadd.f32 %v8171_v41, %v1923_v17  ;;  %v8220_v17 = vld [vmem:[%s9085_s4 + $0x8] sm:$0xff]  }
 0x9b9   :  { %v1926_v34 = vpop.f32.mrb[58].mxu1  ;;  %v1973_v35 = vpop.f32.mrb[58].mxu0 }
 0x9ba   :  { %v6740_v36 = vpop.f32.mrb[59].mxu1  ;;  %v6746_v37 = vpop.f32.mrb[59].mxu0 }
 0x9bb   :  { %v8243_v36 = vld [vmem:[%s9085_s4 + $0x20] sm:$0xff]   ;;  %v8250_v37 = vld [vmem:[%s9085_s4 + $0x28] sm:$0xff]  }
 0x9bc   :  { %v7519_v38 = vpop.eup %7518 }
 0x9bd   :  { %v7521_v39 = vpop.eup %7520  ;;  %v1770_v40 = vadd.f32 1.0, %v7519_v38  ;;  %v8257_v38 = vld [vmem:[%s9083_s5 + $0x2] ss:$0 sm:$0xff] }
 0x9be   :  { %v1874_v61 = vadd.f32 1.0, %v7521_v39 }
 0x9bf   :  { %7522 = vrcp.f32 %v1770_v40 }
 0x9c0   :  { %7524 = vrcp.f32 %v1874_v61 }
 0x9c9   :  { %v7523_v43 = vpop.eup %7522 }
 0x9ca   :  { %v7525_v44 = vpop.eup %7524  ;;  %v1929_v45 = vmul.f32 %v7523_v43, %v1924_v42 }
 0x9cb   :  { %v1982_v46 = vmul.f32 %v7525_v44, %v1980_v18  ;;  %v1977_v47 = vsub.f32 1.0, %v7525_v44 }
 0x9cc   :  { %v1971_v20 = vadd.f32 %v1970_v31, %v1929_v45 }
 0x9ce   :  { %7526 = vtanh.f32 %v1971_v20 }
 0x9d8   :  { %v7527_v48 = vpop.eup %7526 }
 0x9d9   :  { %v1978_v49 = vmul.f32 %v7527_v48, %v1977_v47 }
 0x9db   :  { %v8175_v25 = vadd.f32 %v1982_v46, %v1978_v49  ;;  %v8276_v46 = vld [vmem:[%s9083_s5 + $0x3] ss:$0 sm:$0xff] }
 0x9dd   :  { %v8184_v26 = vpack.c.bf16 %v8175_v25, %v8175_v25 }
 0x9df   :  { %6750 = vmatmul.mubr.msk.bf16.vlgmr.msra.gmra.mrb[60].mxu1 %vm372_vm4, %v8184_v26 }
 0x9e0   :  { %6760 = vmatpush3.bf16.msra.mxu1 %v8180_v51  ;;  %6763 = vmatprep.mubr.msk.bf16.mxu1 %vm7705_vm3, %v7704_v12 }
 0x9e1   :  { %6761 = vmatprep.subr.bf16.mxu1 %v7704_v12 }
 0x9e4   :  { %6762 = vmatpush3.bf16.msra.mxu1 %v8192_v21 }
 0x9e5   :  { %6775 = vmatprep.subr.bf16.mxu1 %v7704_v12 }
 0x9e7   :  { %6764 = vmatmul.mubr.msk.bf16.vlgmr.msra.gmra.mrb[64].mxu1 %vm372_vm4, %v8184_v26 }
 0x9e8   :  { %6779 = vmatprep.mubr.msk.bf16.mxu1 %vm7705_vm3, %v7704_v12  ;;  %6776 = vmatpush3.bf16.msra.mxu1 %v8243_v36 }
 0x9e9   :  { %6777 = vmatprep.subr.bf16.mxu1 %v7704_v12 }
 0x9ec   :  { %6778 = vmatpush3.bf16.msra.mxu1 %v8250_v37 }
 0x9ed   :  { %6797 = vmatprep.subr.bf16.mxu1 %v7704_v12 }
 0xab2   :  { %v2025_v22 = vpop.f32.mrb[60].mxu1 }
 0xab3   :  { %v2026_v56 = vadd.f32 %v2025_v22, %v8205_v55  ;;  %v6751_v58 = vpop.f32.mrb[61].mxu1 }
 0xab4   :  { %v2028_v59 = vpop.f32.mrb[62].mxu1 }
 0xab5   :  { %v6752_v60 = vpop.f32.mrb[63].mxu1  ;;  %v2032_v50 = vsel %vm2031_vm10, %v2026_v56, -inf }
 0xab6   :  { %2033 = vmax.xlane.f32.xlu1 %v2032_v50 }
 0xaba   :  { %v2134_v27 = vpop.f32.mrb[64].mxu1 }
 0xabb   :  { %v6765_v11 = vpop.f32.mrb[65].mxu1 }
 0xabc   :  { %v2137_v0 = vpop.f32.mrb[66].mxu1 }
 0xabd   :  { %v6766_v13 = vpop.f32.mrb[67].mxu1 }
 0xb43   :  { %v2034_v4 = vpop.xlane.xlu1 %2033 }
 0xb44   :  { %v2035_v5 = vsub.f32 %v2026_v56, %v2034_v4 }
 0xb46   :  { %v2036_v6 = vmul.f32 1.442695, %v2035_v5 }
 0xb48   :  { %7528 = vpow2.f32 %v2036_v6 }
 0xb52   :  { %v7529_v7 = vpop.eup %7528 }
 0xb53   :  { %v2038_v8 = vsel %vm2031_vm10, %v7529_v7, 0.0 }
 0xb54   :  { %2039 = vadd.xlane.f32.xlu1 %v2038_v8 }
 0xbe1   :  { %v2040_v9 = vpop.xlane.xlu1 %2039 }
 0xbe2   :  { %7530 = vrcp.f32 %v2040_v9 }
 0xbec   :  { %v7531_v10 = vpop.eup %7530 }
 0xbed   :  { %v2042_v15 = vmul.f32 %v7531_v10, %v7529_v7 }
 0xbef   :  { %v2043_v16 = vpack.c.bf16 %v2042_v15, %v2042_v15 }
 0xbf1   :  { %6756 = vmatmul.mubr.msk.bf16.vlgmr.msra.gmra.mrb[60].mxu0 %vm122_vm0, %v2043_v16 }
 0xbf2   :  { %6768 = vmatpush3.bf16.msra.mxu0 %v8213_v30  ;;  %6771 = vmatprep.mubr.msk.bf16.mxu0 %vm7705_vm3, %v7704_v12 }
 0xbf3   :  { %6769 = vmatprep.subr.bf16.mxu0 %v7704_v12 }
 0xbf6   :  { %6770 = vmatpush3.bf16.msra.mxu0 %v8220_v17 }
 0xbf7   :  { %6783 = vmatprep.subr.bf16.mxu0 %v7704_v12 }
 0xcc4   :  { %v2081_v31 = vpop.f32.mrb[60].mxu0 }
 0xcc5   :  { %v2087_v32 = vpack.c.bf16 %v2081_v31, %v2081_v31  ;;  %v6757_v33 = vpop.f32.mrb[61].mxu0 }
 0xcc6   :  { %v2084_v34 = vpop.f32.mrb[62].mxu0 }
 0xcc7   :  { %v6758_v35 = vpop.f32.mrb[63].mxu0  ;;  %6772 = vmatmul.mubr.msk.bf16.vlgmr.msra.gmra.mrb[64].mxu0 %vm372_vm4, %v2087_v32 }
 0xcc8   :  { %6784 = vmatpush3.bf16.msra.mxu0 %v8066_v23  ;;  %6787 = vmatprep.mubr.msk.bf16.mxu0 %vm7705_vm3, %v7704_v12 }
 0xcc9   :  { %6785 = vmatprep.subr.bf16.mxu0 %v7704_v12 }
 0xccc   :  { %6786 = vmatpush3.bf16.msra.mxu0 %v8078_v24 }
 0xccd   :  { %6791 = vmatprep.subr.bf16.mxu0 %v7704_v12 }
 0xccf   :  { %6788 = vmatmul.mubr.msk.bf16.vlgmr.msra.gmra.mrb[68].mxu0 %vm372_vm4, %v8184_v26 }
 0xcd0   :  { %6792 = vmatpush3.bf16.msra.mxu0 %v8108_v29  ;;  %6793 = vmatprep.mubr.msk.bf16.mxu0 %vm7705_vm3, %v7704_v12 }
 0xcd1   :  { %6811 = vmatprep.subr.bf16.mxu0 %v7704_v12 }
 0xd9a   :  { %v2189_v39 = vpop.f32.mrb[64].mxu0 }
 0xd9b   :  { %v2190_v40 = vadd.f32 %v2189_v39, %v2134_v27  ;;  %v6773_v61 = vpop.f32.mrb[65].mxu0 }
 0xd9c   :  { %v2192_v42 = vpop.f32.mrb[66].mxu0 }
 0xd9d   :  { %v2195_v43 = vadd.f32 %v8257_v38, %v2190_v40  ;;  %v6774_v18 = vpop.f32.mrb[67].mxu0 }
 0xd9f   :  { %7532 = vtanh.f32 %v2195_v43 }
 0xda9   :  { %v7533_v44 = vpop.eup %7532 }
 0xdaa   :  { %v2197_v45 = vpack.c.bf16 %v7533_v44, %v7533_v44 }
 0xdac   :  { %6780 = vmatmul.mubr.msk.bf16.vlgmr.msra.gmra.mrb[68].mxu1 %vm372_vm4, %v2197_v45 }
 0xdad   :  { %6798 = vmatpush3.bf16.msra.mxu1 %v8071_v57  ;;  %6801 = vmatprep.mubr.msk.bf16.mxu1 %vm7705_vm3, %v7704_v12 }
 0xdae   :  { %6799 = vmatprep.subr.bf16.mxu1 %v7704_v12 }
 0xdb1   :  { %6800 = vmatpush3.bf16.msra.mxu1 %v8083_v19 }
 0xdb2   :  { %6805 = vmatprep.subr.bf16.mxu1 %v7704_v12 }
 0xdb4   :  { %6802 = vmatmul.mubr.msk.bf16.vlgmr.msra.gmra.mrb[72].mxu1 %vm372_vm4, %v8184_v26 }
 0xdb5   :  { %6806 = vmatpush3.bf16.msra.mxu1 %v8113_v63  ;;  %6807 = vmatprep.mubr.msk.bf16.mxu1 %vm7705_vm3, %v7704_v12 }
 0xdb6   :  { %6819 = vmatprep.subr.bf16.mxu1 %v7704_v12 }
 0xe7f   :  { %v2247_v20 = vpop.f32.mrb[68].mxu1 }
 0xe80   :  { %v8279_v47 = vadd.f32 %v8276_v46, %v2247_v20  ;;  %v6781_v48 = vpop.f32.mrb[69].mxu1 }
 0xe81   :  { %v2250_v49 = vpop.f32.mrb[70].mxu1 }
 0xe82   :  { %v6782_v52 = vpop.f32.mrb[71].mxu1  ;;  %v2253_v53 = vsel %vm2031_vm10, %v8279_v47, -inf }
 0xe83   :  { %2254 = vmax.xlane.f32.xlu0 %v2253_v53 }
 0xf10   :  { %v8283_v54 = vpop.xlane.xlu0 %2254 }
 0xf11   :  { %vm2265_vm11 = vcmp.ge.f32.partialorder %v8279_v47, %v8283_v54 }
 0xf12   :  { %v2266_v22 = vsel %vm2265_vm11, %v7776_v14, 16 }
 0xf13   :  { %v2267_v56 = vsel %vm2031_vm10, %v2266_v22, 2147483647 }
 0xf14   :  { %v2269_v58 = vshra.s32 %v2267_v56, 16  ;;  %v2268_v60 = vand.u32 65535, %v2267_v56 }
 0xf16   :  { %v2271_v59 = vcvt.s32.f32 %v2269_v58  ;;  %v2270_v27 = vcvt.s32.f32 %v2268_v60 }
 0xf18   :  { %2272 = vmin.xlane.f32.xlu1 %v2271_v59 }
 0xfa5   :  { %v2273_v50 = vpop.xlane.xlu1 %2272 }
 0xfa6   :  { %vm2274_vm12 = vcmp.eq.f32.partialorder %v2271_v59, %v2273_v50  ;;  %v2279_v0 = vcvt.f32.s32 %v2273_v50 }
 0xfa7   :  { %v2275_v11 = vsel %vm2274_vm12, %v2270_v27, inf }
 0xfa8   :  { %2276 = vmin.xlane.f32.xlu1 %v2275_v11  ;;  %v2280_v4 = vshll.u32 %v2279_v0, 16 }
0x1035   :  { %v2277_v13 = vpop.xlane.xlu1 %2276 }
0x1036   :  { %v2278_v5 = vcvt.f32.s32 %v2277_v13 }
0x1038   :  { %v2281_v6 = vadd.s32 %v2280_v4, %v2278_v5 }
0x103a   :  { %vm2282_vm13 = vcmp.eq.s32.totalorder %v7776_v14, %v2281_v6 }
0x103b   :  { %v6086_v7 = vsel %vm2282_vm13, 1.0, %v7704_v12 }
0x103c   :  { %v2285_v8 = vpack.c.bf16 %v6086_v7, %v6086_v7 }
0x103e   :  { %6794 = vmatmul.mubr.msk.bf16.vlgmr.msra.gmra.mrb[68].mxu0 %vm122_vm0, %v2285_v8  ;;  %6808 = vmatmul.mubr.msk.bf16.vlgmr.msra.gmra.mrb[72].mxu1 %vm122_vm0, %v2285_v8 }
0x103f   :  { %6812 = vmatpush3.bf16.msra.mxu0 %v8130_v28  ;;  %6820 = vmatpush3.bf16.msra.mxu1 %v8135_v1 }
0x1040   :  { %6813 = vmatprep.subr.bf16.mxu0 %v7704_v12  ;;  %6815 = vmatprep.mubr.msk.bf16.mxu0 %vm7705_vm3, %v7704_v12 }
0x1041   :  { %6821 = vmatprep.mubr.msk.bf16.mxu1 %vm7705_vm3, %v7704_v12  ;;  %6831 = vmatprep.subr.bf16.mxu1 %v7704_v12 }
0x1043   :  { %6814 = vmatpush3.bf16.msra.mxu0 %v8143_v2 }
0x1044   :  { %6825 = vmatprep.subr.bf16.mxu0 %v7704_v12 }
0x1046   :  { %6816 = vmatmul.mubr.msk.bf16.vlgmr.msra.gmra.mrb[72].mxu0 %vm372_vm4, %v8184_v26  ;;  %6822 = vmatmul.mubr.msk.bf16.vlgmr.msra.gmra.mrb[76].mxu1 %vm122_vm0, %v2285_v8 }
0x1047   :  { %6832 = vmatpush3.bf16.msra.mxu1 %v8103_v62  ;;  %6827 = vmatprep.mubr.msk.bf16.mxu0 %vm7705_vm3, %v7704_v12 }
0x1048   :  { %6833 = vmatprep.mubr.msk.bf16.mxu1 %vm7705_vm3, %v7704_v12  ;;  %6845 = vmatprep.subr.bf16.mxu1 %v7704_v12 }
0x104c   :  { %6826 = vmatpush3.bf16.xpose.msra.mxu0 %v8164_v3 }
0x104d   :  { %6837 = vmatprep.subr.bf16.mxu0 %v7704_v12 }
0x1111   :  { %v2363_v9 = vpop.f32.mrb[68].mxu0  ;;  %v2449_v10 = vpop.f32.mrb[72].mxu1 }
0x1112   :  { %v6089_v15 = vmul.f32 -1.442695, %v2363_v9  ;;  %v6795_v26 = vpop.f32.mrb[69].mxu0  ;;  %v6809_v16 = vpop.f32.mrb[73].mxu1  ;;  %v6092_v35 = vmul.f32 -1.442695, %v2449_v10 }
0x1113   :  { %v2366_v31 = vpop.f32.mrb[70].mxu0  ;;  %v2452_v32 = vpop.f32.mrb[74].mxu1 }
0x1114   :  { %7534 = vpow2.f32 %v6089_v15  ;;  %v6796_v33 = vpop.f32.mrb[71].mxu0  ;;  %v6810_v34 = vpop.f32.mrb[75].mxu1 }
0x1115   :  { %7536 = vpow2.f32 %v6092_v35 }
0x1119   :  { %v2495_v39 = vpop.f32.mrb[72].mxu0  ;;  %v2536_v40 = vpop.f32.mrb[76].mxu1 }
0x111a   :  { %v6817_v61 = vpop.f32.mrb[73].mxu0  ;;  %v6823_v42 = vpop.f32.mrb[77].mxu1  ;;  %v2496_v53 = vadd.f32 %v8171_v41, %v2495_v39 }
0x111b   :  { %v2498_v43 = vpop.f32.mrb[74].mxu0  ;;  %v2539_v18 = vpop.f32.mrb[78].mxu1 }
0x111c   :  { %v6818_v44 = vpop.f32.mrb[75].mxu0  ;;  %v6824_v45 = vpop.f32.mrb[79].mxu1 }
0x111e   :  { %v7535_v20 = vpop.eup %7534 }
0x111f   :  { %v2372_v48 = vadd.f32 1.0, %v7535_v20  ;;  %v7537_v49 = vpop.eup %7536 }
0x1120   :  { %v2458_v52 = vadd.f32 1.0, %v7537_v49 }
0x1121   :  { %7538 = vrcp.f32 %v2372_v48 }
0x1122   :  { %7540 = vrcp.f32 %v2458_v52 }
0x112b   :  { %v7539_v22 = vpop.eup %7538 }
0x112c   :  { %v2501_v56 = vmul.f32 %v7539_v22, %v2496_v53  ;;  %v7541_v59 = vpop.eup %7540 }
0x112d   :  { %v2543_v60 = vsub.f32 1.0, %v7541_v59  ;;  %v2545_v27 = vmul.f32 %v7541_v59, %v8175_v25 }
0x112e   :  { %v2537_v58 = vadd.f32 %v2536_v40, %v2501_v56 }
0x1130   :  { %7542 = vtanh.f32 %v2537_v58 }
0x113a   :  { %v7543_v50 = vpop.eup %7542 }
0x113b   :  { %v2544_v11 = vmul.f32 %v7543_v50, %v2543_v60 }
0x113d   :  { %v8316_v0 = vadd.f32 %v2545_v27, %v2544_v11 }
0x113f   :  { %v8320_v13 = vpack.c.bf16 %v8316_v0, %v8316_v0 }
0x1141   :  { %6828 = vmatmul.mubr.msk.bf16.vlgmr.msra.gmra.mrb[76].mxu0 %vm372_vm4, %v8320_v13 }
0x1142   :  { %6838 = vmatpush3.bf16.msra.mxu0 %v8180_v51  ;;  %6841 = vmatprep.mubr.msk.bf16.mxu0 %vm7705_vm3, %v7704_v12 }
0x1143   :  { %6839 = vmatprep.subr.bf16.mxu0 %v7704_v12 }
0x1146   :  { %6840 = vmatpush3.bf16.msra.mxu0 %v8192_v21 }
0x1147   :  { %6853 = vmatprep.subr.bf16.mxu0 %v7704_v12 }
0x1149   :  { %6842 = vmatmul.mubr.msk.bf16.vlgmr.msra.gmra.mrb[80].mxu0 %vm372_vm4, %v8320_v13 }
0x114a   :  { %6854 = vmatpush3.bf16.msra.mxu0 %v8243_v36  ;;  %6857 = vmatprep.mubr.msk.bf16.mxu0 %vm7705_vm3, %v7704_v12 }
0x114b   :  { %6855 = vmatprep.subr.bf16.mxu0 %v7704_v12 }
0x114e   :  { %6856 = vmatpush3.bf16.msra.mxu0 %v8250_v37 }
0x114f   :  { %6875 = vmatprep.subr.bf16.mxu0 %v7704_v12 }
0x1214   :  { %v2585_v25 = vpop.f32.mrb[76].mxu0 }
0x1215   :  { %v2586_v4 = vadd.f32 %v2585_v25, %v8205_v55  ;;  %v6829_v5 = vpop.f32.mrb[77].mxu0 }
0x1216   :  { %v2588_v6 = vpop.f32.mrb[78].mxu0 }
0x1217   :  { %v6830_v7 = vpop.f32.mrb[79].mxu0  ;;  %v2591_v8 = vsel %vm2031_vm10, %v2586_v4, -inf }
0x1218   :  { %2592 = vmax.xlane.f32.xlu1 %v2591_v8 }
0x121c   :  { %v2681_v9 = vpop.f32.mrb[80].mxu0 }
0x121d   :  { %v6843_v10 = vpop.f32.mrb[81].mxu0 }
0x121e   :  { %v2684_v15 = vpop.f32.mrb[82].mxu0 }
0x121f   :  { %v6844_v26 = vpop.f32.mrb[83].mxu0 }
0x12a5   :  { %v2593_v16 = vpop.xlane.xlu1 %2592 }
0x12a6   :  { %v2594_v31 = vsub.f32 %v2586_v4, %v2593_v16 }
0x12a8   :  { %v2595_v32 = vmul.f32 1.442695, %v2594_v31 }
0x12aa   :  { %7544 = vpow2.f32 %v2595_v32 }
0x12b4   :  { %v7545_v33 = vpop.eup %7544 }
0x12b5   :  { %v2597_v34 = vsel %vm2031_vm10, %v7545_v33, 0.0 }
0x12b6   :  { %2598 = vadd.xlane.f32.xlu1 %v2597_v34 }
0x1343   :  { %v2599_v35 = vpop.xlane.xlu1 %2598 }
0x1344   :  { %7546 = vrcp.f32 %v2599_v35 }
0x134e   :  { %v7547_v39 = vpop.eup %7546 }
0x134f   :  { %v2601_v40 = vmul.f32 %v7547_v39, %v7545_v33 }
0x1351   :  { %v2602_v61 = vpack.c.bf16 %v2601_v40, %v2601_v40 }
0x1353   :  { %6834 = vmatmul.mubr.msk.bf16.vlgmr.msra.gmra.mrb[80].mxu1 %vm122_vm0, %v2602_v61 }
0x1354   :  { %6846 = vmatpush3.bf16.msra.mxu1 %v8213_v30  ;;  %6849 = vmatprep.mubr.msk.bf16.mxu1 %vm7705_vm3, %v7704_v12 }
0x1355   :  { %6847 = vmatprep.subr.bf16.mxu1 %v7704_v12 }
0x1358   :  { %6848 = vmatpush3.bf16.msra.mxu1 %v8220_v17 }
0x1359   :  { %6861 = vmatprep.subr.bf16.mxu1 %v7704_v12 }
0x1426   :  { %v2640_v42 = vpop.f32.mrb[80].mxu1 }
0x1427   :  { %v2646_v43 = vpack.c.bf16 %v2640_v42, %v2640_v42  ;;  %v6835_v18 = vpop.f32.mrb[81].mxu1 }
0x1428   :  { %v2643_v44 = vpop.f32.mrb[82].mxu1 }
0x1429   :  { %v6836_v45 = vpop.f32.mrb[83].mxu1  ;;  %6850 = vmatmul.mubr.msk.bf16.vlgmr.msra.gmra.mrb[84].mxu1 %vm372_vm4, %v2646_v43 }
0x142a   :  { %6862 = vmatpush3.bf16.msra.mxu1 %v8066_v23  ;;  %6865 = vmatprep.mubr.msk.bf16.mxu1 %vm7705_vm3, %v7704_v12 }
0x142b   :  { %6863 = vmatprep.subr.bf16.mxu1 %v7704_v12 }
0x142e   :  { %6864 = vmatpush3.bf16.msra.mxu1 %v8078_v24 }
0x142f   :  { %6869 = vmatprep.subr.bf16.mxu1 %v7704_v12 }
0x1431   :  { %6866 = vmatmul.mubr.msk.bf16.vlgmr.msra.gmra.mrb[88].mxu1 %vm372_vm4, %v8320_v13 }
0x1432   :  { %6870 = vmatpush3.bf16.msra.mxu1 %v8108_v29  ;;  %6871 = vmatprep.mubr.msk.bf16.mxu1 %vm7705_vm3, %v7704_v12 }
0x1433   :  { %6889 = vmatprep.subr.bf16.mxu1 %v7704_v12 }
0x14fc   :  { %v2724_v23 = vpop.f32.mrb[84].mxu1 }
0x14fd   :  { %v2725_v20 = vadd.f32 %v2724_v23, %v2681_v9  ;;  %v6851_v48 = vpop.f32.mrb[85].mxu1 }
0x14fe   :  { %v2727_v49 = vpop.f32.mrb[86].mxu1 }
0x14ff   :  { %v2730_v52 = vadd.f32 %v8257_v38, %v2725_v20  ;;  %v6852_v53 = vpop.f32.mrb[87].mxu1 }
0x1501   :  { %7548 = vtanh.f32 %v2730_v52 }
0x150b   :  { %v7549_v24 = vpop.eup %7548 }
0x150c   :  { %v2732_v22 = vpack.c.bf16 %v7549_v24, %v7549_v24 }
0x150e   :  { %6858 = vmatmul.mubr.msk.bf16.vlgmr.msra.gmra.mrb[84].mxu0 %vm372_vm4, %v2732_v22 }
0x150f   :  { %6876 = vmatpush3.bf16.msra.mxu0 %v8071_v57  ;;  %6879 = vmatprep.mubr.msk.bf16.mxu0 %vm7705_vm3, %v7704_v12 }
0x1510   :  { %6877 = vmatprep.subr.bf16.mxu0 %v7704_v12 }
0x1513   :  { %6878 = vmatpush3.bf16.msra.mxu0 %v8083_v19 }
0x1514   :  { %6883 = vmatprep.subr.bf16.mxu0 %v7704_v12 }
0x1516   :  { %6880 = vmatmul.mubr.msk.bf16.vlgmr.msra.gmra.mrb[88].mxu0 %vm372_vm4, %v8320_v13 }
0x1517   :  { %6884 = vmatpush3.bf16.msra.mxu0 %v8113_v63  ;;  %6885 = vmatprep.mubr.msk.bf16.mxu0 %vm7705_vm3, %v7704_v12 }
0x1518   :  { %6897 = vmatprep.subr.bf16.mxu0 %v7704_v12 }
0x15e1   :  { %v2770_v57 = vpop.f32.mrb[84].mxu0 }
0x15e2   :  { %v8376_v56 = vadd.f32 %v8276_v46, %v2770_v57  ;;  %v6859_v58 = vpop.f32.mrb[85].mxu0 }
0x15e3   :  { %v2773_v59 = vpop.f32.mrb[86].mxu0 }
0x15e4   :  { %v6860_v60 = vpop.f32.mrb[87].mxu0  ;;  %v2776_v19 = vsel %vm2031_vm10, %v8376_v56, -inf }
0x15e5   :  { %2777 = vmax.xlane.f32.xlu1 %v2776_v19 }
0x1672   :  { %v8380_v50 = vpop.xlane.xlu1 %2777 }
0x1673   :  { %vm2788_vm14 = vcmp.ge.f32.partialorder %v8376_v56, %v8380_v50 }
0x1674   :  { %v2789_v27 = vsel %vm2788_vm14, %v7776_v14, 16 }
0x1675   :  { %v2790_v11 = vsel %vm2031_vm10, %v2789_v27, 2147483647 }
0x1676   :  { %v2792_v25 = vshra.s32 %v2790_v11, 16  ;;  %v2791_v5 = vand.u32 65535, %v2790_v11 }
0x1678   :  { %v2794_v4 = vcvt.s32.f32 %v2792_v25  ;;  %v2793_v7 = vcvt.s32.f32 %v2791_v5 }
0x167a   :  { %2795 = vmin.xlane.f32.xlu1 %v2794_v4 }
0x1707   :  { %v2796_v6 = vpop.xlane.xlu1 %2795 }
0x1708   :  { %vm2797_vm15 = vcmp.eq.f32.partialorder %v2794_v4, %v2796_v6  ;;  %v2802_v9 = vcvt.f32.s32 %v2796_v6 }
0x1709   :  { %v2798_v8 = vsel %vm2797_vm15, %v2793_v7, inf }
0x170a   :  { %2799 = vmin.xlane.f32.xlu1 %v2798_v8  ;;  %v2803_v15 = vshll.u32 %v2802_v9, 16 }
0x1797   :  { %v2800_v10 = vpop.xlane.xlu1 %2799 }
0x1798   :  { %v2801_v26 = vcvt.f32.s32 %v2800_v10 }
0x179a   :  { %v2804_v16 = vadd.s32 %v2803_v15, %v2801_v26 }
0x179c   :  { %vm2805_vm1 = vcmp.eq.s32.totalorder %v7776_v14, %v2804_v16 }
0x179d   :  { %v6100_v31 = vsel %vm2805_vm1, 1.0, %v7704_v12 }
0x179e   :  { %v2808_v32 = vpack.c.bf16 %v6100_v31, %v6100_v31 }
0x17a0   :  { %6872 = vmatmul.mubr.msk.bf16.vlgmr.msra.gmra.mrb[88].mxu1 %vm122_vm0, %v2808_v32  ;;  %6886 = vmatmul.mubr.msk.bf16.vlgmr.msra.gmra.mrb[88].mxu0 %vm122_vm0, %v2808_v32 }
0x17a1   :  { %6890 = vmatpush3.bf16.msra.mxu1 %v8130_v28  ;;  %6898 = vmatpush3.bf16.msra.mxu0 %v8135_v1 }
0x17a2   :  { %6891 = vmatprep.subr.bf16.mxu1 %v7704_v12  ;;  %6893 = vmatprep.mubr.msk.bf16.mxu1 %vm7705_vm3, %v7704_v12 }
0x17a3   :  { %6899 = vmatprep.mubr.msk.bf16.mxu0 %vm7705_vm3, %v7704_v12  ;;  %6909 = vmatprep.subr.bf16.mxu0 %v7704_v12 }
0x17a5   :  { %6892 = vmatpush3.bf16.msra.mxu1 %v8143_v2 }
0x17a6   :  { %6903 = vmatprep.subr.bf16.mxu1 %v7704_v12 }
0x17a8   :  { %6894 = vmatmul.mubr.msk.bf16.vlgmr.msra.gmra.mrb[92].mxu1 %vm372_vm4, %v8320_v13  ;;  %6900 = vmatmul.mubr.msk.bf16.vlgmr.msra.gmra.mrb[92].mxu0 %vm122_vm0, %v2808_v32 }
0x17a9   :  { %6910 = vmatpush3.bf16.msra.mxu0 %v8103_v62  ;;  %6905 = vmatprep.mubr.msk.bf16.mxu1 %vm7705_vm3, %v7704_v12 }
0x17aa   :  { %6911 = vmatprep.mubr.msk.bf16.mxu0 %vm7705_vm3, %v7704_v12  ;;  %6923 = vmatprep.subr.bf16.mxu0 %v7704_v12 }
0x17ae   :  { %6904 = vmatpush3.bf16.xpose.msra.mxu1 %v8164_v3 }
0x17af   :  { %6915 = vmatprep.subr.bf16.mxu1 %v7704_v12 }
0x1873   :  { %v2886_v28 = vpop.f32.mrb[88].mxu1  ;;  %v2972_v1 = vpop.f32.mrb[88].mxu0 }
0x1874   :  { %v6103_v2 = vmul.f32 -1.442695, %v2886_v28  ;;  %v6873_v13 = vpop.f32.mrb[89].mxu1  ;;  %v6887_v33 = vpop.f32.mrb[89].mxu0  ;;  %v6106_v61 = vmul.f32 -1.442695, %v2972_v1 }
0x1875   :  { %v2889_v34 = vpop.f32.mrb[90].mxu1  ;;  %v2975_v35 = vpop.f32.mrb[90].mxu0 }
0x1876   :  { %7550 = vpow2.f32 %v6103_v2  ;;  %v6874_v39 = vpop.f32.mrb[91].mxu1  ;;  %v6888_v40 = vpop.f32.mrb[91].mxu0 }
0x1877   :  { %7552 = vpow2.f32 %v6106_v61 }
0x187b   :  { %v3018_v42 = vpop.f32.mrb[92].mxu1  ;;  %v3059_v43 = vpop.f32.mrb[92].mxu0 }
0x187c   :  { %v6895_v18 = vpop.f32.mrb[93].mxu1  ;;  %v6901_v44 = vpop.f32.mrb[93].mxu0  ;;  %v3019_v22 = vadd.f32 %v8171_v41, %v3018_v42 }
0x187d   :  { %v3021_v45 = vpop.f32.mrb[94].mxu1  ;;  %v3062_v23 = vpop.f32.mrb[94].mxu0  ;;  %v8449_v44 = vld [vmem:[%s9082_s2 + $0x30] sm:$0xff]  }
0x187e   :  { %v6896_v20 = vpop.f32.mrb[95].mxu1  ;;  %v6902_v48 = vpop.f32.mrb[95].mxu0  ;;  %v8458_v45 = vld [vmem:[%s9082_s2 + $0x38] sm:$0xff]  }
0x1880   :  { %v7551_v49 = vpop.eup %7550 }
0x1881   :  { %v2895_v52 = vadd.f32 1.0, %v7551_v49  ;;  %v7553_v53 = vpop.eup %7552 }
0x1882   :  { %v2981_v24 = vadd.f32 1.0, %v7553_v53 }
0x1883   :  { %7554 = vrcp.f32 %v2895_v52 }
0x1884   :  { %7556 = vrcp.f32 %v2981_v24 }
0x188d   :  { %v7555_v57 = vpop.eup %7554 }
0x188e   :  { %v3024_v58 = vmul.f32 %v7555_v57, %v3019_v22  ;;  %v7557_v60 = vpop.eup %7556  ;;  %v8482_v57 = vld [vmem:[%s9082_s2 + $0x48] sm:$0xff]  }
0x188f   :  { %v3066_v19 = vsub.f32 1.0, %v7557_v60  ;;  %v3068_v11 = vmul.f32 %v7557_v60, %v8316_v0 }
0x1890   :  { %v3060_v59 = vadd.f32 %v3059_v43, %v3024_v58 }
0x1892   :  { %7558 = vtanh.f32 %v3060_v59 }
0x189c   :  { %v7559_v27 = vpop.eup %7558 }
0x189d   :  { %v3067_v25 = vmul.f32 %v7559_v27, %v3066_v19 }
0x189f   :  { %v8413_v4 = vadd.f32 %v3068_v11, %v3067_v25 }
0x18a1   :  { %v8417_v5 = vpack.c.bf16 %v8413_v4, %v8413_v4 }
0x18a3   :  { %6906 = vmatmul.mubr.msk.bf16.vlgmr.msra.gmra.mrb[96].mxu1 %vm372_vm4, %v8417_v5 }
0x18a4   :  { %6916 = vmatpush3.bf16.msra.mxu1 %v8180_v51  ;;  %6919 = vmatprep.mubr.msk.bf16.mxu1 %vm7705_vm3, %v7704_v12 }
0x18a5   :  { %6917 = vmatprep.subr.bf16.mxu1 %v7704_v12 }
0x18a8   :  { %6918 = vmatpush3.bf16.msra.mxu1 %v8192_v21 }
0x18a9   :  { %6931 = vmatprep.subr.bf16.mxu1 %v7704_v12 }
0x18ab   :  { %6920 = vmatmul.mubr.msk.bf16.vlgmr.msra.gmra.mrb[100].mxu1 %vm372_vm4, %v8417_v5 }
0x18ac   :  { %6932 = vmatpush3.bf16.msra.mxu1 %v8243_v36  ;;  %6935 = vmatprep.mubr.msk.bf16.mxu1 %vm7705_vm3, %v7704_v12 }
0x18ad   :  { %6933 = vmatprep.subr.bf16.mxu1 %v7704_v12 }
0x18b0   :  { %6934 = vmatpush3.bf16.msra.mxu1 %v8250_v37 }
0x18b1   :  { %6953 = vmatprep.subr.bf16.mxu1 %v7704_v12 }
0x1976   :  { %v3108_v0 = vpop.f32.mrb[96].mxu1 }
0x1977   :  { %v3109_v6 = vadd.f32 %v3108_v0, %v8205_v55  ;;  %v6907_v7 = vpop.f32.mrb[97].mxu1 }
0x1978   :  { %v3111_v8 = vpop.f32.mrb[98].mxu1 }
0x1979   :  { %v6908_v9 = vpop.f32.mrb[99].mxu1  ;;  %v3114_v10 = vsel %vm2031_vm10, %v3109_v6, -inf }
0x197a   :  { %3115 = vmax.xlane.f32.xlu1 %v3114_v10 }
0x197e   :  { %v3204_v15 = vpop.f32.mrb[100].mxu1 }
0x197f   :  { %v6921_v26 = vpop.f32.mrb[101].mxu1 }
0x1980   :  { %v3207_v16 = vpop.f32.mrb[102].mxu1 }
0x1981   :  { %v6922_v31 = vpop.f32.mrb[103].mxu1 }
0x1a07   :  { %v3116_v32 = vpop.xlane.xlu1 %3115 }
0x1a08   :  { %v3117_v28 = vsub.f32 %v3109_v6, %v3116_v32 }
0x1a0a   :  { %v3118_v1 = vmul.f32 1.442695, %v3117_v28 }
0x1a0c   :  { %7560 = vpow2.f32 %v3118_v1 }
0x1a16   :  { %v7561_v2 = vpop.eup %7560 }
0x1a17   :  { %v3120_v13 = vsel %vm2031_vm10, %v7561_v2, 0.0 }
0x1a18   :  { %3121 = vadd.xlane.f32.xlu0 %v3120_v13  ;;  %v8510_v13 = vld [vmem:[%s9082_s2 + $0x50] sm:$0xff]  }
0x1aa5   :  { %v3122_v33 = vpop.xlane.xlu0 %3121 }
0x1aa6   :  { %7562 = vrcp.f32 %v3122_v33  ;;  %v8516_v33 = vld [vmem:[%s9084_s3 + $0x10] sm:$0xff]  }
0x1ab0   :  { %v7563_v34 = vpop.eup %7562 }
0x1ab1   :  { %v3124_v35 = vmul.f32 %v7563_v34, %v7561_v2  ;;  %v8528_v34 = vld [vmem:[%s9082_s2 + $0x58] sm:$0xff]  }
0x1ab3   :  { %v3125_v39 = vpack.c.bf16 %v3124_v35, %v3124_v35 }
0x1ab5   :  { %6912 = vmatmul.mubr.msk.bf16.vlgmr.msra.gmra.mrb[96].mxu0 %vm122_vm0, %v3125_v39 }
0x1ab6   :  { %6924 = vmatpush3.bf16.msra.mxu0 %v8213_v30  ;;  %6927 = vmatprep.mubr.msk.bf16.mxu0 %vm7705_vm3, %v7704_v12 }
0x1ab7   :  { %6925 = vmatprep.subr.bf16.mxu0 %v7704_v12 }
0x1aba   :  { %6926 = vmatpush3.bf16.msra.mxu0 %v8220_v17 }
0x1abb   :  { %6939 = vmatprep.subr.bf16.mxu0 %v7704_v12 }
0x1b88   :  { %v3163_v40 = vpop.f32.mrb[96].mxu0 }
0x1b89   :  { %v3169_v61 = vpack.c.bf16 %v3163_v40, %v3163_v40  ;;  %v6913_v42 = vpop.f32.mrb[97].mxu0 }
0x1b8a   :  { %v3166_v43 = vpop.f32.mrb[98].mxu0 }
0x1b8b   :  { %v6914_v18 = vpop.f32.mrb[99].mxu0  ;;  %6928 = vmatmul.mubr.msk.bf16.vlgmr.msra.gmra.mrb[100].mxu0 %vm372_vm4, %v3169_v61 }
0x1b8c   :  { %6940 = vmatpush3.bf16.msra.mxu0 %v8449_v44  ;;  %6943 = vmatprep.mubr.msk.bf16.mxu0 %vm7705_vm3, %v7704_v12 }
0x1b8d   :  { %6941 = vmatprep.subr.bf16.mxu0 %v7704_v12 }
0x1b90   :  { %6942 = vmatpush3.bf16.msra.mxu0 %v8458_v45 }
0x1b91   :  { %6947 = vmatprep.subr.bf16.mxu0 %v7704_v12 }
0x1b93   :  { %6944 = vmatmul.mubr.msk.bf16.vlgmr.msra.gmra.mrb[104].mxu0 %vm372_vm4, %v8417_v5 }
0x1b94   :  { %6948 = vmatpush3.bf16.msra.mxu0 %v8108_v29  ;;  %6949 = vmatprep.mubr.msk.bf16.mxu0 %vm7705_vm3, %v7704_v12  ;;  %v8473_v29 = vld [vmem:[%s9082_s2 + $0x40] sm:$0xff]  }
0x1b95   :  { %6967 = vmatprep.subr.bf16.mxu0 %v7704_v12 }
0x1c5e   :  { %v3247_v23 = vpop.f32.mrb[100].mxu0 }
0x1c5f   :  { %v3248_v20 = vadd.f32 %v3247_v23, %v3204_v15  ;;  %v6929_v48 = vpop.f32.mrb[101].mxu0 }
0x1c60   :  { %v3250_v49 = vpop.f32.mrb[102].mxu0 }
0x1c61   :  { %v3253_v52 = vadd.f32 %v8257_v38, %v3248_v20  ;;  %v6930_v53 = vpop.f32.mrb[103].mxu0 }
0x1c63   :  { %7564 = vtanh.f32 %v3253_v52 }
0x1c6d   :  { %v7565_v24 = vpop.eup %7564 }
0x1c6e   :  { %v3255_v22 = vpack.c.bf16 %v7565_v24, %v7565_v24 }
0x1c70   :  { %6936 = vmatmul.mubr.msk.bf16.vlgmr.msra.gmra.mrb[104].mxu1 %vm372_vm4, %v3255_v22 }
0x1c71   :  { %6954 = vmatpush3.bf16.msra.mxu1 %v8473_v29  ;;  %6957 = vmatprep.mubr.msk.bf16.mxu1 %vm7705_vm3, %v7704_v12 }
0x1c72   :  { %6955 = vmatprep.subr.bf16.mxu1 %v7704_v12 }
0x1c75   :  { %6956 = vmatpush3.bf16.msra.mxu1 %v8482_v57 }
0x1c76   :  { %6961 = vmatprep.subr.bf16.mxu1 %v7704_v12 }
0x1c78   :  { %6958 = vmatmul.mubr.msk.bf16.vlgmr.msra.gmra.mrb[108].mxu1 %vm372_vm4, %v8417_v5 }
0x1c79   :  { %6962 = vmatpush3.bf16.msra.mxu1 %v8113_v63  ;;  %6963 = vmatprep.mubr.msk.bf16.mxu1 %vm7705_vm3, %v7704_v12 }
0x1c7a   :  { %6975 = vmatprep.subr.bf16.mxu1 %v7704_v12 }
0x1d43   :  { %v3293_v58 = vpop.f32.mrb[104].mxu1 }
0x1d44   :  { %v8493_v59 = vadd.f32 %v8276_v46, %v3293_v58  ;;  %v6937_v60 = vpop.f32.mrb[105].mxu1 }
0x1d45   :  { %v3296_v19 = vpop.f32.mrb[106].mxu1 }
0x1d46   :  { %v6938_v27 = vpop.f32.mrb[107].mxu1  ;;  %v3299_v11 = vsel %vm2031_vm10, %v8493_v59, -inf }
0x1d47   :  { %3300 = vmax.xlane.f32.xlu1 %v3299_v11 }
0x1dd4   :  { %v8497_v25 = vpop.xlane.xlu1 %3300 }
0x1dd5   :  { %vm3311_vm2 = vcmp.ge.f32.partialorder %v8493_v59, %v8497_v25 }
0x1dd6   :  { %v3312_v63 = vsel %vm3311_vm2, %v7776_v14, 16 }
0x1dd7   :  { %v3313_v0 = vsel %vm2031_vm10, %v3312_v63, 2147483647 }
0x1dd8   :  { %v3315_v6 = vshra.s32 %v3313_v0, 16  ;;  %v3314_v8 = vand.u32 65535, %v3313_v0 }
0x1dda   :  { %v3317_v7 = vcvt.s32.f32 %v3315_v6  ;;  %v3316_v10 = vcvt.s32.f32 %v3314_v8 }
0x1ddc   :  { %3318 = vmin.xlane.f32.xlu0 %v3317_v7 }
0x1e69   :  { %v3319_v9 = vpop.xlane.xlu0 %3318 }
0x1e6a   :  { %vm3320_vm5 = vcmp.eq.f32.partialorder %v3317_v7, %v3319_v9  ;;  %v3325_v26 = vcvt.f32.s32 %v3319_v9 }
0x1e6b   :  { %v3321_v15 = vsel %vm3320_vm5, %v3316_v10, inf }
0x1e6c   :  { %3322 = vmin.xlane.f32.xlu1 %v3321_v15  ;;  %v3326_v31 = vshll.u32 %v3325_v26, 16 }
0x1ef9   :  { %v3323_v16 = vpop.xlane.xlu1 %3322 }
0x1efa   :  { %v3324_v32 = vcvt.f32.s32 %v3323_v16 }
0x1efc   :  { %v3327_v28 = vadd.s32 %v3326_v31, %v3324_v32 }
0x1efe   :  { %vm3328_vm6 = vcmp.eq.s32.totalorder %v7776_v14, %v3327_v28 }
0x1eff   :  { %v6114_v1 = vsel %vm3328_vm6, 1.0, %v7704_v12 }
0x1f00   :  { %v3331_v2 = vpack.c.bf16 %v6114_v1, %v6114_v1 }
0x1f02   :  { %6950 = vmatmul.mubr.msk.bf16.vlgmr.msra.gmra.mrb[104].mxu0 %vm122_vm0, %v3331_v2  ;;  %6964 = vmatmul.mubr.msk.bf16.vlgmr.msra.gmra.mrb[108].mxu1 %vm122_vm0, %v3331_v2 }
0x1f03   :  { %6968 = vmatpush3.bf16.msra.mxu0 %v8510_v13  ;;  %6976 = vmatpush3.bf16.msra.mxu1 %v8516_v33 }
0x1f04   :  { %6969 = vmatprep.subr.bf16.mxu0 %v7704_v12  ;;  %6971 = vmatprep.mubr.msk.bf16.mxu0 %vm7705_vm3, %v7704_v12 }
0x1f05   :  { %6977 = vmatprep.mubr.msk.bf16.mxu1 %vm7705_vm3, %v7704_v12  ;;  %6987 = vmatprep.subr.bf16.mxu1 %v7704_v12 }
0x1f07   :  { %6970 = vmatpush3.bf16.msra.mxu0 %v8528_v34 }
0x1f08   :  { %6981 = vmatprep.subr.bf16.mxu0 %v7704_v12 }
0x1f0a   :  { %6972 = vmatmul.mubr.msk.bf16.vlgmr.msra.gmra.mrb[108].mxu0 %vm372_vm4, %v8417_v5  ;;  %6978 = vmatmul.mubr.msk.bf16.vlgmr.msra.gmra.mrb[112].mxu1 %vm122_vm0, %v3331_v2 }
0x1f0b   :  { %6988 = vmatpush3.bf16.msra.mxu1 %v8103_v62  ;;  %6983 = vmatprep.mubr.msk.bf16.mxu0 %vm7705_vm3, %v7704_v12 }
0x1f0c   :  { %6989 = vmatprep.mubr.msk.bf16.mxu1 %vm7705_vm3, %v7704_v12  ;;  %7001 = vmatprep.subr.bf16.mxu1 %v7704_v12 }
0x1f10   :  { %6982 = vmatpush3.bf16.xpose.msra.mxu0 %v8164_v3 }
0x1f11   :  { %6993 = vmatprep.subr.bf16.mxu0 %v7704_v12 }
0x1fd5   :  { %v3409_v35 = vpop.f32.mrb[104].mxu0  ;;  %v3495_v39 = vpop.f32.mrb[108].mxu1 }
0x1fd6   :  { %v6117_v40 = vmul.f32 -1.442695, %v3409_v35  ;;  %v6951_v5 = vpop.f32.mrb[105].mxu0  ;;  %v6965_v61 = vpop.f32.mrb[109].mxu1  ;;  %v6120_v20 = vmul.f32 -1.442695, %v3495_v39 }
0x1fd7   :  { %v3412_v42 = vpop.f32.mrb[106].mxu0  ;;  %v3498_v43 = vpop.f32.mrb[110].mxu1 }
0x1fd8   :  { %7566 = vpow2.f32 %v6117_v40  ;;  %v6952_v18 = vpop.f32.mrb[107].mxu0  ;;  %v6966_v23 = vpop.f32.mrb[111].mxu1 }
0x1fd9   :  { %7568 = vpow2.f32 %v6120_v20 }
0x1fdd   :  { %v3541_v48 = vpop.f32.mrb[108].mxu0  ;;  %v3582_v49 = vpop.f32.mrb[112].mxu1 }
0x1fde   :  { %v6973_v52 = vpop.f32.mrb[109].mxu0  ;;  %v6979_v53 = vpop.f32.mrb[113].mxu1  ;;  %v3542_v0 = vadd.f32 %v8171_v41, %v3541_v48 }
0x1fdf   :  { %v3544_v24 = vpop.f32.mrb[110].mxu0  ;;  %v3585_v22 = vpop.f32.mrb[114].mxu1 }
0x1fe0   :  { %v6974_v58 = vpop.f32.mrb[111].mxu0  ;;  %v6980_v60 = vpop.f32.mrb[115].mxu1 }
0x1fe2   :  { %v7567_v19 = vpop.eup %7566 }
0x1fe3   :  { %v3418_v27 = vadd.f32 1.0, %v7567_v19  ;;  %v7569_v11 = vpop.eup %7568 }
0x1fe4   :  { %v3504_v63 = vadd.f32 1.0, %v7569_v11 }
0x1fe5   :  { %7570 = vrcp.f32 %v3418_v27 }
0x1fe6   :  { %7572 = vrcp.f32 %v3504_v63 }
0x1fef   :  { %v7571_v6 = vpop.eup %7570 }
0x1ff0   :  { %v3547_v7 = vmul.f32 %v7571_v6, %v3542_v0  ;;  %v7573_v9 = vpop.eup %7572 }
0x1ff1   :  { %v3589_v10 = vsub.f32 1.0, %v7573_v9  ;;  %v3591_v26 = vmul.f32 %v7573_v9, %v8413_v4 }
0x1ff2   :  { %v3583_v8 = vadd.f32 %v3582_v49, %v3547_v7 }
0x1ff4   :  { %7574 = vtanh.f32 %v3583_v8 }
0x1ffe   :  { %v7575_v15 = vpop.eup %7574 }
0x1fff   :  { %v3590_v16 = vmul.f32 %v7575_v15, %v3589_v10 }
0x2001   :  { %v8545_v31 = vadd.f32 %v3591_v26, %v3590_v16 }
0x2003   :  { %v8549_v32 = vpack.c.bf16 %v8545_v31, %v8545_v31 }
0x2005   :  { %6984 = vmatmul.mubr.msk.bf16.vlgmr.msra.gmra.mrb[112].mxu0 %vm372_vm4, %v8549_v32 }
0x2006   :  { %6994 = vmatpush3.bf16.msra.mxu0 %v8180_v51  ;;  %6997 = vmatprep.mubr.msk.bf16.mxu0 %vm7705_vm3, %v7704_v12 }
0x2007   :  { %6995 = vmatprep.subr.bf16.mxu0 %v7704_v12 }
0x200a   :  { %6996 = vmatpush3.bf16.msra.mxu0 %v8192_v21 }
0x200b   :  { %7009 = vmatprep.subr.bf16.mxu0 %v7704_v12 }
0x200d   :  { %6998 = vmatmul.mubr.msk.bf16.vlgmr.msra.gmra.mrb[116].mxu0 %vm372_vm4, %v8549_v32 }
0x200e   :  { %7010 = vmatpush3.bf16.msra.mxu0 %v8243_v36  ;;  %7013 = vmatprep.mubr.msk.bf16.mxu0 %vm7705_vm3, %v7704_v12 }
0x200f   :  { %7011 = vmatprep.subr.bf16.mxu0 %v7704_v12 }
0x2012   :  { %7012 = vmatpush3.bf16.msra.mxu0 %v8250_v37 }
0x2013   :  { %7031 = vmatprep.subr.bf16.mxu0 %v7704_v12 }
0x20d8   :  { %v3631_v41 = vpop.f32.mrb[112].mxu0 }
0x20d9   :  { %v3632_v51 = vadd.f32 %v3631_v41, %v8205_v55  ;;  %v6985_v21 = vpop.f32.mrb[113].mxu0 }
0x20da   :  { %v3634_v4 = vpop.f32.mrb[114].mxu0 }
0x20db   :  { %v6986_v28 = vpop.f32.mrb[115].mxu0  ;;  %v3637_v1 = vsel %vm2031_vm10, %v3632_v51, -inf }
0x20dc   :  { %3638 = vmax.xlane.f32.xlu0 %v3637_v1 }
0x20e0   :  { %v3727_v2 = vpop.f32.mrb[116].mxu0 }
0x20e1   :  { %v6999_v36 = vpop.f32.mrb[117].mxu0 }
0x20e2   :  { %v3730_v35 = vpop.f32.mrb[118].mxu0 }
0x20e3   :  { %v7000_v39 = vpop.f32.mrb[119].mxu0 }
0x2169   :  { %v3639_v40 = vpop.xlane.xlu0 %3638 }
0x216a   :  { %v3640_v5 = vsub.f32 %v3632_v51, %v3639_v40 }
0x216c   :  { %v3641_v61 = vmul.f32 1.442695, %v3640_v5 }
0x216e   :  { %7576 = vpow2.f32 %v3641_v61 }
0x2178   :  { %v7577_v37 = vpop.eup %7576 }
0x2179   :  { %v3643_v42 = vsel %vm2031_vm10, %v7577_v37, 0.0 }
0x217a   :  { %3644 = vadd.xlane.f32.xlu1 %v3643_v42 }
0x2207   :  { %v3645_v43 = vpop.xlane.xlu1 %3644 }
0x2208   :  { %7578 = vrcp.f32 %v3645_v43 }
0x2212   :  { %v7579_v18 = vpop.eup %7578 }
0x2213   :  { %v3647_v23 = vmul.f32 %v7579_v18, %v7577_v37 }
0x2215   :  { %v3648_v20 = vpack.c.bf16 %v3647_v23, %v3647_v23 }
0x2217   :  { %6990 = vmatmul.mubr.msk.bf16.vlgmr.msra.gmra.mrb[116].mxu1 %vm122_vm0, %v3648_v20 }
0x2218   :  { %7002 = vmatpush3.bf16.msra.mxu1 %v8213_v30  ;;  %7005 = vmatprep.mubr.msk.bf16.mxu1 %vm7705_vm3, %v7704_v12  ;;  %v8589_v30 = vld [vmem:[%s9084_s3] sm:$0xff]  }
0x2219   :  { %7003 = vmatprep.subr.bf16.mxu1 %v7704_v12 }
0x221c   :  { %7004 = vmatpush3.bf16.msra.mxu1 %v8220_v17 }
0x221d   :  { %7017 = vmatprep.subr.bf16.mxu1 %v7704_v12 }
0x22ea   :  { %v3686_v48 = vpop.f32.mrb[116].mxu1 }
0x22eb   :  { %v3692_v49 = vpack.c.bf16 %v3686_v48, %v3686_v48  ;;  %v6991_v52 = vpop.f32.mrb[117].mxu1 }
0x22ec   :  { %v3689_v53 = vpop.f32.mrb[118].mxu1 }
0x22ed   :  { %v6992_v24 = vpop.f32.mrb[119].mxu1  ;;  %7006 = vmatmul.mubr.msk.bf16.vlgmr.msra.gmra.mrb[120].mxu1 %vm372_vm4, %v3692_v49 }
0x22ee   :  { %7018 = vmatpush3.bf16.msra.mxu1 %v8449_v44  ;;  %7021 = vmatprep.mubr.msk.bf16.mxu1 %vm7705_vm3, %v7704_v12 }
0x22ef   :  { %7019 = vmatprep.subr.bf16.mxu1 %v7704_v12 }
0x22f2   :  { %7020 = vmatpush3.bf16.msra.mxu1 %v8458_v45 }
0x22f3   :  { %7025 = vmatprep.subr.bf16.mxu1 %v7704_v12 }
0x22f5   :  { %7022 = vmatmul.mubr.msk.bf16.vlgmr.msra.gmra.mrb[124].mxu1 %vm372_vm4, %v8549_v32 }
0x22f6   :  { %7026 = vmatpush3.bf16.msra.mxu1 %v8589_v30  ;;  %7027 = vmatprep.mubr.msk.bf16.mxu1 %vm7705_vm3, %v7704_v12 }
0x22f7   :  { %7045 = vmatprep.subr.bf16.mxu1 %v7704_v12 }
0x23c0   :  { %v3770_v17 = vpop.f32.mrb[120].mxu1 }
0x23c1   :  { %v3771_v22 = vadd.f32 %v3770_v17, %v3727_v2  ;;  %v7007_v58 = vpop.f32.mrb[121].mxu1 }
0x23c2   :  { %v3773_v60 = vpop.f32.mrb[122].mxu1 }
0x23c3   :  { %v3776_v19 = vadd.f32 %v8257_v38, %v3771_v22  ;;  %v7008_v27 = vpop.f32.mrb[123].mxu1  ;;  %v8608_v38 = vld [vmem:[%s9084_s3 + $0x8] sm:$0xff]  }
0x23c5   :  { %7580 = vtanh.f32 %v3776_v19 }
0x23cf   :  { %v7581_v11 = vpop.eup %7580 }
0x23d0   :  { %v3778_v63 = vpack.c.bf16 %v7581_v11, %v7581_v11 }
0x23d2   :  { %7014 = vmatmul.mubr.msk.bf16.vlgmr.msra.gmra.mrb[120].mxu0 %vm372_vm4, %v3778_v63 }
0x23d3   :  { %7032 = vmatpush3.bf16.msra.mxu0 %v8473_v29  ;;  %7035 = vmatprep.mubr.msk.bf16.mxu0 %vm7705_vm3, %v7704_v12 }
0x23d4   :  { %7033 = vmatprep.subr.bf16.mxu0 %v7704_v12 }
0x23d7   :  { %7034 = vmatpush3.bf16.msra.mxu0 %v8482_v57 }
0x23d8   :  { %7039 = vmatprep.subr.bf16.mxu0 %v7704_v12 }
0x23da   :  { %7036 = vmatmul.mubr.msk.bf16.vlgmr.msra.gmra.mrb[124].mxu0 %vm372_vm4, %v8549_v32 }
0x23db   :  { %7040 = vmatpush3.bf16.msra.mxu0 %v8608_v38  ;;  %7041 = vmatprep.mubr.msk.bf16.mxu0 %vm7705_vm3, %v7704_v12 }
0x23dc   :  { %7053 = vmatprep.subr.bf16.mxu0 %v7704_v12 }
0x24a5   :  { %v3816_v0 = vpop.f32.mrb[120].mxu0 }
0x24a6   :  { %v8615_v6 = vadd.f32 %v8276_v46, %v3816_v0  ;;  %v7015_v7 = vpop.f32.mrb[121].mxu0 }
0x24a7   :  { %v3819_v8 = vpop.f32.mrb[122].mxu0  ;;  %v8653_v7 = vld [vmem:[%s9083_s5 + $0x1] ss:$0 sm:$0xff] }
0x24a8   :  { %v7016_v9 = vpop.f32.mrb[123].mxu0  ;;  %v3822_v10 = vsel %vm2031_vm10, %v8615_v6, -inf }
0x24a9   :  { %3823 = vmax.xlane.f32.xlu0 %v3822_v10 }
0x2536   :  { %v8619_v15 = vpop.xlane.xlu0 %3823 }
0x2537   :  { %vm3834_vm7 = vcmp.ge.f32.partialorder %v8615_v6, %v8619_v15 }
0x2538   :  { %v3835_v26 = vsel %vm3834_vm7, %v7776_v14, 16  ;;  %vm5960_vm7 = vcmask 654336  }
0x2539   :  { %v3836_v16 = vsel %vm2031_vm10, %v3835_v26, 2147483647 }
0x253a   :  { %v3838_v41 = vshra.s32 %v3836_v16, 16  ;;  %v3837_v46 = vand.u32 65535, %v3836_v16 }
0x253c   :  { %v3840_v51 = vcvt.s32.f32 %v3838_v41  ;;  %v3839_v4 = vcvt.s32.f32 %v3837_v46 }
0x253e   :  { %3841 = vmin.xlane.f32.xlu1 %v3840_v51 }
0x25cb   :  { %v3842_v21 = vpop.xlane.xlu1 %3841 }
0x25cc   :  { %vm3843_vm8 = vcmp.eq.f32.partialorder %v3840_v51, %v3842_v21  ;;  %v3848_v1 = vcvt.f32.s32 %v3842_v21 }
0x25cd   :  { %v3844_v28 = vsel %vm3843_vm8, %v3839_v4, inf  ;;  %vm5962_vm8 = vcmask 785408  }
0x25ce   :  { %3845 = vmin.xlane.f32.xlu0 %v3844_v28  ;;  %v3849_v36 = vshll.u32 %v3848_v1, 16  ;;  %v8668_v1 = vld [vmem:[%s9085_s4 + $0x10] sm:$0xff]  }
0x265b   :  { %v3846_v2 = vpop.xlane.xlu0 %3845 }
0x265c   :  { %v3847_v35 = vcvt.f32.s32 %v3846_v2  ;;  %v8686_v2 = vld [vmem:[%s9085_s4 + $0x20] sm:$0xff]  }
0x265e   :  { %v3850_v39 = vadd.s32 %v3849_v36, %v3847_v35  ;;  %v8695_v36 = vld [vmem:[%s9085_s4 + $0x28] sm:$0xff]  }
0x2660   :  { %vm3851_vm9 = vcmp.eq.s32.totalorder %v7776_v14, %v3850_v39 }
0x2661   :  { %v6128_v40 = vsel %vm3851_vm9, 1.0, %v7704_v12  ;;  %vm5964_vm9 = vcmask 916480  }
0x2662   :  { %v3854_v5 = vpack.c.bf16 %v6128_v40, %v6128_v40 }
0x2664   :  { %7028 = vmatmul.mubr.msk.bf16.vlgmr.msra.gmra.mrb[124].mxu1 %vm122_vm0, %v3854_v5  ;;  %7042 = vmatmul.mubr.msk.bf16.vlgmr.msra.gmra.mrb[124].mxu0 %vm122_vm0, %v3854_v5 }
0x2665   :  { %7046 = vmatpush3.bf16.msra.mxu1 %v8510_v13  ;;  %7054 = vmatpush3.bf16.msra.mxu0 %v8516_v33 }
0x2666   :  { %7047 = vmatprep.subr.bf16.mxu1 %v7704_v12  ;;  %7049 = vmatprep.mubr.msk.bf16.mxu1 %vm7705_vm3, %v7704_v12 }
0x2667   :  { %7055 = vmatprep.mubr.msk.bf16.mxu0 %vm7705_vm3, %v7704_v12  ;;  %7065 = vmatprep.subr.bf16.mxu0 %v7704_v12 }
0x2669   :  { %7048 = vmatpush3.bf16.msra.mxu1 %v8528_v34 }
0x266a   :  { %7059 = vmatprep.subr.bf16.mxu1 %v7704_v12 }
0x266c   :  { %7050 = vmatmul.mubr.msk.bf16.vlgmr.msra.gmra.mrb[128].mxu1 %vm372_vm4, %v8549_v32  ;;  %7056 = vmatmul.mubr.msk.bf16.vlgmr.msra.gmra.mrb[128].mxu0 %vm122_vm0, %v3854_v5 }
0x266d   :  { %7066 = vmatpush3.bf16.msra.mxu0 %v8103_v62  ;;  %7061 = vmatprep.mubr.msk.bf16.mxu1 %vm7705_vm3, %v7704_v12 }
0x266e   :  { %7067 = vmatprep.mubr.msk.bf16.mxu0 %vm7705_vm3, %v7704_v12  ;;  %7079 = vmatprep.subr.bf16.mxu0 %v7704_v12 }
0x2672   :  { %7060 = vmatpush3.bf16.xpose.msra.mxu1 %v8164_v3 }
0x2673   :  { %7071 = vmatprep.subr.bf16.mxu1 %v7704_v12 }
0x2737   :  { %v3932_v61 = vpop.f32.mrb[124].mxu1  ;;  %v4018_v37 = vpop.f32.mrb[124].mxu0 }
0x2738   :  { %v6131_v42 = vmul.f32 -1.442695, %v3932_v61  ;;  %v7029_v32 = vpop.f32.mrb[125].mxu1  ;;  %v7043_v43 = vpop.f32.mrb[125].mxu0  ;;  %v6134_v49 = vmul.f32 -1.442695, %v4018_v37 }
0x2739   :  { %v3935_v18 = vpop.f32.mrb[126].mxu1  ;;  %v4021_v23 = vpop.f32.mrb[126].mxu0 }
0x273a   :  { %7582 = vpow2.f32 %v6131_v42  ;;  %v7030_v20 = vpop.f32.mrb[127].mxu1  ;;  %v7044_v48 = vpop.f32.mrb[127].mxu0 }
0x273b   :  { %7584 = vpow2.f32 %v6134_v49 }
0x273f   :  { %v4064_v52 = vpop.f32.mrb[128].mxu1  ;;  %v4105_v53 = vpop.f32.mrb[128].mxu0 }
0x2740   :  { %v7051_v24 = vpop.f32.mrb[129].mxu1  ;;  %v7057_v17 = vpop.f32.mrb[129].mxu0  ;;  %v4065_v8 = vadd.f32 %v8653_v7, %v4064_v52 }
0x2741   :  { %v4067_v22 = vpop.f32.mrb[130].mxu1  ;;  %v4108_v58 = vpop.f32.mrb[130].mxu0 }
0x2742   :  { %v7052_v60 = vpop.f32.mrb[131].mxu1  ;;  %v7058_v19 = vpop.f32.mrb[131].mxu0  ;;  %v8706_v58 = vld [vmem:[%s9085_s4] sm:$0xff]  }
0x2743   :  { %v8715_v60 = vld [vmem:[%s9085_s4 + $0x8] sm:$0xff]  }
0x2744   :  { %v7583_v27 = vpop.eup %7582 }
0x2745   :  { %v3941_v11 = vadd.f32 1.0, %v7583_v27  ;;  %v7585_v63 = vpop.eup %7584 }
0x2746   :  { %v4027_v0 = vadd.f32 1.0, %v7585_v63 }
0x2747   :  { %7586 = vrcp.f32 %v3941_v11 }
0x2748   :  { %7588 = vrcp.f32 %v4027_v0 }
0x2751   :  { %v7587_v9 = vpop.eup %7586 }
0x2752   :  { %v4070_v10 = vmul.f32 %v7587_v9, %v4065_v8  ;;  %v7589_v16 = vpop.eup %7588 }
0x2753   :  { %v4112_v41 = vsub.f32 1.0, %v7589_v16  ;;  %v4114_v46 = vmul.f32 %v7589_v16, %v8545_v31  ;;  %v8677_v31 = vld [vmem:[%s9085_s4 + $0x18] sm:$0xff]   ;;  %v8735_v16 = vld [vmem:[%s9083_s5 + $0x2] ss:$0 sm:$0xff] }
0x2754   :  { %v4106_v26 = vadd.f32 %v4105_v53, %v4070_v10 }
0x2756   :  { %7590 = vtanh.f32 %v4106_v26 }
0x2760   :  { %v7591_v51 = vpop.eup %7590 }
0x2761   :  { %v4113_v21 = vmul.f32 %v7591_v51, %v4112_v41 }
0x2763   :  { %v8657_v4 = vadd.f32 %v4114_v46, %v4113_v21 }
0x2765   :  { %v8661_v28 = vpack.c.bf16 %v8657_v4, %v8657_v4 }
0x2767   :  { %7062 = vmatmul.mubr.msk.bf16.vlgmr.msra.gmra.mrb[132].mxu1 %vm372_vm4, %v8661_v28 }
0x2768   :  { %7072 = vmatpush3.bf16.msra.mxu1 %v8668_v1  ;;  %7075 = vmatprep.mubr.msk.bf16.mxu1 %vm7705_vm3, %v7704_v12 }
0x2769   :  { %7073 = vmatprep.subr.bf16.mxu1 %v7704_v12 }
0x276c   :  { %7074 = vmatpush3.bf16.msra.mxu1 %v8677_v31 }
0x276d   :  { %7087 = vmatprep.subr.bf16.mxu1 %v7704_v12 }
0x276f   :  { %7076 = vmatmul.mubr.msk.bf16.vlgmr.msra.gmra.mrb[136].mxu1 %vm372_vm4, %v8661_v28 }
0x2770   :  { %7088 = vmatpush3.bf16.msra.mxu1 %v8686_v2  ;;  %7091 = vmatprep.mubr.msk.bf16.mxu1 %vm7705_vm3, %v7704_v12 }
0x2771   :  { %7089 = vmatprep.subr.bf16.mxu1 %v7704_v12 }
0x2774   :  { %7090 = vmatpush3.bf16.msra.mxu1 %v8695_v36 }
0x2775   :  { %7109 = vmatprep.subr.bf16.mxu1 %v7704_v12 }
0x283a   :  { %v4154_v35 = vpop.f32.mrb[132].mxu1 }
0x283b   :  { %v4155_v39 = vadd.f32 %v4154_v35, %v8205_v55  ;;  %v7063_v40 = vpop.f32.mrb[133].mxu1 }
0x283c   :  { %v4157_v5 = vpop.f32.mrb[134].mxu1 }
0x283d   :  { %v7064_v61 = vpop.f32.mrb[135].mxu1  ;;  %v4160_v37 = vsel %vm2031_vm10, %v4155_v39, -inf }
0x283e   :  { %4161 = vmax.xlane.f32.xlu1 %v4160_v37 }
0x2842   :  { %v4250_v42 = vpop.f32.mrb[136].mxu1 }
0x2843   :  { %v7077_v32 = vpop.f32.mrb[137].mxu1 }
0x2844   :  { %v4253_v43 = vpop.f32.mrb[138].mxu1 }
0x2845   :  { %v7078_v18 = vpop.f32.mrb[139].mxu1 }
0x28cb   :  { %v4162_v23 = vpop.xlane.xlu1 %4161 }
0x28cc   :  { %v4163_v20 = vsub.f32 %v4155_v39, %v4162_v23  ;;  %v8754_v39 = vld [vmem:[%s9083_s5 + $0x3] ss:$0 sm:$0xff] }
0x28ce   :  { %v4164_v48 = vmul.f32 1.442695, %v4163_v20 }
0x28d0   :  { %7592 = vpow2.f32 %v4164_v48 }
0x28da   :  { %v7593_v49 = vpop.eup %7592 }
0x28db   :  { %v4166_v52 = vsel %vm2031_vm10, %v7593_v49, 0.0 }
0x28dc   :  { %4167 = vadd.xlane.f32.xlu0 %v4166_v52 }
0x2969   :  { %v4168_v53 = vpop.xlane.xlu0 %4167 }
0x296a   :  { %7594 = vrcp.f32 %v4168_v53 }
0x2974   :  { %v7595_v24 = vpop.eup %7594 }
0x2975   :  { %v4170_v17 = vmul.f32 %v7595_v24, %v7593_v49 }
0x2977   :  { %v4171_v22 = vpack.c.bf16 %v4170_v17, %v4170_v17 }
0x2979   :  { %7068 = vmatmul.mubr.msk.bf16.vlgmr.msra.gmra.mrb[132].mxu0 %vm122_vm0, %v4171_v22 }
0x297a   :  { %7080 = vmatpush3.bf16.msra.mxu0 %v8706_v58  ;;  %7083 = vmatprep.mubr.msk.bf16.mxu0 %vm7705_vm3, %v7704_v12 }
0x297b   :  { %7081 = vmatprep.subr.bf16.mxu0 %v7704_v12 }
0x297e   :  { %7082 = vmatpush3.bf16.msra.mxu0 %v8715_v60 }
0x297f   :  { %7095 = vmatprep.subr.bf16.mxu0 %v7704_v12 }
0x2a4c   :  { %v4209_v19 = vpop.f32.mrb[132].mxu0 }
0x2a4d   :  { %v4215_v27 = vpack.c.bf16 %v4209_v19, %v4209_v19  ;;  %v7069_v11 = vpop.f32.mrb[133].mxu0 }
0x2a4e   :  { %v4212_v63 = vpop.f32.mrb[134].mxu0 }
0x2a4f   :  { %v7070_v0 = vpop.f32.mrb[135].mxu0  ;;  %7084 = vmatmul.mubr.msk.bf16.vlgmr.msra.gmra.mrb[136].mxu0 %vm372_vm4, %v4215_v27 }
0x2a50   :  { %7096 = vmatpush3.bf16.msra.mxu0 %v8449_v44  ;;  %7099 = vmatprep.mubr.msk.bf16.mxu0 %vm7705_vm3, %v7704_v12 }
0x2a51   :  { %7097 = vmatprep.subr.bf16.mxu0 %v7704_v12 }
0x2a54   :  { %7098 = vmatpush3.bf16.msra.mxu0 %v8458_v45 }
0x2a55   :  { %7103 = vmatprep.subr.bf16.mxu0 %v7704_v12 }
0x2a57   :  { %7100 = vmatmul.mubr.msk.bf16.vlgmr.msra.gmra.mrb[140].mxu0 %vm372_vm4, %v8661_v28 }
0x2a58   :  { %7104 = vmatpush3.bf16.msra.mxu0 %v8589_v30  ;;  %7105 = vmatprep.mubr.msk.bf16.mxu0 %vm7705_vm3, %v7704_v12 }
0x2a59   :  { %7123 = vmatprep.subr.bf16.mxu0 %v7704_v12 }
0x2b22   :  { %v4293_v8 = vpop.f32.mrb[136].mxu0 }
0x2b23   :  { %v4294_v9 = vadd.f32 %v4293_v8, %v4250_v42  ;;  %v7085_v10 = vpop.f32.mrb[137].mxu0 }
0x2b24   :  { %v4296_v26 = vpop.f32.mrb[138].mxu0 }
0x2b25   :  { %v4299_v41 = vadd.f32 %v8735_v16, %v4294_v9  ;;  %v7086_v51 = vpop.f32.mrb[139].mxu0 }
0x2b27   :  { %7596 = vtanh.f32 %v4299_v41 }
0x2b31   :  { %v7597_v46 = vpop.eup %7596 }
0x2b32   :  { %v4301_v21 = vpack.c.bf16 %v7597_v46, %v7597_v46 }
0x2b34   :  { %7092 = vmatmul.mubr.msk.bf16.vlgmr.msra.gmra.mrb[140].mxu1 %vm372_vm4, %v4301_v21 }
0x2b35   :  { %7110 = vmatpush3.bf16.msra.mxu1 %v8473_v29  ;;  %7113 = vmatprep.mubr.msk.bf16.mxu1 %vm7705_vm3, %v7704_v12 }
0x2b36   :  { %7111 = vmatprep.subr.bf16.mxu1 %v7704_v12 }
0x2b39   :  { %7112 = vmatpush3.bf16.msra.mxu1 %v8482_v57 }
0x2b3a   :  { %7117 = vmatprep.subr.bf16.mxu1 %v7704_v12 }
0x2b3c   :  { %7114 = vmatmul.mubr.msk.bf16.vlgmr.msra.gmra.mrb[144].mxu1 %vm372_vm4, %v8661_v28 }
0x2b3d   :  { %7118 = vmatpush3.bf16.msra.mxu1 %v8608_v38  ;;  %7119 = vmatprep.mubr.msk.bf16.mxu1 %vm7705_vm3, %v7704_v12 }
0x2b3e   :  { %7131 = vmatprep.subr.bf16.mxu1 %v7704_v12 }
0x2c07   :  { %v4339_v35 = vpop.f32.mrb[140].mxu1 }
0x2c08   :  { %v8757_v40 = vadd.f32 %v8754_v39, %v4339_v35  ;;  %v7093_v5 = vpop.f32.mrb[141].mxu1 }
0x2c09   :  { %v4342_v61 = vpop.f32.mrb[142].mxu1 }
0x2c0a   :  { %v7094_v37 = vpop.f32.mrb[143].mxu1  ;;  %v4345_v42 = vsel %vm2031_vm10, %v8757_v40, -inf }
0x2c0b   :  { %4346 = vmax.xlane.f32.xlu1 %v4345_v42 }
0x2c98   :  { %v8761_v32 = vpop.xlane.xlu1 %4346 }
0x2c99   :  { %vm4357_vm11 = vcmp.ge.f32.partialorder %v8757_v40, %v8761_v32 }
0x2c9a   :  { %v4358_v43 = vsel %vm4357_vm11, %v7776_v14, 16 }
0x2c9b   :  { %v4359_v18 = vsel %vm2031_vm10, %v4358_v43, 2147483647 }
0x2c9c   :  { %v4361_v23 = vshra.s32 %v4359_v18, 16  ;;  %v4360_v48 = vand.u32 65535, %v4359_v18 }
0x2c9e   :  { %v4363_v20 = vcvt.s32.f32 %v4361_v23  ;;  %v4362_v52 = vcvt.s32.f32 %v4360_v48 }
0x2ca0   :  { %4364 = vmin.xlane.f32.xlu0 %v4363_v20 }
0x2d2d   :  { %v4365_v49 = vpop.xlane.xlu0 %4364 }
0x2d2e   :  { %vm4366_vm12 = vcmp.eq.f32.partialorder %v4363_v20, %v4365_v49  ;;  %v4371_v24 = vcvt.f32.s32 %v4365_v49 }
0x2d2f   :  { %v4367_v53 = vsel %vm4366_vm12, %v4362_v52, inf }
0x2d30   :  { %4368 = vmin.xlane.f32.xlu1 %v4367_v53  ;;  %v4372_v22 = vshll.u32 %v4371_v24, 16 }
0x2dbd   :  { %v4369_v17 = vpop.xlane.xlu1 %4368 }
0x2dbe   :  { %v4370_v19 = vcvt.f32.s32 %v4369_v17 }
0x2dc0   :  { %v4373_v27 = vadd.s32 %v4372_v22, %v4370_v19 }
0x2dc2   :  { %vm4374_vm13 = vcmp.eq.s32.totalorder %v7776_v14, %v4373_v27 }
0x2dc3   :  { %v6142_v11 = vsel %vm4374_vm13, 1.0, %v7704_v12 }
0x2dc4   :  { %v4377_v63 = vpack.c.bf16 %v6142_v11, %v6142_v11 }
0x2dc6   :  { %7106 = vmatmul.mubr.msk.bf16.vlgmr.msra.gmra.mrb[140].mxu0 %vm122_vm0, %v4377_v63  ;;  %7120 = vmatmul.mubr.msk.bf16.vlgmr.msra.gmra.mrb[144].mxu1 %vm122_vm0, %v4377_v63 }
0x2dc7   :  { %7124 = vmatpush3.bf16.msra.mxu0 %v8510_v13  ;;  %7132 = vmatpush3.bf16.msra.mxu1 %v8516_v33 }
0x2dc8   :  { %7125 = vmatprep.subr.bf16.mxu0 %v7704_v12  ;;  %7127 = vmatprep.mubr.msk.bf16.mxu0 %vm7705_vm3, %v7704_v12 }
0x2dc9   :  { %7133 = vmatprep.mubr.msk.bf16.mxu1 %vm7705_vm3, %v7704_v12  ;;  %7143 = vmatprep.subr.bf16.mxu1 %v7704_v12 }
0x2dcb   :  { %7126 = vmatpush3.bf16.msra.mxu0 %v8528_v34 }
0x2dcc   :  { %7137 = vmatprep.subr.bf16.mxu0 %v7704_v12 }
0x2dce   :  { %7128 = vmatmul.mubr.msk.bf16.vlgmr.msra.gmra.mrb[144].mxu0 %vm372_vm4, %v8661_v28  ;;  %7134 = vmatmul.mubr.msk.bf16.vlgmr.msra.gmra.mrb[148].mxu1 %vm122_vm0, %v4377_v63 }
0x2dcf   :  { %7144 = vmatpush3.bf16.msra.mxu1 %v8103_v62  ;;  %7139 = vmatprep.mubr.msk.bf16.mxu0 %vm7705_vm3, %v7704_v12 }
0x2dd0   :  { %7145 = vmatprep.mubr.msk.bf16.mxu1 %vm7705_vm3, %v7704_v12  ;;  %7157 = vmatprep.subr.bf16.mxu1 %v7704_v12 }
0x2dd4   :  { %7138 = vmatpush3.bf16.xpose.msra.mxu0 %v8164_v3 }
0x2dd5   :  { %7149 = vmatprep.subr.bf16.mxu0 %v7704_v12 }
0x2e99   :  { %v4455_v0 = vpop.f32.mrb[140].mxu0  ;;  %v4541_v8 = vpop.f32.mrb[144].mxu1 }
0x2e9a   :  { %v6145_v9 = vmul.f32 -1.442695, %v4455_v0  ;;  %v7107_v28 = vpop.f32.mrb[141].mxu0  ;;  %v7121_v10 = vpop.f32.mrb[145].mxu1  ;;  %v6148_v21 = vmul.f32 -1.442695, %v4541_v8 }
0x2e9b   :  { %v4458_v26 = vpop.f32.mrb[142].mxu0  ;;  %v4544_v41 = vpop.f32.mrb[146].mxu1 }
0x2e9c   :  { %7598 = vpow2.f32 %v6145_v9  ;;  %v7108_v51 = vpop.f32.mrb[143].mxu0  ;;  %v7122_v46 = vpop.f32.mrb[147].mxu1 }
0x2e9d   :  { %7600 = vpow2.f32 %v6148_v21 }
0x2ea1   :  { %v4587_v35 = vpop.f32.mrb[144].mxu0  ;;  %v4628_v5 = vpop.f32.mrb[148].mxu1 }
0x2ea2   :  { %v7129_v61 = vpop.f32.mrb[145].mxu0  ;;  %v7135_v37 = vpop.f32.mrb[149].mxu1  ;;  %v4588_v53 = vadd.f32 %v8653_v7, %v4587_v35 }
0x2ea3   :  { %v4590_v42 = vpop.f32.mrb[146].mxu0  ;;  %v4631_v43 = vpop.f32.mrb[150].mxu1 }
0x2ea4   :  { %v7130_v18 = vpop.f32.mrb[147].mxu0  ;;  %v7136_v23 = vpop.f32.mrb[151].mxu1 }
0x2ea6   :  { %v7599_v20 = vpop.eup %7598 }
0x2ea7   :  { %v4464_v48 = vadd.f32 1.0, %v7599_v20  ;;  %v7601_v49 = vpop.eup %7600 }
0x2ea8   :  { %v4550_v52 = vadd.f32 1.0, %v7601_v49 }
0x2ea9   :  { %7602 = vrcp.f32 %v4464_v48 }
0x2eaa   :  { %7604 = vrcp.f32 %v4550_v52 }
0x2eb3   :  { %v7603_v24 = vpop.eup %7602 }
0x2eb4   :  { %v4593_v17 = vmul.f32 %v7603_v24, %v4588_v53  ;;  %v7605_v19 = vpop.eup %7604 }
0x2eb5   :  { %v4635_v27 = vsub.f32 1.0, %v7605_v19  ;;  %v4637_v63 = vmul.f32 %v7605_v19, %v8657_v4 }
0x2eb6   :  { %v4629_v22 = vadd.f32 %v4628_v5, %v4593_v17 }
0x2eb8   :  { %7606 = vtanh.f32 %v4629_v22 }
0x2ec2   :  { %v7607_v11 = vpop.eup %7606 }
0x2ec3   :  { %v4636_v0 = vmul.f32 %v7607_v11, %v4635_v27 }
0x2ec5   :  { %v8794_v8 = vadd.f32 %v4637_v63, %v4636_v0 }
0x2ec7   :  { %v8798_v9 = vpack.c.bf16 %v8794_v8, %v8794_v8 }
0x2ec9   :  { %7140 = vmatmul.mubr.msk.bf16.vlgmr.msra.gmra.mrb[148].mxu0 %vm372_vm4, %v8798_v9 }
0x2eca   :  { %7150 = vmatpush3.bf16.msra.mxu0 %v8668_v1  ;;  %7153 = vmatprep.mubr.msk.bf16.mxu0 %vm7705_vm3, %v7704_v12 }
0x2ecb   :  { %7151 = vmatprep.subr.bf16.mxu0 %v7704_v12 }
0x2ece   :  { %7152 = vmatpush3.bf16.msra.mxu0 %v8677_v31 }
0x2ecf   :  { %7165 = vmatprep.subr.bf16.mxu0 %v7704_v12 }
0x2ed1   :  { %7154 = vmatmul.mubr.msk.bf16.vlgmr.msra.gmra.mrb[152].mxu0 %vm372_vm4, %v8798_v9 }
0x2ed2   :  { %7166 = vmatpush3.bf16.msra.mxu0 %v8686_v2  ;;  %7169 = vmatprep.mubr.msk.bf16.mxu0 %vm7705_vm3, %v7704_v12 }
0x2ed3   :  { %7167 = vmatprep.subr.bf16.mxu0 %v7704_v12 }
0x2ed6   :  { %7168 = vmatpush3.bf16.msra.mxu0 %v8695_v36 }
0x2ed7   :  { %7187 = vmatprep.subr.bf16.mxu0 %v7704_v12 }
0x2f9c   :  { %v4677_v4 = vpop.f32.mrb[148].mxu0 }
0x2f9d   :  { %v4678_v28 = vadd.f32 %v4677_v4, %v8205_v55  ;;  %v7141_v10 = vpop.f32.mrb[149].mxu0 }
0x2f9e   :  { %v4680_v26 = vpop.f32.mrb[150].mxu0 }
0x2f9f   :  { %v7142_v41 = vpop.f32.mrb[151].mxu0  ;;  %v4683_v51 = vsel %vm2031_vm10, %v4678_v28, -inf }
0x2fa0   :  { %4684 = vmax.xlane.f32.xlu0 %v4683_v51 }
0x2fa4   :  { %v4773_v46 = vpop.f32.mrb[152].mxu0 }
0x2fa5   :  { %v7155_v21 = vpop.f32.mrb[153].mxu0 }
0x2fa6   :  { %v4776_v35 = vpop.f32.mrb[154].mxu0 }
0x2fa7   :  { %v7156_v5 = vpop.f32.mrb[155].mxu0 }
0x302d   :  { %v4685_v61 = vpop.xlane.xlu0 %4684 }
0x302e   :  { %v4686_v37 = vsub.f32 %v4678_v28, %v4685_v61 }
0x3030   :  { %v4687_v42 = vmul.f32 1.442695, %v4686_v37 }
0x3032   :  { %7608 = vpow2.f32 %v4687_v42 }
0x303c   :  { %v7609_v43 = vpop.eup %7608 }
0x303d   :  { %v4689_v18 = vsel %vm2031_vm10, %v7609_v43, 0.0 }
0x303e   :  { %4690 = vadd.xlane.f32.xlu1 %v4689_v18 }
0x30cb   :  { %v4691_v23 = vpop.xlane.xlu1 %4690 }
0x30cc   :  { %7610 = vrcp.f32 %v4691_v23 }
0x30d6   :  { %v7611_v20 = vpop.eup %7610 }
0x30d7   :  { %v4693_v48 = vmul.f32 %v7611_v20, %v7609_v43 }
0x30d9   :  { %v4694_v49 = vpack.c.bf16 %v4693_v48, %v4693_v48 }
0x30db   :  { %7146 = vmatmul.mubr.msk.bf16.vlgmr.msra.gmra.mrb[152].mxu1 %vm122_vm0, %v4694_v49 }
0x30dc   :  { %7158 = vmatpush3.bf16.msra.mxu1 %v8706_v58  ;;  %7161 = vmatprep.mubr.msk.bf16.mxu1 %vm7705_vm3, %v7704_v12 }
0x30dd   :  { %7159 = vmatprep.subr.bf16.mxu1 %v7704_v12 }
0x30e0   :  { %7160 = vmatpush3.bf16.msra.mxu1 %v8715_v60 }
0x30e1   :  { %7173 = vmatprep.subr.bf16.mxu1 %v7704_v12 }
0x31ae   :  { %v4732_v52 = vpop.f32.mrb[152].mxu1 }
0x31af   :  { %v4738_v53 = vpack.c.bf16 %v4732_v52, %v4732_v52  ;;  %v7147_v24 = vpop.f32.mrb[153].mxu1 }
0x31b0   :  { %v4735_v17 = vpop.f32.mrb[154].mxu1 }
0x31b1   :  { %v7148_v22 = vpop.f32.mrb[155].mxu1  ;;  %7162 = vmatmul.mubr.msk.bf16.vlgmr.msra.gmra.mrb[156].mxu1 %vm372_vm4, %v4738_v53 }
0x31b2   :  { %7174 = vmatpush3.bf16.msra.mxu1 %v8449_v44  ;;  %7177 = vmatprep.mubr.msk.bf16.mxu1 %vm7705_vm3, %v7704_v12 }
0x31b3   :  { %7175 = vmatprep.subr.bf16.mxu1 %v7704_v12 }
0x31b6   :  { %7176 = vmatpush3.bf16.msra.mxu1 %v8458_v45 }
0x31b7   :  { %7181 = vmatprep.subr.bf16.mxu1 %v7704_v12 }
0x31b9   :  { %7178 = vmatmul.mubr.msk.bf16.vlgmr.msra.gmra.mrb[160].mxu1 %vm372_vm4, %v8798_v9 }
0x31ba   :  { %7182 = vmatpush3.bf16.msra.mxu1 %v8589_v30  ;;  %7183 = vmatprep.mubr.msk.bf16.mxu1 %vm7705_vm3, %v7704_v12 }
0x31bb   :  { %7201 = vmatprep.subr.bf16.mxu1 %v7704_v12 }
0x3284   :  { %v4816_v44 = vpop.f32.mrb[156].mxu1 }
0x3285   :  { %v4817_v19 = vadd.f32 %v4816_v44, %v4773_v46  ;;  %v7163_v27 = vpop.f32.mrb[157].mxu1 }
0x3286   :  { %v4819_v11 = vpop.f32.mrb[158].mxu1 }
0x3287   :  { %v4822_v63 = vadd.f32 %v8735_v16, %v4817_v19  ;;  %v7164_v0 = vpop.f32.mrb[159].mxu1 }
0x3289   :  { %7612 = vtanh.f32 %v4822_v63 }
0x3293   :  { %v7613_v45 = vpop.eup %7612 }
0x3294   :  { %v4824_v4 = vpack.c.bf16 %v7613_v45, %v7613_v45 }
0x3296   :  { %7170 = vmatmul.mubr.msk.bf16.vlgmr.msra.gmra.mrb[156].mxu0 %vm372_vm4, %v4824_v4 }
0x3297   :  { %7188 = vmatpush3.bf16.msra.mxu0 %v8473_v29  ;;  %7191 = vmatprep.mubr.msk.bf16.mxu0 %vm7705_vm3, %v7704_v12 }
0x3298   :  { %7189 = vmatprep.subr.bf16.mxu0 %v7704_v12 }
0x329b   :  { %7190 = vmatpush3.bf16.msra.mxu0 %v8482_v57 }
0x329c   :  { %7195 = vmatprep.subr.bf16.mxu0 %v7704_v12 }
0x329e   :  { %7192 = vmatmul.mubr.msk.bf16.vlgmr.msra.gmra.mrb[160].mxu0 %vm372_vm4, %v8798_v9 }
0x329f   :  { %7196 = vmatpush3.bf16.msra.mxu0 %v8608_v38  ;;  %7197 = vmatprep.mubr.msk.bf16.mxu0 %vm7705_vm3, %v7704_v12 }
0x32a0   :  { %7209 = vmatprep.subr.bf16.mxu0 %v7704_v12 }
0x3369   :  { %v4862_v29 = vpop.f32.mrb[156].mxu0 }
0x336a   :  { %v8854_v28 = vadd.f32 %v8754_v39, %v4862_v29  ;;  %v7171_v10 = vpop.f32.mrb[157].mxu0 }
0x336b   :  { %v4865_v26 = vpop.f32.mrb[158].mxu0 }
0x336c   :  { %v7172_v41 = vpop.f32.mrb[159].mxu0  ;;  %v4868_v57 = vsel %vm2031_vm10, %v8854_v28, -inf }
0x336d   :  { %4869 = vmax.xlane.f32.xlu0 %v4868_v57 }
0x33fa   :  { %v8858_v51 = vpop.xlane.xlu0 %4869 }
0x33fb   :  { %vm4880_vm14 = vcmp.ge.f32.partialorder %v8854_v28, %v8858_v51 }
0x33fc   :  { %v4881_v46 = vsel %vm4880_vm14, %v7776_v14, 16 }
0x33fd   :  { %v4882_v21 = vsel %vm2031_vm10, %v4881_v46, 2147483647 }
0x33fe   :  { %v4884_v35 = vshra.s32 %v4882_v21, 16  ;;  %v4883_v61 = vand.u32 65535, %v4882_v21 }
0x3400   :  { %v4886_v5 = vcvt.s32.f32 %v4884_v35  ;;  %v4885_v42 = vcvt.s32.f32 %v4883_v61 }
0x3402   :  { %4887 = vmin.xlane.f32.xlu1 %v4886_v5 }
0x348f   :  { %v4888_v37 = vpop.xlane.xlu1 %4887 }
0x3490   :  { %vm4889_vm15 = vcmp.eq.f32.partialorder %v4886_v5, %v4888_v37  ;;  %v4894_v18 = vcvt.f32.s32 %v4888_v37 }
0x3491   :  { %v4890_v43 = vsel %vm4889_vm15, %v4885_v42, inf }
0x3492   :  { %4891 = vmin.xlane.f32.xlu0 %v4890_v43  ;;  %v4895_v20 = vshll.u32 %v4894_v18, 16 }
0x351f   :  { %v4892_v23 = vpop.xlane.xlu0 %4891 }
0x3520   :  { %v4893_v48 = vcvt.f32.s32 %v4892_v23 }
0x3522   :  { %v4896_v49 = vadd.s32 %v4895_v20, %v4893_v48 }
0x3524   :  { %vm4897_vm1 = vcmp.eq.s32.totalorder %v7776_v14, %v4896_v49 }
0x3525   :  { %v6156_v52 = vsel %vm4897_vm1, 1.0, %v7704_v12 }
0x3526   :  { %v4900_v53 = vpack.c.bf16 %v6156_v52, %v6156_v52 }
0x3528   :  { %7184 = vmatmul.mubr.msk.bf16.vlgmr.msra.gmra.mrb[160].mxu1 %vm122_vm0, %v4900_v53  ;;  %7198 = vmatmul.mubr.msk.bf16.vlgmr.msra.gmra.mrb[160].mxu0 %vm122_vm0, %v4900_v53 }
0x3529   :  { %7202 = vmatpush3.bf16.msra.mxu1 %v8510_v13  ;;  %7210 = vmatpush3.bf16.msra.mxu0 %v8516_v33 }
0x352a   :  { %7203 = vmatprep.subr.bf16.mxu1 %v7704_v12  ;;  %7205 = vmatprep.mubr.msk.bf16.mxu1 %vm7705_vm3, %v7704_v12 }
0x352b   :  { %7211 = vmatprep.mubr.msk.bf16.mxu0 %vm7705_vm3, %v7704_v12  ;;  %7221 = vmatprep.subr.bf16.mxu0 %v7704_v12 }
0x352d   :  { %7204 = vmatpush3.bf16.msra.mxu1 %v8528_v34 }
0x352e   :  { %7215 = vmatprep.subr.bf16.mxu1 %v7704_v12 }
0x3530   :  { %7206 = vmatmul.mubr.msk.bf16.vlgmr.msra.gmra.mrb[164].mxu1 %vm372_vm4, %v8798_v9  ;;  %7212 = vmatmul.mubr.msk.bf16.vlgmr.msra.gmra.mrb[164].mxu0 %vm122_vm0, %v4900_v53 }
0x3531   :  { %7222 = vmatpush3.bf16.msra.mxu0 %v8103_v62  ;;  %7217 = vmatprep.mubr.msk.bf16.mxu1 %vm7705_vm3, %v7704_v12 }
0x3532   :  { %7223 = vmatprep.mubr.msk.bf16.mxu0 %vm7705_vm3, %v7704_v12  ;;  %7235 = vmatprep.subr.bf16.mxu0 %v7704_v12 }
0x3536   :  { %7216 = vmatpush3.bf16.xpose.msra.mxu1 %v8164_v3 }
0x3537   :  { %7227 = vmatprep.subr.bf16.mxu1 %v7704_v12 }
0x35fb   :  { %v4978_v13 = vpop.f32.mrb[160].mxu1  ;;  %v5064_v33 = vpop.f32.mrb[160].mxu0 }
0x35fc   :  { %v6159_v34 = vmul.f32 -1.442695, %v4978_v13  ;;  %v7185_v9 = vpop.f32.mrb[161].mxu1  ;;  %v7199_v24 = vpop.f32.mrb[161].mxu0  ;;  %v6162_v27 = vmul.f32 -1.442695, %v5064_v33 }
0x35fd   :  { %v4981_v17 = vpop.f32.mrb[162].mxu1  ;;  %v5067_v22 = vpop.f32.mrb[162].mxu0 }
0x35fe   :  { %7614 = vpow2.f32 %v6159_v34  ;;  %v7186_v44 = vpop.f32.mrb[163].mxu1  ;;  %v7200_v19 = vpop.f32.mrb[163].mxu0 }
0x35ff   :  { %7616 = vpow2.f32 %v6162_v27 }
0x3603   :  { %v5110_v11 = vpop.f32.mrb[164].mxu1  ;;  %v5151_v63 = vpop.f32.mrb[164].mxu0 }
0x3604   :  { %v7207_v0 = vpop.f32.mrb[165].mxu1  ;;  %v7213_v45 = vpop.f32.mrb[165].mxu0  ;;  %v5111_v35 = vadd.f32 %v8653_v7, %v5110_v11 }
0x3605   :  { %v5113_v4 = vpop.f32.mrb[166].mxu1  ;;  %v5154_v29 = vpop.f32.mrb[166].mxu0 }
0x3606   :  { %v7208_v10 = vpop.f32.mrb[167].mxu1  ;;  %v7214_v26 = vpop.f32.mrb[167].mxu0 }
0x3608   :  { %v7615_v41 = vpop.eup %7614 }
0x3609   :  { %v4987_v57 = vadd.f32 1.0, %v7615_v41  ;;  %v7617_v46 = vpop.eup %7616 }
0x360a   :  { %v5073_v21 = vadd.f32 1.0, %v7617_v46 }
0x360b   :  { %7618 = vrcp.f32 %v4987_v57 }
0x360c   :  { %7620 = vrcp.f32 %v5073_v21  ;;  %v7696_v21 = vld [vmem:[%s9082_s2 + $0x30] sm:$0xff]  }
0x3615   :  { %v7619_v5 = vpop.eup %7618 }
0x3616   :  { %v5116_v61 = vmul.f32 %v7619_v5, %v5111_v35  ;;  %v7621_v42 = vpop.eup %7620  ;;  %v7697_v35 = vld [vmem:[%s9082_s2 + $0x38] sm:$0xff]  }
0x3617   :  { %v5158_v43 = vsub.f32 1.0, %v7621_v42  ;;  %v5160_v23 = vmul.f32 %v7621_v42, %v8794_v8 }
0x3618   :  { %v5152_v37 = vadd.f32 %v5151_v63, %v5116_v61 }
0x361a   :  { %7622 = vtanh.f32 %v5152_v37 }
0x3624   :  { %v7623_v18 = vpop.eup %7622 }
0x3625   :  { %v5159_v20 = vmul.f32 %v7623_v18, %v5158_v43 }
0x3627   :  { %v8891_v48 = vadd.f32 %v5160_v23, %v5159_v20 }
0x3629   :  { %v8895_v49 = vpack.c.bf16 %v8891_v48, %v8891_v48 }
0x362b   :  { %7218 = vmatmul.mubr.msk.bf16.vlgmr.msra.gmra.mrb[168].mxu1 %vm372_vm4, %v8895_v49 }
0x362c   :  { %7228 = vmatpush3.bf16.msra.mxu1 %v8668_v1  ;;  %7231 = vmatprep.mubr.msk.bf16.mxu1 %vm7705_vm3, %v7704_v12 }
0x362d   :  { %7229 = vmatprep.subr.bf16.mxu1 %v7704_v12 }
0x3630   :  { %7230 = vmatpush3.bf16.msra.mxu1 %v8677_v31 }
0x3631   :  { %7243 = vmatprep.subr.bf16.mxu1 %v7704_v12 }
0x3633   :  { %7232 = vmatmul.mubr.msk.bf16.vlgmr.msra.gmra.mrb[172].mxu1 %vm372_vm4, %v8895_v49 }
0x3634   :  { %7244 = vmatpush3.bf16.msra.mxu1 %v8686_v2  ;;  %7247 = vmatprep.mubr.msk.bf16.mxu1 %vm7705_vm3, %v7704_v12 }
0x3635   :  { %7245 = vmatprep.subr.bf16.mxu1 %v7704_v12 }
0x3638   :  { %7246 = vmatpush3.bf16.msra.mxu1 %v8695_v36 }
0x3639   :  { %7265 = vmatprep.subr.bf16.mxu1 %v7704_v12 }
0x36fe   :  { %v5200_v8 = vpop.f32.mrb[168].mxu1 }
0x36ff   :  { %v5201_v52 = vadd.f32 %v5200_v8, %v8205_v55  ;;  %v7219_v53 = vpop.f32.mrb[169].mxu1  ;;  %v7699_v8 = vld [vmem:[%s9082_s2 + $0x48] sm:$0xff]  }
0x3700   :  { %v5203_v13 = vpop.f32.mrb[170].mxu1 }
0x3701   :  { %v7220_v33 = vpop.f32.mrb[171].mxu1  ;;  %v5206_v34 = vsel %vm2031_vm10, %v5201_v52, -inf }
0x3702   :  { %5207 = vmax.xlane.f32.xlu1 %v5206_v34 }
0x3706   :  { %v5296_v9 = vpop.f32.mrb[172].mxu1 }
0x3707   :  { %v7233_v24 = vpop.f32.mrb[173].mxu1 }
0x3708   :  { %v5299_v17 = vpop.f32.mrb[174].mxu1 }
0x3709   :  { %v7234_v22 = vpop.f32.mrb[175].mxu1 }
0x378f   :  { %v5208_v44 = vpop.xlane.xlu1 %5207 }
0x3790   :  { %v5209_v19 = vsub.f32 %v5201_v52, %v5208_v44 }
0x3792   :  { %v5210_v27 = vmul.f32 1.442695, %v5209_v19 }
0x3794   :  { %7624 = vpow2.f32 %v5210_v27 }
0x379e   :  { %v7625_v11 = vpop.eup %7624 }
0x379f   :  { %v5212_v63 = vsel %vm2031_vm10, %v7625_v11, 0.0 }
0x37a0   :  { %5213 = vadd.xlane.f32.xlu0 %v5212_v63 }
0x382d   :  { %v5214_v0 = vpop.xlane.xlu0 %5213 }
0x382e   :  { %7626 = vrcp.f32 %v5214_v0 }
0x3838   :  { %v7627_v45 = vpop.eup %7626 }
0x3839   :  { %v5216_v4 = vmul.f32 %v7627_v45, %v7625_v11 }
0x383b   :  { %v5217_v29 = vpack.c.bf16 %v5216_v4, %v5216_v4 }
0x383d   :  { %7224 = vmatmul.mubr.msk.bf16.vlgmr.msra.gmra.mrb[168].mxu0 %vm122_vm0, %v5217_v29 }
0x383e   :  { %7236 = vmatpush3.bf16.msra.mxu0 %v8706_v58  ;;  %7239 = vmatprep.mubr.msk.bf16.mxu0 %vm7705_vm3, %v7704_v12 }
0x383f   :  { %7237 = vmatprep.subr.bf16.mxu0 %v7704_v12 }
0x3842   :  { %7238 = vmatpush3.bf16.msra.mxu0 %v8715_v60 }
0x3843   :  { %7251 = vmatprep.subr.bf16.mxu0 %v7704_v12 }
0x3910   :  { %v5255_v10 = vpop.f32.mrb[168].mxu0 }
0x3911   :  { %v5261_v26 = vpack.c.bf16 %v5255_v10, %v5255_v10  ;;  %v7225_v41 = vpop.f32.mrb[169].mxu0 }
0x3912   :  { %v5258_v57 = vpop.f32.mrb[170].mxu0 }
0x3913   :  { %v7226_v46 = vpop.f32.mrb[171].mxu0  ;;  %7240 = vmatmul.mubr.msk.bf16.vlgmr.msra.gmra.mrb[172].mxu0 %vm372_vm4, %v5261_v26  ;;  %v7700_v57 = vld [vmem:[%s9082_s2 + $0x50] sm:$0xff]  }
0x3914   :  { %7252 = vmatpush3.bf16.msra.mxu0 %v7696_v21  ;;  %7255 = vmatprep.mubr.msk.bf16.mxu0 %vm7705_vm3, %v7704_v12  ;;  %v7701_v46 = vld [vmem:[%s9084_s3 + $0x10] sm:$0xff]   ;;  %s7708_s3 = smov 80  }
0x3915   :  { %7253 = vmatprep.subr.bf16.mxu0 %v7704_v12 }
0x3918   :  { %7254 = vmatpush3.bf16.msra.mxu0 %v7697_v35 }
0x3919   :  { %7259 = vmatprep.subr.bf16.mxu0 %v7704_v12 }
0x391b   :  { %7256 = vmatmul.mubr.msk.bf16.vlgmr.msra.gmra.mrb[176].mxu0 %vm372_vm4, %v8895_v49 }
0x391c   :  { %7260 = vmatpush3.bf16.msra.mxu0 %v8589_v30  ;;  %7261 = vmatprep.mubr.msk.bf16.mxu0 %vm7705_vm3, %v7704_v12  ;;  %v7698_v30 = vld [vmem:[%s9082_s2 + $0x40] sm:$0xff]  }
0x391d   :  { %7279 = vmatprep.subr.bf16.mxu0 %v7704_v12 }
0x39e6   :  { %v5339_v5 = vpop.f32.mrb[172].mxu0 }
0x39e7   :  { %v5340_v61 = vadd.f32 %v5339_v5, %v5296_v9  ;;  %v7241_v37 = vpop.f32.mrb[173].mxu0 }
0x39e8   :  { %v5342_v42 = vpop.f32.mrb[174].mxu0 }
0x39e9   :  { %v5345_v43 = vadd.f32 %v8735_v16, %v5340_v61  ;;  %v7242_v18 = vpop.f32.mrb[175].mxu0 }
0x39eb   :  { %7628 = vtanh.f32 %v5345_v43 }
0x39f5   :  { %v7629_v23 = vpop.eup %7628 }
0x39f6   :  { %v5347_v20 = vpack.c.bf16 %v7629_v23, %v7629_v23 }
0x39f8   :  { %7248 = vmatmul.mubr.msk.bf16.vlgmr.msra.gmra.mrb[176].mxu1 %vm372_vm4, %v5347_v20 }
0x39f9   :  { %7266 = vmatpush3.bf16.msra.mxu1 %v7698_v30  ;;  %7269 = vmatprep.mubr.msk.bf16.mxu1 %vm7705_vm3, %v7704_v12 }
0x39fa   :  { %7267 = vmatprep.subr.bf16.mxu1 %v7704_v12 }
0x39fd   :  { %7268 = vmatpush3.bf16.msra.mxu1 %v7699_v8 }
0x39fe   :  { %7273 = vmatprep.subr.bf16.mxu1 %v7704_v12 }
0x3a00   :  { %7270 = vmatmul.mubr.msk.bf16.vlgmr.msra.gmra.mrb[180].mxu1 %vm372_vm4, %v8895_v49 }
0x3a01   :  { %7274 = vmatpush3.bf16.msra.mxu1 %v8608_v38  ;;  %7275 = vmatprep.mubr.msk.bf16.mxu1 %vm7705_vm3, %v7704_v12 }
0x3a02   :  { %7287 = vmatprep.subr.bf16.mxu1 %v7704_v12 }
0x3acb   :  { %v5385_v52 = vpop.f32.mrb[176].mxu1 }
0x3acc   :  { %v8959_v53 = vadd.f32 %v8754_v39, %v5385_v52  ;;  %v7249_v13 = vpop.f32.mrb[177].mxu1 }
0x3acd   :  { %v5388_v33 = vpop.f32.mrb[178].mxu1 }
0x3ace   :  { %v7250_v34 = vpop.f32.mrb[179].mxu1  ;;  %v5391_v9 = vsel %vm2031_vm10, %v8959_v53, -inf }
0x3acf   :  { %5392 = vmax.xlane.f32.xlu1 %v5391_v9 }
0x3b5c   :  { %v8963_v24 = vpop.xlane.xlu1 %5392 }
0x3b5d   :  { %vm5403_vm2 = vcmp.ge.f32.partialorder %v8959_v53, %v8963_v24 }
0x3b5e   :  { %v5404_v38 = vsel %vm5403_vm2, %v7776_v14, 16 }
0x3b5f   :  { %v5405_v17 = vsel %vm2031_vm10, %v5404_v38, 2147483647 }
0x3b60   :  { %v5407_v22 = vshra.s32 %v5405_v17, 16  ;;  %v5406_v19 = vand.u32 65535, %v5405_v17 }
0x3b62   :  { %v5409_v44 = vcvt.s32.f32 %v5407_v22  ;;  %v5408_v11 = vcvt.s32.f32 %v5406_v19 }
0x3b64   :  { %5410 = vmin.xlane.f32.xlu0 %v5409_v44 }
0x3bf1   :  { %v5411_v27 = vpop.xlane.xlu0 %5410 }
0x3bf2   :  { %vm5412_vm5 = vcmp.eq.f32.partialorder %v5409_v44, %v5411_v27  ;;  %v5417_v0 = vcvt.f32.s32 %v5411_v27 }
0x3bf3   :  { %v5413_v63 = vsel %vm5412_vm5, %v5408_v11, inf }
0x3bf4   :  { %5414 = vmin.xlane.f32.xlu1 %v5413_v63  ;;  %v5418_v4 = vshll.u32 %v5417_v0, 16 }
0x3c81   :  { %v5415_v45 = vpop.xlane.xlu1 %5414 }
0x3c82   :  { %v5416_v29 = vcvt.f32.s32 %v5415_v45 }
0x3c84   :  { %v5419_v10 = vadd.s32 %v5418_v4, %v5416_v29 }
0x3c86   :  { %vm5420_vm6 = vcmp.eq.s32.totalorder %v7776_v14, %v5419_v10  ;;  %v7702_v14 = vld [vmem:[%s9082_s2 + $0x58] sm:$0xff]   ;;  %s7707_s2 = smov 32  }
0x3c87   :  { %v6170_v26 = vsel %vm5420_vm6, 1.0, %v7704_v12 }
0x3c88   :  { %v5423_v41 = vpack.c.bf16 %v6170_v26, %v6170_v26 }
0x3c8a   :  { %7262 = vmatmul.mubr.msk.bf16.vlgmr.msra.gmra.mrb[176].mxu0 %vm122_vm0, %v5423_v41  ;;  %7276 = vmatmul.mubr.msk.bf16.vlgmr.msra.gmra.mrb[180].mxu1 %vm122_vm0, %v5423_v41 }
0x3c8b   :  { %7280 = vmatpush3.bf16.msra.mxu0 %v7700_v57  ;;  %7288 = vmatpush3.bf16.msra.mxu1 %v7701_v46 }
0x3c8c   :  { %7281 = vmatprep.subr.bf16.mxu0 %v7704_v12  ;;  %7283 = vmatprep.mubr.msk.bf16.mxu0 %vm7705_vm3, %v7704_v12 }
0x3c8d   :  { %7289 = vmatprep.mubr.msk.bf16.mxu1 %vm7705_vm3, %v7704_v12  ;;  %7299 = vmatprep.subr.bf16.mxu1 %v7704_v12 }
0x3c8f   :  { %7282 = vmatpush3.bf16.msra.mxu0 %v7702_v14 }
0x3c90   :  { %7293 = vmatprep.subr.bf16.mxu0 %v7704_v12 }
0x3c92   :  { %7284 = vmatmul.mubr.msk.bf16.vlgmr.msra.gmra.mrb[180].mxu0 %vm372_vm4, %v8895_v49  ;;  %7290 = vmatmul.mubr.msk.bf16.vlgmr.msra.gmra.mrb[184].mxu1 %vm122_vm0, %v5423_v41 }
0x3c93   :  { %7300 = vmatpush3.bf16.msra.mxu1 %v8103_v62  ;;  %7295 = vmatprep.mubr.msk.bf16.mxu0 %vm7705_vm3, %v7704_v12 }
0x3c94   :  { %7301 = vmatprep.mubr.msk.bf16.mxu1 %vm7705_vm3, %v7704_v12  ;;  %7313 = vmatprep.subr.bf16.mxu1 %v7704_v12 }
0x3c98   :  { %7294 = vmatpush3.bf16.xpose.msra.mxu0 %v8164_v3 }
0x3c99   :  { %7305 = vmatprep.subr.bf16.mxu0 %v7704_v12 }
0x3d5d   :  { %v5501_v21 = vpop.f32.mrb[176].mxu0  ;;  %v5587_v35 = vpop.f32.mrb[180].mxu1 }
0x3d5e   :  { %v6173_v5 = vmul.f32 -1.442695, %v5501_v21  ;;  %v7263_v49 = vpop.f32.mrb[177].mxu0  ;;  %v7277_v61 = vpop.f32.mrb[181].mxu1  ;;  %v6176_v18 = vmul.f32 -1.442695, %v5587_v35  ;;  %v9019_v21 = vsub.f32 %v8376_v56, %v8380_v50 }
0x3d5f   :  { %v5504_v37 = vpop.f32.mrb[178].mxu0  ;;  %v5590_v42 = vpop.f32.mrb[182].mxu1 }
0x3d60   :  { %7630 = vpow2.f32 %v6173_v5  ;;  %v7264_v62 = vpop.f32.mrb[179].mxu0  ;;  %v7278_v43 = vpop.f32.mrb[183].mxu1  ;;  %v9029_v37 = vsub.f32 %v8854_v28, %v8858_v51 }
0x3d61   :  { %7632 = vpow2.f32 %v6176_v18 }
0x3d62   :  { %v4872_v56 = vmul.f32 1.442695, %v9029_v37 }
0x3d65   :  { %v5633_v23 = vpop.f32.mrb[180].mxu0  ;;  %v5674_v20 = vpop.f32.mrb[184].mxu1 }
0x3d66   :  { %v7285_v30 = vpop.f32.mrb[181].mxu0  ;;  %v7291_v8 = vpop.f32.mrb[185].mxu1  ;;  %v5634_v22 = vadd.f32 %v8653_v7, %v5633_v23 }
0x3d67   :  { %v5636_v52 = vpop.f32.mrb[182].mxu0  ;;  %v5677_v3 = vpop.f32.mrb[186].mxu1 }
0x3d68   :  { %v7286_v13 = vpop.f32.mrb[183].mxu0  ;;  %v7292_v33 = vpop.f32.mrb[187].mxu1 }
0x3d6a   :  { %v7631_v34 = vpop.eup %7630 }
0x3d6b   :  { %v5510_v9 = vadd.f32 1.0, %v7631_v34  ;;  %v7633_v38 = vpop.eup %7632 }
0x3d6c   :  { %v5596_v17 = vadd.f32 1.0, %v7633_v38 }
0x3d6d   :  { %7634 = vrcp.f32 %v5510_v9 }
0x3d6e   :  { %7636 = vrcp.f32 %v5596_v17 }
0x3d77   :  { %v7635_v44 = vpop.eup %7634 }
0x3d78   :  { %v5639_v19 = vmul.f32 %v7635_v44, %v5634_v22  ;;  %v7637_v11 = vpop.eup %7636 }
0x3d79   :  { %v5681_v63 = vsub.f32 1.0, %v7637_v11  ;;  %v5683_v4 = vmul.f32 %v7637_v11, %v8891_v48 }
0x3d7a   :  { %v5675_v27 = vadd.f32 %v5674_v20, %v5639_v19 }
0x3d7c   :  { %7638 = vtanh.f32 %v5675_v27  ;;  %v9049_v27 = vsub.f32 %v8757_v40, %v8761_v32 }
0x3d7e   :  { %v4349_v11 = vmul.f32 1.442695, %v9049_v27 }
0x3d86   :  { %v7639_v0 = vpop.eup %7638 }
0x3d87   :  { %v5682_v45 = vmul.f32 %v7639_v0, %v5681_v63  ;;  %v9058_v63 = vsub.f32 %v8279_v47, %v8283_v54 }
0x3d89   :  { %v5684_v29 = vadd.f32 %v5683_v4, %v5682_v45  ;;  %v2257_v40 = vmul.f32 1.442695, %v9058_v63 }
0x3d8b   :  { %v5685_v10 = vpack.c.bf16 %v5684_v29, %v5684_v29 }
0x3d8d   :  { %7296 = vmatmul.mubr.msk.bf16.vlgmr.msra.gmra.mrb[184].mxu0 %vm372_vm4, %v5685_v10 }
0x3d8e   :  { %7306 = vmatpush3.bf16.msra.mxu0 %v8668_v1  ;;  %7309 = vmatprep.mubr.msk.bf16.mxu0 %vm7705_vm3, %v7704_v12 }
0x3d8f   :  { %7307 = vmatprep.subr.bf16.mxu0 %v7704_v12 }
0x3d92   :  { %7308 = vmatpush3.bf16.msra.mxu0 %v8677_v31 }
0x3d93   :  { %7321 = vmatprep.subr.bf16.mxu0 %v7704_v12 }
0x3d95   :  { %7310 = vmatmul.mubr.msk.bf16.vlgmr.msra.gmra.mrb[188].mxu0 %vm372_vm4, %v5685_v10 }
0x3d96   :  { %7322 = vmatpush3.bf16.msra.mxu0 %v8686_v2  ;;  %7325 = vmatprep.mubr.msk.bf16.mxu0 %vm7705_vm3, %v7704_v12 }
0x3d97   :  { %7323 = vmatprep.subr.bf16.mxu0 %v7704_v12 }
0x3d9a   :  { %7324 = vmatpush3.bf16.msra.mxu0 %v8695_v36  ;;  %v2780_v36 = vmul.f32 1.442695, %v9019_v21 }
0x3e60   :  { %v5723_v7 = vpop.f32.mrb[184].mxu0 }
0x3e61   :  { %v5724_v1 = vadd.f32 %v5723_v7, %v8205_v55  ;;  %v7297_v48 = vpop.f32.mrb[185].mxu0  ;;  %v9024_v55 = vsub.f32 %v8615_v6, %v8619_v15 }
0x3e62   :  { %v5726_v26 = vpop.f32.mrb[186].mxu0 }
0x3e63   :  { %v7298_v41 = vpop.f32.mrb[187].mxu0  ;;  %v5729_v31 = vsel %vm2031_vm10, %v5724_v1, -inf  ;;  %v3826_v61 = vmul.f32 1.442695, %v9024_v55 }
0x3e64   :  { %5730 = vmax.xlane.f32.xlu0 %v5729_v31 }
0x3e68   :  { %v5819_v57 = vpop.f32.mrb[188].mxu0 }
0x3e69   :  { %v7311_v46 = vpop.f32.mrb[189].mxu0 }
0x3e6a   :  { %v5822_v14 = vpop.f32.mrb[190].mxu0 }
0x3e6b   :  { %v7312_v2 = vpop.f32.mrb[191].mxu0 }
0x3ef1   :  { %v5731_v35 = vpop.xlane.xlu0 %5730 }
0x3ef2   :  { %v5732_v5 = vsub.f32 %v5724_v1, %v5731_v35 }
0x3ef4   :  { %v5733_v49 = vmul.f32 1.442695, %v5732_v5 }
0x3ef6   :  { %7640 = vpow2.f32 %v5733_v49 }
0x3ef7   :  { %7642 = vpow2.f32 %v2780_v36 }
0x3ef8   :  { %7644 = vpow2.f32 %v3826_v61 }
0x3ef9   :  { %7646 = vpow2.f32 %v4872_v56 }
0x3f00   :  { %v7641_v50 = vpop.eup %7640 }
0x3f01   :  { %v5735_v42 = vsel %vm2031_vm10, %v7641_v50, 0.0  ;;  %v7643_v62 = vpop.eup %7642 }
0x3f02   :  { %5736 = vadd.xlane.f32.xlu1 %v5735_v42  ;;  %v2782_v6 = vsel %vm2031_vm10, %v7643_v62, 0.0  ;;  %v7645_v15 = vpop.eup %7644 }
0x3f03   :  { %v3828_v43 = vsel %vm2031_vm10, %v7645_v15, 0.0  ;;  %v7647_v18 = vpop.eup %7646 }
0x3f04   :  { %v4874_v28 = vsel %vm2031_vm10, %v7647_v18, 0.0 }
0x3f06   :  { %2783 = vadd.xlane.f32.xlu1 %v2782_v6 }
0x3f0a   :  { %3829 = vadd.xlane.f32.xlu1 %v3828_v43 }
0x3f0e   :  { %4875 = vadd.xlane.f32.xlu1 %v4874_v28 }
0x3f8f   :  { %v5737_v51 = vpop.xlane.xlu1 %5736 }
0x3f90   :  { %7648 = vrcp.f32 %v5737_v51 }
0x3f93   :  { %v2784_v48 = vpop.xlane.xlu1 %2783 }
0x3f97   :  { %v3830_v26 = vpop.xlane.xlu1 %3829 }
0x3f9a   :  { %v7649_v23 = vpop.eup %7648 }
0x3f9b   :  { %v5739_v20 = vmul.f32 %v7649_v23, %v7641_v50  ;;  %v4876_v31 = vpop.xlane.xlu1 %4875 }
0x3f9d   :  { %v5740_v30 = vpack.c.bf16 %v5739_v20, %v5739_v20 }
0x3f9f   :  { %7302 = vmatmul.mubr.msk.bf16.vlgmr.msra.gmra.mrb[188].mxu1 %vm122_vm0, %v5740_v30 }
0x3fa0   :  { %7314 = vmatpush3.bf16.msra.mxu1 %v8706_v58  ;;  %7317 = vmatprep.mubr.msk.bf16.mxu1 %vm7705_vm3, %v7704_v12  ;;  %vm5956_vm3 = vcmask 392192  }
0x3fa1   :  { %7315 = vmatprep.subr.bf16.mxu1 %v7704_v12  ;;  %v3302_v12 = vsub.f32 %v8493_v59, %v8497_v25 }
0x3fa4   :  { %7316 = vmatpush3.bf16.msra.mxu1 %v8715_v60  ;;  %v3303_v60 = vmul.f32 1.442695, %v3302_v12 }
0x4072   :  { %v5778_v8 = vpop.f32.mrb[188].mxu1 }
0x4073   :  { %v5784_v52 = vpack.c.bf16 %v5778_v8, %v5778_v8  ;;  %v7303_v3 = vpop.f32.mrb[189].mxu1 }
0x4074   :  { %v5781_v13 = vpop.f32.mrb[190].mxu1 }
0x4075   :  { %v7304_v33 = vpop.f32.mrb[191].mxu1  ;;  %7318 = vmatmul.mubr.msk.bf16.vlgmr.msra.gmra.mrb[192].mxu1 %vm372_vm4, %v5784_v52 }
0x4148   :  { %v5862_v34 = vpop.f32.mrb[192].mxu1 }
0x4149   :  { %v5863_v9 = vadd.f32 %v5862_v34, %v5819_v57  ;;  %v7319_v38 = vpop.f32.mrb[193].mxu1 }
0x414a   :  { %v5865_v17 = vpop.f32.mrb[194].mxu1 }
0x414b   :  { %v5868_v58 = vadd.f32 %v8735_v16, %v5863_v9  ;;  %v7320_v22 = vpop.f32.mrb[195].mxu1  ;;  %v9054_v16 = vsub.f32 %v8959_v53, %v8963_v24 }
0x414d   :  { %7650 = vtanh.f32 %v5868_v58  ;;  %v5395_v0 = vmul.f32 1.442695, %v9054_v16 }
0x414e   :  { %7652 = vpow2.f32 %v3303_v60 }
0x414f   :  { %7654 = vpow2.f32 %v4349_v11 }
0x4150   :  { %7656 = vpow2.f32 %v5395_v0 }
0x4151   :  { %7658 = vpow2.f32 %v2257_v40 }
0x4152   :  { %7660 = vlog2.f32 %v4876_v31 }
0x4157   :  { %v7651_v44 = vpop.eup %7650 }
0x4158   :  { %v5870_v19 = vpack.c.bf16 %v7651_v44, %v7651_v44  ;;  %v7653_v53 = vpop.eup %7652 }
0x4159   :  { %v3305_v47 = vsel %vm2031_vm10, %v7653_v53, 0.0  ;;  %v7655_v54 = vpop.eup %7654 }
0x415a   :  { %7326 = vmatmul.mubr.msk.bf16.vlgmr.msra.gmra.mrb[192].mxu0 %vm372_vm4, %v5870_v19  ;;  %v4351_v24 = vsel %vm2031_vm10, %v7655_v54, 0.0  ;;  %v7657_v10 = vpop.eup %7656 }
0x415b   :  { %v7659_v7 = vpop.eup %7658 }
0x415c   :  { %v2259_v1 = vsel %vm2031_vm10, %v7659_v7, 0.0  ;;  %v7661_v2 = vpop.eup %7660 }
0x415d   :  { %v4878_v56 = vmul.f32 0.6931472, %v7661_v2 }
0x415f   :  { %v4879_v42 = vsub.f32 %v9029_v37, %v4878_v56 }
0x422d   :  { %v5908_v59 = vpop.f32.mrb[192].mxu0 }
0x422e   :  { %v5909_v25 = vadd.f32 %v8754_v39, %v5908_v59  ;;  %v7327_v45 = vpop.f32.mrb[193].mxu0  ;;  %v5397_v39 = vsel %vm2031_vm10, %v7657_v10, 0.0 }
0x422f   :  { %v5911_v32 = vpop.f32.mrb[194].mxu0 }
0x4230   :  { %v7328_v4 = vpop.f32.mrb[195].mxu0  ;;  %v5914_v29 = vsel %vm2031_vm10, %v5909_v25, -inf }
0x4231   :  { %5915 = vmax.xlane.f32.xlu0 %v5914_v29 }
0x4235   :  { %3306 = vadd.xlane.f32.xlu0 %v3305_v47 }
0x4239   :  { %4352 = vadd.xlane.f32.xlu0 %v4351_v24 }
0x423d   :  { %5398 = vadd.xlane.f32.xlu0 %v5397_v39 }
0x4241   :  { %2260 = vadd.xlane.f32.xlu0 %v2259_v1 }
0x42be   :  { %v5916_v41 = vpop.xlane.xlu0 %5915 }
0x42bf   :  { %v5917_v57 = vsub.f32 %v5909_v25, %v5916_v41 }
0x42c1   :  { %v5918_v46 = vmul.f32 1.442695, %v5917_v57 }
0x42c2   :  { %v3307_v14 = vpop.xlane.xlu0 %3306 }
0x42c3   :  { %7662 = vpow2.f32 %v5918_v46 }
0x42c4   :  { %7664 = vlog2.f32 %v3307_v14 }
0x42c5   :  { %7666 = vlog2.f32 %v2784_v48 }
0x42c6   :  { %v4353_v61 = vpop.xlane.xlu0 %4352  ;;  %7668 = vlog2.f32 %v3830_v26 }
0x42c7   :  { %7670 = vlog2.f32 %v4353_v61 }
0x42ca   :  { %v5399_v62 = vpop.xlane.xlu0 %5398 }
0x42cb   :  { %7672 = vlog2.f32 %v5399_v62 }
0x42cd   :  { %v7663_v35 = vpop.eup %7662 }
0x42ce   :  { %v7665_v5 = vpop.eup %7664  ;;  %v5920_v36 = vsel %vm2031_vm10, %v7663_v35, 0.0  ;;  %vm5958_vm10 = vcmask 523264  }
0x42cf   :  { %v3309_v49 = vmul.f32 0.6931472, %v7665_v5  ;;  %5921 = vadd.xlane.f32.xlu1 %v5920_v36  ;;  %v7667_v6 = vpop.eup %7666 }
0x42d0   :  { %v2786_v15 = vmul.f32 0.6931472, %v7667_v6  ;;  %v7669_v43 = vpop.eup %7668 }
0x42d1   :  { %v3310_v50 = vsub.f32 %v3302_v12, %v3309_v49  ;;  %v3832_v18 = vmul.f32 0.6931472, %v7669_v43  ;;  %v7671_v51 = vpop.eup %7670 }
0x42d2   :  { %v2787_v28 = vsub.f32 %v9019_v21, %v2786_v15  ;;  %v4355_v23 = vmul.f32 0.6931472, %v7671_v51 }
0x42d3   :  { %5931 = vrot.lane.b32.xlu0 %v3310_v50, %s7707_s2  ;;  %v3833_v20 = vsub.f32 %v9024_v55, %v3832_v18  ;;  %v2261_v55 = vpop.xlane.xlu0 %2260 }
0x42d4   :  { %v4356_v8 = vsub.f32 %v9049_v27, %v4355_v23 }
0x42d5   :  { %v7673_v30 = vpop.eup %7672 }
0x42d6   :  { %v5401_v37 = vmul.f32 0.6931472, %v7673_v30 }
0x42d7   :  { %5943 = vrot.lane.b32.xlu0 %v4879_v42, %s7708_s3 }
0x42d8   :  { %v5402_v52 = vsub.f32 %v9054_v16, %v5401_v37 }
0x42e0   :  { %5927 = vrot.lane.b32.xlu1 %v2787_v28, %s7709_s7 }
0x42e4   :  { %5935 = vrot.lane.b32.xlu1 %v3833_v20, %s7710_s8 }
0x42e8   :  { %5939 = vrot.lane.b32.xlu1 %v4356_v8, %s7711_s9 }
0x42ec   :  { %5947 = vrot.lane.b32.xlu1 %v5402_v52, %s7712_s10 }
0x4345   :  { %v5932_v22 = vpop.permute.xlu0 %5931 }
0x4349   :  { %v5944_v27 = vpop.permute.xlu0 %5943 }
0x435c   :  { %v5922_v3 = vpop.xlane.xlu1 %5921 }
0x435d   :  { %7674 = vlog2.f32 %v5922_v3 }
0x435e   :  { %7676 = vlog2.f32 %v2261_v55 }
0x4360   :  { %v5928_v34 = vpop.permute.xlu1 %5927 }
0x4364   :  { %v5936_v17 = vpop.permute.xlu1 %5935 }
0x4367   :  { %v7675_v21 = vpop.eup %7674 }
0x4368   :  { %v5924_v13 = vmul.f32 0.6931472, %v7675_v21  ;;  %v7677_v9 = vpop.eup %7676  ;;  %v5940_v19 = vpop.permute.xlu1 %5939 }
0x4369   :  { %v2263_v38 = vmul.f32 0.6931472, %v7677_v9 }
0x436a   :  { %v5925_v33 = vsub.f32 %v5917_v57, %v5924_v13 }
0x436b   :  { %v2264_v58 = vsub.f32 %v9058_v63, %v2263_v38 }
0x436c   :  { %5951 = vrot.lane.b32.xlu0 %v5925_v33, %s7713_s11  ;;  %v5948_v16 = vpop.permute.xlu1 %5947 }
0x436d   :  { %v5954_v44 = vsel %vm122_vm0, %v2264_v58, %v5928_v34 }
0x436e   :  { %v5955_v12 = vsel %vm372_vm4, %v5954_v44, %v5932_v22 }
0x436f   :  { %v5957_v60 = vsel %vm5956_vm3, %v5955_v12, %v5936_v17 }
0x4370   :  { %v5959_v11 = vsel %vm5958_vm10, %v5957_v60, %v5940_v19 }
0x4371   :  { %v5961_v0 = vsel %vm5960_vm7, %v5959_v11, %v5944_v27 }
0x4372   :  { %v5963_v59 = vsel %vm5962_vm8, %v5961_v0, %v5948_v16 }
0x43de   :  { %v5952_v25 = vpop.permute.xlu0 %5951 }
0x43df   :  { %v5965_v45 = vsel %vm5964_vm9, %v5963_v59, %v5952_v25 }
0x43e0   :  { %5966 = vst [vmem:[%s9086_s6] sm:$0x3] %v5965_v45 }

</bundles_post_ra>
